<compile_context>
chip_gen: v7x
topology: tpu7x:2x2x1
jax: 0.10.0
libtpu: 0.0.40
codegen_flags: <defaults>
</compile_context>

<pallas_src>
import functools

import jax
import jax.numpy as jnp
from jax.experimental import pallas as pl
from jax.experimental.pallas import tpu as pltpu


_NEG_INF = -1e30  # finite mask value (avoids inf-inf NaN hazards)


# ----------------------------- in-kernel helpers -----------------------------

def _layernorm(x, gamma, beta, eps=1e-5):
    # matches nn.LayerNorm and the custom LayerNorm (biased variance, eps=1e-5)
    mean = jnp.mean(x, axis=-1, keepdims=True)
    var = jnp.mean((x - mean) ** 2, axis=-1, keepdims=True)
    return gamma * ((x - mean) * jax.lax.rsqrt(var + eps)) + beta


def _gelu_tanh(x):
    # nn.GELU(approximate='tanh'), evaluated in f32
    c = jnp.float32(0.7978845608028654)  # sqrt(2/pi)
    return 0.5 * x * (1.0 + jnp.tanh(c * (x + 0.044715 * x * x * x)))


# ----------------------------- tiling / capability helpers --------------------

@functools.lru_cache(maxsize=None)
def _vmem_limit_bytes():
    try:
        cap = pltpu.get_tpu_info().vmem_capacity_bytes
        return max(32 * 1024 * 1024, min(int(cap * 0.8), 100 * 1024 * 1024))
    except Exception:
        return 64 * 1024 * 1024


def _divisor_tile(n, prefs):
    for t in prefs:
        if n % t == 0:
            return t
    return n


def _attn_tile(S, H, hd, E):
    """Largest seq tile for the attention kernel that fits the VMEM budget."""
    budget = int(_vmem_limit_bytes() * 0.6)
    cands = [t for t in (256, 128) if S % t == 0]
    for t in cands:
        need = (4 * t * E * 2                # x in + out, double-buffered bf16
                + 6 * H * t * hd * 2         # q/k/v blocks, double-buffered bf16
                + 2 * H * t * t * 4          # s and p f32 temporaries
                + H * t * hd * 4             # ctx accumulator scratch
                + 2 * H * t * 128 * 4        # m/l scratch (lane padded)
                + t * E * 4                  # concat scratch
                + 2 * E * E * 2)             # wo resident
        if need <= budget:
            return t
    return cands[-1] if cands else S


def _ff_tile(E, F):
    """Hidden-dim tile for the FFN kernel; full F when the weights fit the budget."""
    budget = int(_vmem_limit_bytes() * 0.5)
    cands = [t for t in (F, 2048, 1024, 512, 256, 128) if F % t == 0]
    for t in cands:
        if 2 * (E * t + t * E) * 2 <= budget:   # double-buffered w1/w2 blocks, bf16
            return t
    return cands[-1] if cands else F


def _probe_copy_kernel(x_ref, o_ref):
    o_ref[...] = x_ref[...]


@functools.lru_cache(maxsize=None)
def _single_buffer_ok():
    """True iff this jax build supports pipeline_mode=pl.Buffered(1) on TPU."""
    if not hasattr(pl, "Buffered"):
        return False
    try:
        spec = pl.BlockSpec((8, 128), lambda i: (0, 0),
                            pipeline_mode=pl.Buffered(1))
        out = pl.pallas_call(
            _probe_copy_kernel,
            grid=(1,),
            in_specs=[spec],
            out_specs=pl.BlockSpec((8, 128), lambda i: (0, 0)),
            out_shape=jax.ShapeDtypeStruct((8, 128), jnp.float32),
        )(jnp.zeros((8, 128), jnp.float32))
        jax.block_until_ready(out)
        return True
    except Exception:
        return False


def _const_spec(arr, grid_ndim):
    """Full-array block with a constant index across the grid (weights / LN params).

    Single-buffered when supported — Pallas double-buffers every input by default,
    which would duplicate every resident weight in VMEM for zero benefit."""
    nd = arr.ndim
    zeros = (0,) * nd
    if grid_ndim == 2:
        idx = lambda i, j: zeros
    else:
        idx = lambda i, j, k: zeros
    if _single_buffer_ok():
        return pl.BlockSpec(arr.shape, idx, pipeline_mode=pl.Buffered(1))
    return pl.BlockSpec(arr.shape, idx)


# ----------------------------- Pallas kernels --------------------------------

def qkv_kernel(x_ref, g1_ref, be1_ref, wqkv_ref, q_ref, k_ref, v_ref, *, scale):
    """LN1 + fused per-head QKV projection, emitted directly in (B, H, S, hd) layout."""
    H, _, hd3 = wqkv_ref.shape
    hd = hd3 // 3
    x = x_ref[0].astype(jnp.float32)                       # (TS, E)
    h = _layernorm(x, g1_ref[...], be1_ref[...]).astype(jnp.bfloat16)
    for hh in range(H):                                    # static loop; K=E full depth
        qkv = jnp.dot(h, wqkv_ref[hh],
                      preferred_element_type=jnp.float32)  # (TS, 3*hd)
        q_ref[0, hh] = (qkv[:, :hd] * scale).astype(q_ref.dtype)  # fold 1/sqrt(hd) once
        k_ref[0, hh] = qkv[:, hd:2 * hd].astype(k_ref.dtype)
        v_ref[0, hh] = qkv[:, 2 * hd:].astype(v_ref.dtype)


def attn_kernel(x_ref, q_ref, k_ref, v_ref, wo_ref, bo_ref, out_ref,
                m_sc, l_sc, acc_sc, cat_sc):
    """Flash-style causal attention over kv tiles + full-depth out-proj + residual 1."""
    qi = pl.program_id(1)
    ki = pl.program_id(2)
    nk = pl.num_programs(2)
    H = q_ref.shape[1]
    hd = q_ref.shape[3]

    @pl.when(ki == 0)
    def _init():
        m_sc[...] = jnp.full_like(m_sc, _NEG_INF)
        l_sc[...] = jnp.zeros_like(l_sc)
        acc_sc[...] = jnp.zeros_like(acc_sc)

    def update(masked):
        q = q_ref[0]                                        # (H, TQ, hd) bf16, pre-scaled
        k = k_ref[0]                                        # (H, TK, hd) bf16
        v = v_ref[0]                                        # (H, TK, hd) bf16
        s = jnp.einsum('hqd,hkd->hqk', q, k,
                       preferred_element_type=jnp.float32)  # (H, TQ, TK) f32
        if masked:  # diagonal tile only (tq == tk): local causal mask
            row = jax.lax.broadcasted_iota(jnp.int32, s.shape, 1)
            col = jax.lax.broadcasted_iota(jnp.int32, s.shape, 2)
            s = jnp.where(col <= row, s, _NEG_INF)
        m_prev = m_sc[...]
        m_new = jnp.maximum(m_prev, jnp.max(s, axis=-1, keepdims=True))
        alpha = jnp.exp(m_prev - m_new)
        p = jnp.exp(s - m_new)
        l_sc[...] = alpha * l_sc[...] + jnp.sum(p, axis=-1, keepdims=True)
        acc_sc[...] = alpha * acc_sc[...] + jnp.einsum(
            'hqk,hkd->hqd', p.astype(jnp.bfloat16), v,
            preferred_element_type=jnp.float32)
        m_sc[...] = m_new

    @pl.when(ki < qi)        # strictly-past tiles: no mask work at all
    def _past():
        update(masked=False)

    @pl.when(ki == qi)       # diagonal tile: apply causal mask (ki > qi: skipped)
    def _diag():
        update(masked=True)

    @pl.when(ki == nk - 1)
    def _finalize():
        inv_l = pl.reciprocal(l_sc[...], approx=True)       # EUP slot, ~free
        ctx = acc_sc[...] * inv_l                           # (H, TQ, hd) f32
        # concat heads into a lane-dense (TQ, E) scratch (plain slice stores),
        # then ONE full-depth (TQ,E)@(E,E) out-projection matmul.
        for hh in range(H):
            cat_sc[:, hh * hd:(hh + 1) * hd] = ctx[hh]
        attn = jnp.dot(cat_sc[...].astype(jnp.bfloat16), wo_ref[...],
                       preferred_element_type=jnp.float32) + bo_ref[...]
        # TODO(synk): attention / shortcut dropout is identity at eval; not implemented.
        out_ref[0] = (x_ref[0].astype(jnp.float32) + attn).astype(out_ref.dtype)


def ffn_kernel(x_ref, g2_ref, be2_ref, w1_ref, b1_ref, w2_ref, b2_ref,
               out_ref, acc_sc):
    """LN2 + W1 + tanh-GELU + W2 + residual 2, hidden dim on a reduction grid axis."""
    f = pl.program_id(2)
    nf = pl.num_programs(2)
    x = x_ref[0].astype(jnp.float32)                        # (TS, E)
    h = _layernorm(x, g2_ref[...], be2_ref[...]).astype(jnp.bfloat16)
    part = jnp.dot(h, w1_ref[...],
                   preferred_element_type=jnp.float32) + b1_ref[...]   # (TS, TF)
    part = _gelu_tanh(part).astype(jnp.bfloat16)
    contrib = jnp.dot(part, w2_ref[...],
                      preferred_element_type=jnp.float32)              # (TS, E)

    @pl.when(f == 0)
    def _init():
        acc_sc[...] = jnp.zeros_like(acc_sc)

    acc_sc[...] += contrib

    @pl.when(f == nf - 1)
    def _finalize():
        out_ref[0] = (x + acc_sc[...] + b2_ref[...]).astype(out_ref.dtype)


def head_kernel(x_ref, g_ref, b_ref, wout_ref, out_ref):
    """Final LayerNorm + one (seq-tile, vocab-tile) of the output projection."""
    h = _layernorm(x_ref[0].astype(jnp.float32), g_ref[...], b_ref[...])
    out_ref[0] = jnp.dot(h.astype(jnp.bfloat16), wout_ref[...],
                         preferred_element_type=jnp.float32).astype(out_ref.dtype)


# ----------------------------- wrappers ---------------------------------------

def run_qkv(x, bp, scale):
    B, S, E = x.shape
    H, _, hd3 = bp["wqkv"].shape
    hd = hd3 // 3
    ts = _divisor_tile(S, (256, 128))
    x_spec = pl.BlockSpec((1, ts, E), lambda b, si: (b, si, 0))
    head_spec = pl.BlockSpec((1, H, ts, hd), lambda b, si: (b, 0, si, 0))
    out_sd = jax.ShapeDtypeStruct((B, H, S, hd), jnp.bfloat16)
    return pl.pallas_call(
        functools.partial(qkv_kernel, scale=scale),
        grid=(B, S // ts),
        in_specs=[x_spec,
                  _const_spec(bp["g1"], 2), _const_spec(bp["be1"], 2),
                  _const_spec(bp["wqkv"], 2)],
        out_specs=(head_spec, head_spec, head_spec),
        out_shape=(out_sd, out_sd, out_sd),
        compiler_params=pltpu.CompilerParams(
            dimension_semantics=("parallel", "parallel"),
            vmem_limit_bytes=_vmem_limit_bytes()),
    )(x, bp["g1"], bp["be1"], bp["wqkv"])


def run_attn(x, q, k, v, bp):
    B, H, S, hd = q.shape
    E = x.shape[-1]
    t = _attn_tile(S, H, hd, E)                   # tq == tk (capacity aware)
    x_spec = pl.BlockSpec((1, t, E), lambda b, qi, ki: (b, qi, 0))
    q_spec = pl.BlockSpec((1, H, t, hd), lambda b, qi, ki: (b, 0, qi, 0))
    # clamp the kv block index: causally-future tiles map to the resident block,
    # so their HBM fetch is elided (compute is skipped by pl.when in the kernel).
    kv_spec = pl.BlockSpec((1, H, t, hd),
                           lambda b, qi, ki: (b, 0, jnp.minimum(ki, qi), 0))
    return pl.pallas_call(
        attn_kernel,
        grid=(B, S // t, S // t),
        in_specs=[x_spec, q_spec, kv_spec, kv_spec,
                  _const_spec(bp["wo"], 3), _const_spec(bp["bo"], 3)],
        out_specs=pl.BlockSpec((1, t, E), lambda b, qi, ki: (b, qi, 0)),
        out_shape=jax.ShapeDtypeStruct((B, S, E), jnp.bfloat16),
        scratch_shapes=[
            # TODO(synk): (H, t, 1) stats pad to 128 lanes; loop-carrying the kv loop
            # in-kernel would remove this round trip.
            pltpu.VMEM((H, t, 1), jnp.float32),    # running max
            pltpu.VMEM((H, t, 1), jnp.float32),    # running sum
            pltpu.VMEM((H, t, hd), jnp.float32),   # ctx accumulator
            pltpu.VMEM((t, E), jnp.float32)],      # head-concat scratch
        compiler_params=pltpu.CompilerParams(
            dimension_semantics=("parallel", "parallel", "arbitrary"),
            vmem_limit_bytes=_vmem_limit_bytes()),
    )(x, q, k, v, bp["wo"], bp["bo"])


def run_ffn(x, bp):
    B, S, E = x.shape
    F = bp["w1"].shape[1]
    ts = _divisor_tile(S, (256, 128))
    tf = _ff_tile(E, F)
    return pl.pallas_call(
        ffn_kernel,
        grid=(B, S // ts, F // tf),
        in_specs=[pl.BlockSpec((1, ts, E), lambda b, si, f: (b, si, 0)),
                  _const_spec(bp["g2"], 3), _const_spec(bp["be2"], 3),
                  pl.BlockSpec((E, tf), lambda b, si, f: (0, f)),
                  pl.BlockSpec((1, tf), lambda b, si, f: (0, f)),
                  pl.BlockSpec((tf, E), lambda b, si, f: (f, 0)),
                  _const_spec(bp["b2"], 3)],
        out_specs=pl.BlockSpec((1, ts, E), lambda b, si, f: (b, si, 0)),
        out_shape=jax.ShapeDtypeStruct((B, S, E), jnp.bfloat16),
        scratch_shapes=[pltpu.VMEM((ts, E), jnp.float32)],
        compiler_params=pltpu.CompilerParams(
            dimension_semantics=("parallel", "parallel", "arbitrary"),
            vmem_limit_bytes=_vmem_limit_bytes()),
    )(x, bp["g2"], bp["be2"], bp["w1"], bp["b1"], bp["w2"], bp["b2"])


def run_head(x, gamma, beta, wout):
    B, S, E = x.shape
    V = wout.shape[1]
    ts = _divisor_tile(S, (512, 256, 128))
    tv = _divisor_tile(V, (1024, 512, 256, 128))
    # vocab axis outermost: each (E, tv) wout tile is fetched from HBM exactly once
    # and reused over all (batch, seq) tiles.
    return pl.pallas_call(
        head_kernel,
        grid=(V // tv, B, S // ts),
        in_specs=[pl.BlockSpec((1, ts, E), lambda vj, b, si: (b, si, 0)),
                  _const_spec(gamma, 3), _const_spec(beta, 3),
                  pl.BlockSpec((E, tv), lambda vj, b, si: (0, vj))],
        out_specs=pl.BlockSpec((1, ts, tv), lambda vj, b, si: (b, si, vj)),
        out_shape=jax.ShapeDtypeStruct((B, S, V), jnp.float32),
        compiler_params=pltpu.CompilerParams(
            dimension_semantics=("parallel", "parallel", "parallel"),
            vmem_limit_bytes=_vmem_limit_bytes()),
    )(x, gamma, beta, wout)


def gpt_forward(in_idx, params, cfg):
    B, S = in_idx.shape
    H = cfg["n_heads"]
    E = cfg["emb_dim"]
    hd = E // H
    scale = 1.0 / float(hd) ** 0.5

    # embedding gathers + positional add are glue (plain JAX); drop_emb is identity.
    x = params["tok_emb"][in_idx] + params["pos_emb"][:S][None, :, :]
    x = x.astype(jnp.bfloat16)   # residual stream carried in bf16 (HBM bandwidth)

    # TODO(synk): per-layer weights are still fetched serially per pallas_call; stacking
    # layers on a grid axis or cross-call DMA futures would hide that weight DMA.
    for bp in params["blocks"]:
        q, k, v = run_qkv(x, bp, scale)        # emitted directly as (B, H, S, hd)
        x = run_attn(x, q, k, v, bp)           # attention + out-proj + residual 1
        x = run_ffn(x, bp)                     # LN2 + FFN + residual 2

    return run_head(x, params["final_g"], params["final_b"], params["wout"])


# ----------------------------- parameter init ---------------------------------

def init_params(key, cfg):
    E = cfg["emb_dim"]
    V = cfg["vocab_size"]
    C = cfg["context_length"]
    H = cfg["n_heads"]
    hd = E // H

    def nrm(k, shape, std=0.02, dtype=jnp.bfloat16):
        return (std * jax.random.normal(k, shape, dtype=jnp.float32)).astype(dtype)

    keys = jax.random.split(key, 3 + cfg["n_layers"])
    params = {
        "tok_emb": nrm(keys[0], (V, E), dtype=jnp.float32),
        "pos_emb": nrm(keys[1], (C, E), dtype=jnp.float32),
        "final_g": jnp.ones((1, E), jnp.float32),
        "final_b": jnp.zeros((1, E), jnp.float32),
        "wout": nrm(keys[2], (E, V)),                     # bf16
        "blocks": [],
    }
    for li in range(cfg["n_layers"]):
        lk = jax.random.split(keys[3 + li], 4)
        params["blocks"].append(dict(
            # fused per-head QKV weight: (H, E, 3*hd); qkv_bias=False per config
            wqkv=nrm(lk[0], (H, E, 3 * hd)),
            wo=nrm(lk[1], (E, E)),                        # out-proj (concat-head layout)
            bo=jnp.zeros((1, E), jnp.float32),
            w1=nrm(lk[2], (E, 4 * E)),
            b1=jnp.zeros((1, 4 * E), jnp.float32),
            w2=nrm(lk[3], (4 * E, E)),
            b2=jnp.zeros((1, E), jnp.float32),
            g1=jnp.ones((1, E), jnp.float32),
            be1=jnp.zeros((1, E), jnp.float32),
            g2=jnp.ones((1, E), jnp.float32),
            be2=jnp.zeros((1, E), jnp.float32),
        ))
    return params


# ----------------------------- main --------------------------------------------

if __name__ == "__main__":
    cfg = dict(vocab_size=128, context_length=16, emb_dim=32,
               n_heads=4, n_layers=2, drop_rate=0.0, qkv_bias=False)

    key = jax.random.PRNGKey(0)
    pkey, ikey = jax.random.split(key)
    params = init_params(pkey, cfg)

    B, S = 2, 8
    in_idx = jax.random.randint(ikey, (B, S), 0, cfg["vocab_size"], dtype=jnp.int32)

    # run capability / hardware probes outside jit tracing (results are cached)
    _single_buffer_ok()
    _vmem_limit_bytes()

    fwd = jax.jit(lambda idx: gpt_forward(idx, params, cfg))
    logits = fwd(in_idx)
    jax.block_until_ready(logits)
    assert logits.shape == (B, S, cfg["vocab_size"]), logits.shape
    assert bool(jnp.all(jnp.isfinite(logits)))
    print("KERNEL_OK")
</pallas_src>

<mosaic_0001>
module attributes {stable_mosaic.version = 11 : i64} {
  func.func @_probe_copy_kernel(%arg0: i32, %arg1: memref<8x128xf32, #tpu.memory_space<vmem>>, %arg2: memref<8x128xf32, #tpu.memory_space<vmem>>) attributes {dimension_semantics = [#tpu.dimension_semantics<arbitrary>], iteration_bounds = array<i64: 1>, scalar_prefetch = 0 : i64, scratch_operands = 0 : i64, tpu.core_type = #tpu.core_type<tc>, window_params = [{pipeline_mode = #tpu.pipeline_mode<synchronous>, transform_indices = @transform_0, window_bounds = array<i64: 8, 128>}, {pipeline_mode = #tpu.pipeline_mode<synchronous>, transform_indices = @transform_1, window_bounds = array<i64: 8, 128>}]} {
    %c0 = arith.constant 0 : index
    %c0_0 = arith.constant 0 : index
    %0 = vector.load %arg1[%c0, %c0_0] : memref<8x128xf32, #tpu.memory_space<vmem>>, vector<8x128xf32>
    %c0_1 = arith.constant 0 : index
    %c0_2 = arith.constant 0 : index
    %1 = vector.load %arg2[%c0_1, %c0_2] : memref<8x128xf32, #tpu.memory_space<vmem>>, vector<8x128xf32>
    tpu.vector_store %arg2[%c0_1, %c0_2], %0 {strides = array<i32>} : memref<8x128xf32, #tpu.memory_space<vmem>>, vector<8x128xf32>,
    return
  }
  func.func @transform_0(%arg0: i32) -> (i32, i32) {
    %c0_i32 = arith.constant 0 : i32
    %c0_i32_0 = arith.constant 0 : i32
    %c0_i32_1 = arith.constant 0 : i32
    return %c0_i32, %c0_i32_0 : i32, i32
  }
  func.func @transform_1(%arg0: i32) -> (i32, i32) {
    %c0_i32 = arith.constant 0 : i32
    %c0_i32_0 = arith.constant 0 : i32
    %c0_i32_1 = arith.constant 0 : i32
    return %c0_i32, %c0_i32_0 : i32, i32
  }
}

module attributes {stable_mosaic.version = 11 : i64} {
  func.func @qkv_kernel(%arg0: i32, %arg1: i32, %arg2: memref<1x8x32xbf16, #tpu.memory_space<vmem>>, %arg3: memref<1x32xf32, #tpu.memory_space<vmem>>, %arg4: memref<1x32xf32, #tpu.memory_space<vmem>>, %arg5: memref<4x32x24xbf16, #tpu.memory_space<vmem>>, %arg6: memref<1x4x8x8xbf16, #tpu.memory_space<vmem>>, %arg7: memref<1x4x8x8xbf16, #tpu.memory_space<vmem>>, %arg8: memref<1x4x8x8xbf16, #tpu.memory_space<vmem>>) attributes {dimension_semantics = [#tpu.dimension_semantics<parallel>, #tpu.dimension_semantics<parallel>], iteration_bounds = array<i64: 2, 1>, scalar_prefetch = 0 : i64, scratch_operands = 0 : i64, tpu.core_type = #tpu.core_type<tc>, window_params = [{transform_indices = @transform_0, window_bounds = array<i64: 1, 8, 32>}, {pipeline_mode = #tpu.pipeline_mode<synchronous>, transform_indices = @transform_1, window_bounds = array<i64: 1, 32>}, {pipeline_mode = #tpu.pipeline_mode<synchronous>, transform_indices = @transform_2, window_bounds = array<i64: 1, 32>}, {pipeline_mode = #tpu.pipeline_mode<synchronous>, transform_indices = @transform_3, window_bounds = array<i64: 4, 32, 24>}, {transform_indices = @transform_4, window_bounds = array<i64: 1, 4, 8, 8>}, {transform_indices = @transform_5, window_bounds = array<i64: 1, 4, 8, 8>}, {transform_indices = @transform_6, window_bounds = array<i64: 1, 4, 8, 8>}]} {
    %c0 = arith.constant 0 : index
    %c0_0 = arith.constant 0 : index
    %c0_1 = arith.constant 0 : index
    %0 = vector.load %arg2[%c0, %c0_0, %c0_1] : memref<1x8x32xbf16, #tpu.memory_space<vmem>>, vector<1x8x32xbf16>
    %1 = vector.shape_cast %0 : vector<1x8x32xbf16> to vector<8x32xbf16>
    %2 = arith.extf %1 : vector<8x32xbf16> to vector<8x32xf32>
    %c0_2 = arith.constant 0 : index
    %c0_3 = arith.constant 0 : index
    %3 = vector.load %arg3[%c0_2, %c0_3] : memref<1x32xf32, #tpu.memory_space<vmem>>, vector<1x32xf32>
    %c0_4 = arith.constant 0 : index
    %c0_5 = arith.constant 0 : index
    %4 = vector.load %arg4[%c0_4, %c0_5] : memref<1x32xf32, #tpu.memory_space<vmem>>, vector<1x32xf32>
    %cst = arith.constant dense<0.000000e+00> : vector<8xf32>
    %5 = vector.multi_reduction <add>, %2, %cst [1] : vector<8x32xf32> to vector<8xf32>
    %6 = vector.shape_cast %5 : vector<8xf32> to vector<8x1xf32>
    %cst_6 = arith.constant 3.200000e+01 : f32
    %7 = vector.broadcast %cst_6 : f32 to vector<8x1xf32>
    %8 = arith.divf %6, %7 : vector<8x1xf32>
    %9 = vector.broadcast %8 : vector<8x1xf32> to vector<8x32xf32>
    %10 = arith.subf %2, %9 : vector<8x32xf32>
    %11 = arith.mulf %10, %10 : vector<8x32xf32>
    %cst_7 = arith.constant dense<0.000000e+00> : vector<8xf32>
    %12 = vector.multi_reduction <add>, %11, %cst_7 [1] : vector<8x32xf32> to vector<8xf32>
    %13 = vector.shape_cast %12 : vector<8xf32> to vector<8x1xf32>
    %cst_8 = arith.constant 3.200000e+01 : f32
    %14 = vector.broadcast %cst_8 : f32 to vector<8x1xf32>
    %15 = arith.divf %13, %14 : vector<8x1xf32>
    %16 = vector.broadcast %8 : vector<8x1xf32> to vector<8x32xf32>
    %17 = arith.subf %2, %16 : vector<8x32xf32>
    %cst_9 = arith.constant 9.99999974E-6 : f32
    %18 = vector.broadcast %cst_9 : f32 to vector<8x1xf32>
    %19 = arith.addf %15, %18 : vector<8x1xf32>
    %20 = math.rsqrt %19 : vector<8x1xf32>
    %21 = vector.broadcast %20 : vector<8x1xf32> to vector<8x32xf32>
    %22 = arith.mulf %17, %21 : vector<8x32xf32>
    %23 = vector.broadcast %3 : vector<1x32xf32> to vector<8x32xf32>
    %24 = arith.mulf %23, %22 : vector<8x32xf32>
    %25 = vector.broadcast %4 : vector<1x32xf32> to vector<8x32xf32>
    %26 = arith.addf %24, %25 : vector<8x32xf32>
    %27 = arith.truncf %26 : vector<8x32xf32> to vector<8x32xbf16>
    %c0_10 = arith.constant 0 : index
    %c0_11 = arith.constant 0 : index
    %c0_12 = arith.constant 0 : index
    %28 = vector.load %arg5[%c0_10, %c0_11, %c0_12] : memref<4x32x24xbf16, #tpu.memory_space<vmem>>, vector<1x32x24xbf16>
    %29 = vector.shape_cast %28 : vector<1x32x24xbf16> to vector<32x24xbf16>
    %cst_13 = arith.constant dense<0.000000e+00> : vector<8x24xf32>
    %30 = tpu.matmul %27, %29, %cst_13 {dimension_numbers = #tpu.dot_dimension_numbers<[1], [0], [0], [1], [0, 0, 1, 1], [], []>} : vector<8x32xbf16>, vector<32x24xbf16>, vector<8x24xf32> -> vector<8x24xf32>
    %31 = vector.extract_strided_slice %30 {offsets = [0, 0], sizes = [8, 8], strides = [1, 1]} : vector<8x24xf32> to vector<8x8xf32>
    %cst_14 = arith.constant 0.353553385 : f32
    %32 = vector.broadcast %cst_14 : f32 to vector<8x8xf32>
    %33 = arith.mulf %31, %32 : vector<8x8xf32>
    %34 = arith.truncf %33 : vector<8x8xf32> to vector<8x8xbf16>
    %c0_15 = arith.constant 0 : index
    %c0_16 = arith.constant 0 : index
    %c0_17 = arith.constant 0 : index
    %c0_18 = arith.constant 0 : index
    %35 = vector.load %arg6[%c0_15, %c0_16, %c0_17, %c0_18] : memref<1x4x8x8xbf16, #tpu.memory_space<vmem>>, vector<1x1x8x8xbf16>
    %36 = vector.shape_cast %35 : vector<1x1x8x8xbf16> to vector<8x8xbf16>
    %37 = vector.shape_cast %34 : vector<8x8xbf16> to vector<1x1x8x8xbf16>
    tpu.vector_store %arg6[%c0_15, %c0_16, %c0_17, %c0_18], %37 {strides = array<i32>} : memref<1x4x8x8xbf16, #tpu.memory_space<vmem>>, vector<1x1x8x8xbf16>,
    %38 = vector.extract_strided_slice %30 {offsets = [0, 8], sizes = [8, 8], strides = [1, 1]} : vector<8x24xf32> to vector<8x8xf32>
    %39 = arith.truncf %38 : vector<8x8xf32> to vector<8x8xbf16>
    %c0_19 = arith.constant 0 : index
    %c0_20 = arith.constant 0 : index
    %c0_21 = arith.constant 0 : index
    %c0_22 = arith.constant 0 : index
    %40 = vector.load %arg7[%c0_19, %c0_20, %c0_21, %c0_22] : memref<1x4x8x8xbf16, #tpu.memory_space<vmem>>, vector<1x1x8x8xbf16>
    %41 = vector.shape_cast %40 : vector<1x1x8x8xbf16> to vector<8x8xbf16>
    %42 = vector.shape_cast %39 : vector<8x8xbf16> to vector<1x1x8x8xbf16>
    tpu.vector_store %arg7[%c0_19, %c0_20, %c0_21, %c0_22], %42 {strides = array<i32>} : memref<1x4x8x8xbf16, #tpu.memory_space<vmem>>, vector<1x1x8x8xbf16>,
    %43 = vector.extract_strided_slice %30 {offsets = [0, 16], sizes = [8, 8], strides = [1, 1]} : vector<8x24xf32> to vector<8x8xf32>
    %44 = arith.truncf %43 : vector<8x8xf32> to vector<8x8xbf16>
    %c0_23 = arith.constant 0 : index
    %c0_24 = arith.constant 0 : index
    %c0_25 = arith.constant 0 : index
    %c0_26 = arith.constant 0 : index
    %45 = vector.load %arg8[%c0_23, %c0_24, %c0_25, %c0_26] : memref<1x4x8x8xbf16, #tpu.memory_space<vmem>>, vector<1x1x8x8xbf16>
    %46 = vector.shape_cast %45 : vector<1x1x8x8xbf16> to vector<8x8xbf16>
    %47 = vector.shape_cast %44 : vector<8x8xbf16> to vector<1x1x8x8xbf16>
    tpu.vector_store %arg8[%c0_23, %c0_24, %c0_25, %c0_26], %47 {strides = array<i32>} : memref<1x4x8x8xbf16, #tpu.memory_space<vmem>>, vector<1x1x8x8xbf16>,
    %c1 = arith.constant 1 : index
    %c0_27 = arith.constant 0 : index
    %c0_28 = arith.constant 0 : index
    %48 = vector.load %arg5[%c1, %c0_27, %c0_28] : memref<4x32x24xbf16, #tpu.memory_space<vmem>>, vector<1x32x24xbf16>
    %49 = vector.shape_cast %48 : vector<1x32x24xbf16> to vector<32x24xbf16>
    %cst_29 = arith.constant dense<0.000000e+00> : vector<8x24xf32>
    %50 = tpu.matmul %27, %49, %cst_29 {dimension_numbers = #tpu.dot_dimension_numbers<[1], [0], [0], [1], [0, 0, 1, 1], [], []>} : vector<8x32xbf16>, vector<32x24xbf16>, vector<8x24xf32> -> vector<8x24xf32>
    %51 = vector.extract_strided_slice %50 {offsets = [0, 0], sizes = [8, 8], strides = [1, 1]} : vector<8x24xf32> to vector<8x8xf32>
    %cst_30 = arith.constant 0.353553385 : f32
    %52 = vector.broadcast %cst_30 : f32 to vector<8x8xf32>
    %53 = arith.mulf %51, %52 : vector<8x8xf32>
    %54 = arith.truncf %53 : vector<8x8xf32> to vector<8x8xbf16>
    %c0_31 = arith.constant 0 : index
    %c1_32 = arith.constant 1 : index
    %c0_33 = arith.constant 0 : index
    %c0_34 = arith.constant 0 : index
    %55 = vector.load %arg6[%c0_31, %c1_32, %c0_33, %c0_34] : memref<1x4x8x8xbf16, #tpu.memory_space<vmem>>, vector<1x1x8x8xbf16>
    %56 = vector.shape_cast %55 : vector<1x1x8x8xbf16> to vector<8x8xbf16>
    %57 = vector.shape_cast %54 : vector<8x8xbf16> to vector<1x1x8x8xbf16>
    tpu.vector_store %arg6[%c0_31, %c1_32, %c0_33, %c0_34], %57 {strides = array<i32>} : memref<1x4x8x8xbf16, #tpu.memory_space<vmem>>, vector<1x1x8x8xbf16>,
    %58 = vector.extract_strided_slice %50 {offsets = [0, 8], sizes = [8, 8], strides = [1, 1]} : vector<8x24xf32> to vector<8x8xf32>
    %59 = arith.truncf %58 : vector<8x8xf32> to vector<8x8xbf16>
    %c0_35 = arith.constant 0 : index
    %c1_36 = arith.constant 1 : index
    %c0_37 = arith.constant 0 : index
    %c0_38 = arith.constant 0 : index
    %60 = vector.load %arg7[%c0_35, %c1_36, %c0_37, %c0_38] : memref<1x4x8x8xbf16, #tpu.memory_space<vmem>>, vector<1x1x8x8xbf16>
    %61 = vector.shape_cast %60 : vector<1x1x8x8xbf16> to vector<8x8xbf16>
    %62 = vector.shape_cast %59 : vector<8x8xbf16> to vector<1x1x8x8xbf16>
    tpu.vector_store %arg7[%c0_35, %c1_36, %c0_37, %c0_38], %62 {strides = array<i32>} : memref<1x4x8x8xbf16, #tpu.memory_space<vmem>>, vector<1x1x8x8xbf16>,
    %63 = vector.extract_strided_slice %50 {offsets = [0, 16], sizes = [8, 8], strides = [1, 1]} : vector<8x24xf32> to vector<8x8xf32>
    %64 = arith.truncf %63 : vector<8x8xf32> to vector<8x8xbf16>
    %c0_39 = arith.constant 0 : index
    %c1_40 = arith.constant 1 : index
    %c0_41 = arith.constant 0 : index
    %c0_42 = arith.constant 0 : index
    %65 = vector.load %arg8[%c0_39, %c1_40, %c0_41, %c0_42] : memref<1x4x8x8xbf16, #tpu.memory_space<vmem>>, vector<1x1x8x8xbf16>
    %66 = vector.shape_cast %65 : vector<1x1x8x8xbf16> to vector<8x8xbf16>
    %67 = vector.shape_cast %64 : vector<8x8xbf16> to vector<1x1x8x8xbf16>
    tpu.vector_store %arg8[%c0_39, %c1_40, %c0_41, %c0_42], %67 {strides = array<i32>} : memref<1x4x8x8xbf16, #tpu.memory_space<vmem>>, vector<1x1x8x8xbf16>,
    %c2 = arith.constant 2 : index
    %c0_43 = arith.constant 0 : index
    %c0_44 = arith.constant 0 : index
    %68 = vector.load %arg5[%c2, %c0_43, %c0_44] : memref<4x32x24xbf16, #tpu.memory_space<vmem>>, vector<1x32x24xbf16>
    %69 = vector.shape_cast %68 : vector<1x32x24xbf16> to vector<32x24xbf16>
    %cst_45 = arith.constant dense<0.000000e+00> : vector<8x24xf32>
    %70 = tpu.matmul %27, %69, %cst_45 {dimension_numbers = #tpu.dot_dimension_numbers<[1], [0], [0], [1], [0, 0, 1, 1], [], []>} : vector<8x32xbf16>, vector<32x24xbf16>, vector<8x24xf32> -> vector<8x24xf32>
    %71 = vector.extract_strided_slice %70 {offsets = [0, 0], sizes = [8, 8], strides = [1, 1]} : vector<8x24xf32> to vector<8x8xf32>
    %cst_46 = arith.constant 0.353553385 : f32
    %72 = vector.broadcast %cst_46 : f32 to vector<8x8xf32>
    %73 = arith.mulf %71, %72 : vector<8x8xf32>
    %74 = arith.truncf %73 : vector<8x8xf32> to vector<8x8xbf16>
    %c0_47 = arith.constant 0 : index
    %c2_48 = arith.constant 2 : index
    %c0_49 = arith.constant 0 : index
    %c0_50 = arith.constant 0 : index
    %75 = vector.load %arg6[%c0_47, %c2_48, %c0_49, %c0_50] : memref<1x4x8x8xbf16, #tpu.memory_space<vmem>>, vector<1x1x8x8xbf16>
    %76 = vector.shape_cast %75 : vector<1x1x8x8xbf16> to vector<8x8xbf16>
    %77 = vector.shape_cast %74 : vector<8x8xbf16> to vector<1x1x8x8xbf16>
    tpu.vector_store %arg6[%c0_47, %c2_48, %c0_49, %c0_50], %77 {strides = array<i32>} : memref<1x4x8x8xbf16, #tpu.memory_space<vmem>>, vector<1x1x8x8xbf16>,
    %78 = vector.extract_strided_slice %70 {offsets = [0, 8], sizes = [8, 8], strides = [1, 1]} : vector<8x24xf32> to vector<8x8xf32>
    %79 = arith.truncf %78 : vector<8x8xf32> to vector<8x8xbf16>
    %c0_51 = arith.constant 0 : index
    %c2_52 = arith.constant 2 : index
    %c0_53 = arith.constant 0 : index
    %c0_54 = arith.constant 0 : index
    %80 = vector.load %arg7[%c0_51, %c2_52, %c0_53, %c0_54] : memref<1x4x8x8xbf16, #tpu.memory_space<vmem>>, vector<1x1x8x8xbf16>
    %81 = vector.shape_cast %80 : vector<1x1x8x8xbf16> to vector<8x8xbf16>
    %82 = vector.shape_cast %79 : vector<8x8xbf16> to vector<1x1x8x8xbf16>
    tpu.vector_store %arg7[%c0_51, %c2_52, %c0_53, %c0_54], %82 {strides = array<i32>} : memref<1x4x8x8xbf16, #tpu.memory_space<vmem>>, vector<1x1x8x8xbf16>,
    %83 = vector.extract_strided_slice %70 {offsets = [0, 16], sizes = [8, 8], strides = [1, 1]} : vector<8x24xf32> to vector<8x8xf32>
    %84 = arith.truncf %83 : vector<8x8xf32> to vector<8x8xbf16>
    %c0_55 = arith.constant 0 : index
    %c2_56 = arith.constant 2 : index
    %c0_57 = arith.constant 0 : index
    %c0_58 = arith.constant 0 : index
    %85 = vector.load %arg8[%c0_55, %c2_56, %c0_57, %c0_58] : memref<1x4x8x8xbf16, #tpu.memory_space<vmem>>, vector<1x1x8x8xbf16>
    %86 = vector.shape_cast %85 : vector<1x1x8x8xbf16> to vector<8x8xbf16>
    %87 = vector.shape_cast %84 : vector<8x8xbf16> to vector<1x1x8x8xbf16>
    tpu.vector_store %arg8[%c0_55, %c2_56, %c0_57, %c0_58], %87 {strides = array<i32>} : memref<1x4x8x8xbf16, #tpu.memory_space<vmem>>, vector<1x1x8x8xbf16>,
    %c3 = arith.constant 3 : index
    %c0_59 = arith.constant 0 : index
    %c0_60 = arith.constant 0 : index
    %88 = vector.load %arg5[%c3, %c0_59, %c0_60] : memref<4x32x24xbf16, #tpu.memory_space<vmem>>, vector<1x32x24xbf16>
    %89 = vector.shape_cast %88 : vector<1x32x24xbf16> to vector<32x24xbf16>
    %cst_61 = arith.constant dense<0.000000e+00> : vector<8x24xf32>
    %90 = tpu.matmul %27, %89, %cst_61 {dimension_numbers = #tpu.dot_dimension_numbers<[1], [0], [0], [1], [0, 0, 1, 1], [], []>} : vector<8x32xbf16>, vector<32x24xbf16>, vector<8x24xf32> -> vector<8x24xf32>
    %91 = vector.extract_strided_slice %90 {offsets = [0, 0], sizes = [8, 8], strides = [1, 1]} : vector<8x24xf32> to vector<8x8xf32>
    %cst_62 = arith.constant 0.353553385 : f32
    %92 = vector.broadcast %cst_62 : f32 to vector<8x8xf32>
    %93 = arith.mulf %91, %92 : vector<8x8xf32>
    %94 = arith.truncf %93 : vector<8x8xf32> to vector<8x8xbf16>
    %c0_63 = arith.constant 0 : index
    %c3_64 = arith.constant 3 : index
    %c0_65 = arith.constant 0 : index
    %c0_66 = arith.constant 0 : index
    %95 = vector.load %arg6[%c0_63, %c3_64, %c0_65, %c0_66] : memref<1x4x8x8xbf16, #tpu.memory_space<vmem>>, vector<1x1x8x8xbf16>
    %96 = vector.shape_cast %95 : vector<1x1x8x8xbf16> to vector<8x8xbf16>
    %97 = vector.shape_cast %94 : vector<8x8xbf16> to vector<1x1x8x8xbf16>
    tpu.vector_store %arg6[%c0_63, %c3_64, %c0_65, %c0_66], %97 {strides = array<i32>} : memref<1x4x8x8xbf16, #tpu.memory_space<vmem>>, vector<1x1x8x8xbf16>,
    %98 = vector.extract_strided_slice %90 {offsets = [0, 8], sizes = [8, 8], strides = [1, 1]} : vector<8x24xf32> to vector<8x8xf32>
    %99 = arith.truncf %98 : vector<8x8xf32> to vector<8x8xbf16>
    %c0_67 = arith.constant 0 : index
    %c3_68 = arith.constant 3 : index
    %c0_69 = arith.constant 0 : index
    %c0_70 = arith.constant 0 : index
    %100 = vector.load %arg7[%c0_67, %c3_68, %c0_69, %c0_70] : memref<1x4x8x8xbf16, #tpu.memory_space<vmem>>, vector<1x1x8x8xbf16>
    %101 = vector.shape_cast %100 : vector<1x1x8x8xbf16> to vector<8x8xbf16>
    %102 = vector.shape_cast %99 : vector<8x8xbf16> to vector<1x1x8x8xbf16>
    tpu.vector_store %arg7[%c0_67, %c3_68, %c0_69, %c0_70], %102 {strides = array<i32>} : memref<1x4x8x8xbf16, #tpu.memory_space<vmem>>, vector<1x1x8x8xbf16>,
    %103 = vector.extract_strided_slice %90 {offsets = [0, 16], sizes = [8, 8], strides = [1, 1]} : vector<8x24xf32> to vector<8x8xf32>
    %104 = arith.truncf %103 : vector<8x8xf32> to vector<8x8xbf16>
    %c0_71 = arith.constant 0 : index
    %c3_72 = arith.constant 3 : index
    %c0_73 = arith.constant 0 : index
    %c0_74 = arith.constant 0 : index
    %105 = vector.load %arg8[%c0_71, %c3_72, %c0_73, %c0_74] : memref<1x4x8x8xbf16, #tpu.memory_space<vmem>>, vector<1x1x8x8xbf16>
    %106 = vector.shape_cast %105 : vector<1x1x8x8xbf16> to vector<8x8xbf16>
    %107 = vector.shape_cast %104 : vector<8x8xbf16> to vector<1x1x8x8xbf16>
    tpu.vector_store %arg8[%c0_71, %c3_72, %c0_73, %c0_74], %107 {strides = array<i32>} : memref<1x4x8x8xbf16, #tpu.memory_space<vmem>>, vector<1x1x8x8xbf16>,
    return
  }
  func.func @transform_0(%arg0: i32, %arg1: i32) -> (i32, i32, i32) {
    %c0_i32 = arith.constant 0 : i32
    %c0_i32_0 = arith.constant 0 : i32
    return %arg0, %arg1, %c0_i32 : i32, i32, i32
  }
  func.func @transform_1(%arg0: i32, %arg1: i32) -> (i32, i32) {
    %c0_i32 = arith.constant 0 : i32
    %c0_i32_0 = arith.constant 0 : i32
    %c0_i32_1 = arith.constant 0 : i32
    return %c0_i32, %c0_i32_0 : i32, i32
  }
  func.func @transform_2(%arg0: i32, %arg1: i32) -> (i32, i32) {
    %c0_i32 = arith.constant 0 : i32
    %c0_i32_0 = arith.constant 0 : i32
    %c0_i32_1 = arith.constant 0 : i32
    return %c0_i32, %c0_i32_0 : i32, i32
  }
  func.func @transform_3(%arg0: i32, %arg1: i32) -> (i32, i32, i32) {
    %c0_i32 = arith.constant 0 : i32
    %c0_i32_0 = arith.constant 0 : i32
    %c0_i32_1 = arith.constant 0 : i32
    %c0_i32_2 = arith.constant 0 : i32
    return %c0_i32, %c0_i32_0, %c0_i32_1 : i32, i32, i32
  }
  func.func @transform_4(%arg0: i32, %arg1: i32) -> (i32, i32, i32, i32) {
    %c0_i32 = arith.constant 0 : i32
    %c0_i32_0 = arith.constant 0 : i32
    %c0_i32_1 = arith.constant 0 : i32
    return %arg0, %c0_i32, %arg1, %c0_i32_0 : i32, i32, i32, i32
  }
  func.func @transform_5(%arg0: i32, %arg1: i32) -> (i32, i32, i32, i32) {
    %c0_i32 = arith.constant 0 : i32
    %c0_i32_0 = arith.constant 0 : i32
    %c0_i32_1 = arith.constant 0 : i32
    return %arg0, %c0_i32, %arg1, %c0_i32_0 : i32, i32, i32, i32
  }
  func.func @transform_6(%arg0: i32, %arg1: i32) -> (i32, i32, i32, i32) {
    %c0_i32 = arith.constant 0 : i32
    %c0_i32_0 = arith.constant 0 : i32
    %c0_i32_1 = arith.constant 0 : i32
    return %arg0, %c0_i32, %arg1, %c0_i32_0 : i32, i32, i32, i32
  }
}

module attributes {stable_mosaic.version = 11 : i64} {
  func.func @attn_kernel(%arg0: i32, %arg1: i32, %arg2: i32, %arg3: memref<1x8x32xbf16, #tpu.memory_space<vmem>>, %arg4: memref<1x4x8x8xbf16, #tpu.memory_space<vmem>>, %arg5: memref<1x4x8x8xbf16, #tpu.memory_space<vmem>>, %arg6: memref<1x4x8x8xbf16, #tpu.memory_space<vmem>>, %arg7: memref<32x32xbf16, #tpu.memory_space<vmem>>, %arg8: memref<1x32xf32, #tpu.memory_space<vmem>>, %arg9: memref<1x8x32xbf16, #tpu.memory_space<vmem>>, %arg10: memref<4x8x1xf32, #tpu.memory_space<vmem>>, %arg11: memref<4x8x1xf32, #tpu.memory_space<vmem>>, %arg12: memref<4x8x8xf32, #tpu.memory_space<vmem>>, %arg13: memref<8x32xf32, #tpu.memory_space<vmem>>) attributes {dimension_semantics = [#tpu.dimension_semantics<parallel>, #tpu.dimension_semantics<parallel>, #tpu.dimension_semantics<arbitrary>], iteration_bounds = array<i64: 2, 1, 1>, scalar_prefetch = 0 : i64, scratch_operands = 4 : i64, tpu.core_type = #tpu.core_type<tc>, window_params = [{transform_indices = @transform_0, window_bounds = array<i64: 1, 8, 32>}, {transform_indices = @transform_1, window_bounds = array<i64: 1, 4, 8, 8>}, {transform_indices = @transform_2, window_bounds = array<i64: 1, 4, 8, 8>}, {transform_indices = @transform_3, window_bounds = array<i64: 1, 4, 8, 8>}, {pipeline_mode = #tpu.pipeline_mode<synchronous>, transform_indices = @transform_4, window_bounds = array<i64: 32, 32>}, {pipeline_mode = #tpu.pipeline_mode<synchronous>, transform_indices = @transform_5, window_bounds = array<i64: 1, 32>}, {transform_indices = @transform_6, window_bounds = array<i64: 1, 8, 32>}]} {
    %c0_i32 = arith.constant 0 : i32
    %0 = arith.cmpi eq, %arg2, %c0_i32 : i32
    %1 = arith.extui %0 : i1 to i32
    %c0_i32_0 = arith.constant 0 : i32
    %2 = arith.cmpi ne, %1, %c0_i32_0 : i32
    scf.if %2 {
      %cst = arith.constant -1.000000e+30 : f32
      %12 = vector.broadcast %cst : f32 to vector<4x8x1xf32>
      %c0 = arith.constant 0 : index
      %c0_5 = arith.constant 0 : index
      %c0_6 = arith.constant 0 : index
      %13 = vector.load %arg10[%c0, %c0_5, %c0_6] : memref<4x8x1xf32, #tpu.memory_space<vmem>>, vector<4x8x1xf32>
      tpu.vector_store %arg10[%c0, %c0_5, %c0_6], %12 {strides = array<i32>} : memref<4x8x1xf32, #tpu.memory_space<vmem>>, vector<4x8x1xf32>,
      %cst_7 = arith.constant 0.000000e+00 : f32
      %14 = vector.broadcast %cst_7 : f32 to vector<4x8x1xf32>
      %c0_8 = arith.constant 0 : index
      %c0_9 = arith.constant 0 : index
      %c0_10 = arith.constant 0 : index
      %15 = vector.load %arg11[%c0_8, %c0_9, %c0_10] : memref<4x8x1xf32, #tpu.memory_space<vmem>>, vector<4x8x1xf32>
      tpu.vector_store %arg11[%c0_8, %c0_9, %c0_10], %14 {strides = array<i32>} : memref<4x8x1xf32, #tpu.memory_space<vmem>>, vector<4x8x1xf32>,
      %cst_11 = arith.constant 0.000000e+00 : f32
      %16 = vector.broadcast %cst_11 : f32 to vector<4x8x8xf32>
      %c0_12 = arith.constant 0 : index
      %c0_13 = arith.constant 0 : index
      %c0_14 = arith.constant 0 : index
      %17 = vector.load %arg12[%c0_12, %c0_13, %c0_14] : memref<4x8x8xf32, #tpu.memory_space<vmem>>, vector<4x8x8xf32>
      tpu.vector_store %arg12[%c0_12, %c0_13, %c0_14], %16 {strides = array<i32>} : memref<4x8x8xf32, #tpu.memory_space<vmem>>, vector<4x8x8xf32>,
    } else {
    }
    %3 = arith.cmpi slt, %arg2, %arg1 : i32
    %4 = arith.extui %3 : i1 to i32
    %c0_i32_1 = arith.constant 0 : i32
    %5 = arith.cmpi ne, %4, %c0_i32_1 : i32
    scf.if %5 {
      %c0 = arith.constant 0 : index
      %c0_5 = arith.constant 0 : index
      %c0_6 = arith.constant 0 : index
      %c0_7 = arith.constant 0 : index
      %12 = vector.load %arg4[%c0, %c0_5, %c0_6, %c0_7] : memref<1x4x8x8xbf16, #tpu.memory_space<vmem>>, vector<1x4x8x8xbf16>
      %13 = vector.shape_cast %12 : vector<1x4x8x8xbf16> to vector<4x8x8xbf16>
      %c0_8 = arith.constant 0 : index
      %c0_9 = arith.constant 0 : index
      %c0_10 = arith.constant 0 : index
      %c0_11 = arith.constant 0 : index
      %14 = vector.load %arg5[%c0_8, %c0_9, %c0_10, %c0_11] : memref<1x4x8x8xbf16, #tpu.memory_space<vmem>>, vector<1x4x8x8xbf16>
      %15 = vector.shape_cast %14 : vector<1x4x8x8xbf16> to vector<4x8x8xbf16>
      %c0_12 = arith.constant 0 : index
      %c0_13 = arith.constant 0 : index
      %c0_14 = arith.constant 0 : index
      %c0_15 = arith.constant 0 : index
      %16 = vector.load %arg6[%c0_12, %c0_13, %c0_14, %c0_15] : memref<1x4x8x8xbf16, #tpu.memory_space<vmem>>, vector<1x4x8x8xbf16>
      %17 = vector.shape_cast %16 : vector<1x4x8x8xbf16> to vector<4x8x8xbf16>
      "tpu.trace_start"() <{level = 10 : i32, message = "hqd,hkd->hqk"}> : () -> ()
      %cst = arith.constant dense<0.000000e+00> : vector<4x8x8xf32>
      %18 = tpu.matmul %13, %15, %cst {dimension_numbers = #tpu.dot_dimension_numbers<[2], [2], [1], [1], [0, 0, 0, 1, 1, 1], [0], [0]>} : vector<4x8x8xbf16>, vector<4x8x8xbf16>, vector<4x8x8xf32> -> vector<4x8x8xf32>
      "tpu.trace_stop"() : () -> ()
      %c0_16 = arith.constant 0 : index
      %c0_17 = arith.constant 0 : index
      %c0_18 = arith.constant 0 : index
      %19 = vector.load %arg10[%c0_16, %c0_17, %c0_18] : memref<4x8x1xf32, #tpu.memory_space<vmem>>, vector<4x8x1xf32>
      %cst_19 = arith.constant dense<0xFF800000> : vector<4x8xf32>
      %20 = vector.multi_reduction <maximumf>, %18, %cst_19 [2] : vector<4x8x8xf32> to vector<4x8xf32>
      %21 = vector.shape_cast %20 : vector<4x8xf32> to vector<4x8x1xf32>
      %22 = arith.maximumf %19, %21 : vector<4x8x1xf32>
      %23 = arith.subf %19, %22 : vector<4x8x1xf32>
      %24 = math.exp %23 : vector<4x8x1xf32>
      %25 = vector.broadcast %22 : vector<4x8x1xf32> to vector<4x8x8xf32>
      %26 = arith.subf %18, %25 : vector<4x8x8xf32>
      %27 = math.exp %26 : vector<4x8x8xf32>
      %c0_20 = arith.constant 0 : index
      %c0_21 = arith.constant 0 : index
      %c0_22 = arith.constant 0 : index
      %28 = vector.load %arg11[%c0_20, %c0_21, %c0_22] : memref<4x8x1xf32, #tpu.memory_space<vmem>>, vector<4x8x1xf32>
      %29 = arith.mulf %24, %28 : vector<4x8x1xf32>
      %cst_23 = arith.constant dense<0.000000e+00> : vector<4x8xf32>
      %30 = vector.multi_reduction <add>, %27, %cst_23 [2] : vector<4x8x8xf32> to vector<4x8xf32>
      %31 = vector.shape_cast %30 : vector<4x8xf32> to vector<4x8x1xf32>
      %32 = arith.addf %29, %31 : vector<4x8x1xf32>
      %c0_24 = arith.constant 0 : index
      %c0_25 = arith.constant 0 : index
      %c0_26 = arith.constant 0 : index
      %33 = vector.load %arg11[%c0_24, %c0_25, %c0_26] : memref<4x8x1xf32, #tpu.memory_space<vmem>>, vector<4x8x1xf32>
      tpu.vector_store %arg11[%c0_24, %c0_25, %c0_26], %32 {strides = array<i32>} : memref<4x8x1xf32, #tpu.memory_space<vmem>>, vector<4x8x1xf32>,
      %c0_27 = arith.constant 0 : index
      %c0_28 = arith.constant 0 : index
      %c0_29 = arith.constant 0 : index
      %34 = vector.load %arg12[%c0_27, %c0_28, %c0_29] : memref<4x8x8xf32, #tpu.memory_space<vmem>>, vector<4x8x8xf32>
      %35 = vector.broadcast %24 : vector<4x8x1xf32> to vector<4x8x8xf32>
      %36 = arith.mulf %35, %34 : vector<4x8x8xf32>
      %37 = arith.truncf %27 : vector<4x8x8xf32> to vector<4x8x8xbf16>
      "tpu.trace_start"() <{level = 10 : i32, message = "hqk,hkd->hqd"}> : () -> ()
      %cst_30 = arith.constant dense<0.000000e+00> : vector<4x8x8xf32>
      %38 = tpu.matmul %37, %17, %cst_30 {dimension_numbers = #tpu.dot_dimension_numbers<[2], [1], [1], [2], [0, 0, 0, 1, 1, 2], [0], [0]>} : vector<4x8x8xbf16>, vector<4x8x8xbf16>, vector<4x8x8xf32> -> vector<4x8x8xf32>
      "tpu.trace_stop"() : () -> ()
      %39 = arith.addf %36, %38 : vector<4x8x8xf32>
      %c0_31 = arith.constant 0 : index
      %c0_32 = arith.constant 0 : index
      %c0_33 = arith.constant 0 : index
      %40 = vector.load %arg12[%c0_31, %c0_32, %c0_33] : memref<4x8x8xf32, #tpu.memory_space<vmem>>, vector<4x8x8xf32>
      tpu.vector_store %arg12[%c0_31, %c0_32, %c0_33], %39 {strides = array<i32>} : memref<4x8x8xf32, #tpu.memory_space<vmem>>, vector<4x8x8xf32>,
      %c0_34 = arith.constant 0 : index
      %c0_35 = arith.constant 0 : index
      %c0_36 = arith.constant 0 : index
      %41 = vector.load %arg10[%c0_34, %c0_35, %c0_36] : memref<4x8x1xf32, #tpu.memory_space<vmem>>, vector<4x8x1xf32>
      tpu.vector_store %arg10[%c0_34, %c0_35, %c0_36], %22 {strides = array<i32>} : memref<4x8x1xf32, #tpu.memory_space<vmem>>, vector<4x8x1xf32>,
    } else {
    }
    %6 = arith.cmpi eq, %arg2, %arg1 : i32
    %7 = arith.extui %6 : i1 to i32
    %c0_i32_2 = arith.constant 0 : i32
    %8 = arith.cmpi ne, %7, %c0_i32_2 : i32
    scf.if %8 {
      %c0 = arith.constant 0 : index
      %c0_5 = arith.constant 0 : index
      %c0_6 = arith.constant 0 : index
      %c0_7 = arith.constant 0 : index
      %12 = vector.load %arg4[%c0, %c0_5, %c0_6, %c0_7] : memref<1x4x8x8xbf16, #tpu.memory_space<vmem>>, vector<1x4x8x8xbf16>
      %13 = vector.shape_cast %12 : vector<1x4x8x8xbf16> to vector<4x8x8xbf16>
      %c0_8 = arith.constant 0 : index
      %c0_9 = arith.constant 0 : index
      %c0_10 = arith.constant 0 : index
      %c0_11 = arith.constant 0 : index
      %14 = vector.load %arg5[%c0_8, %c0_9, %c0_10, %c0_11] : memref<1x4x8x8xbf16, #tpu.memory_space<vmem>>, vector<1x4x8x8xbf16>
      %15 = vector.shape_cast %14 : vector<1x4x8x8xbf16> to vector<4x8x8xbf16>
      %c0_12 = arith.constant 0 : index
      %c0_13 = arith.constant 0 : index
      %c0_14 = arith.constant 0 : index
      %c0_15 = arith.constant 0 : index
      %16 = vector.load %arg6[%c0_12, %c0_13, %c0_14, %c0_15] : memref<1x4x8x8xbf16, #tpu.memory_space<vmem>>, vector<1x4x8x8xbf16>
      %17 = vector.shape_cast %16 : vector<1x4x8x8xbf16> to vector<4x8x8xbf16>
      "tpu.trace_start"() <{level = 10 : i32, message = "hqd,hkd->hqk"}> : () -> ()
      %cst = arith.constant dense<0.000000e+00> : vector<4x8x8xf32>
      %18 = tpu.matmul %13, %15, %cst {dimension_numbers = #tpu.dot_dimension_numbers<[2], [2], [1], [1], [0, 0, 0, 1, 1, 1], [0], [0]>} : vector<4x8x8xbf16>, vector<4x8x8xbf16>, vector<4x8x8xf32> -> vector<4x8x8xf32>
      "tpu.trace_stop"() : () -> ()
      %19 = tpu.iota {dimensions = array<i32: 1>} : vector<4x8x8xi32>
      %20 = tpu.iota {dimensions = array<i32: 2>} : vector<4x8x8xi32>
      %21 = arith.cmpi sle, %20, %19 : vector<4x8x8xi32>
      %cst_16 = arith.constant -1.000000e+30 : f32
      %22 = vector.broadcast %cst_16 : f32 to vector<4x8x8xf32>
      %23 = arith.select %21, %18, %22 : vector<4x8x8xi1>, vector<4x8x8xf32>
      %c0_17 = arith.constant 0 : index
      %c0_18 = arith.constant 0 : index
      %c0_19 = arith.constant 0 : index
      %24 = vector.load %arg10[%c0_17, %c0_18, %c0_19] : memref<4x8x1xf32, #tpu.memory_space<vmem>>, vector<4x8x1xf32>
      %cst_20 = arith.constant dense<0xFF800000> : vector<4x8xf32>
      %25 = vector.multi_reduction <maximumf>, %23, %cst_20 [2] : vector<4x8x8xf32> to vector<4x8xf32>
      %26 = vector.shape_cast %25 : vector<4x8xf32> to vector<4x8x1xf32>
      %27 = arith.maximumf %24, %26 : vector<4x8x1xf32>
      %28 = arith.subf %24, %27 : vector<4x8x1xf32>
      %29 = math.exp %28 : vector<4x8x1xf32>
      %30 = vector.broadcast %27 : vector<4x8x1xf32> to vector<4x8x8xf32>
      %31 = arith.subf %23, %30 : vector<4x8x8xf32>
      %32 = math.exp %31 : vector<4x8x8xf32>
      %c0_21 = arith.constant 0 : index
      %c0_22 = arith.constant 0 : index
      %c0_23 = arith.constant 0 : index
      %33 = vector.load %arg11[%c0_21, %c0_22, %c0_23] : memref<4x8x1xf32, #tpu.memory_space<vmem>>, vector<4x8x1xf32>
      %34 = arith.mulf %29, %33 : vector<4x8x1xf32>
      %cst_24 = arith.constant dense<0.000000e+00> : vector<4x8xf32>
      %35 = vector.multi_reduction <add>, %32, %cst_24 [2] : vector<4x8x8xf32> to vector<4x8xf32>
      %36 = vector.shape_cast %35 : vector<4x8xf32> to vector<4x8x1xf32>
      %37 = arith.addf %34, %36 : vector<4x8x1xf32>
      %c0_25 = arith.constant 0 : index
      %c0_26 = arith.constant 0 : index
      %c0_27 = arith.constant 0 : index
      %38 = vector.load %arg11[%c0_25, %c0_26, %c0_27] : memref<4x8x1xf32, #tpu.memory_space<vmem>>, vector<4x8x1xf32>
      tpu.vector_store %arg11[%c0_25, %c0_26, %c0_27], %37 {strides = array<i32>} : memref<4x8x1xf32, #tpu.memory_space<vmem>>, vector<4x8x1xf32>,
      %c0_28 = arith.constant 0 : index
      %c0_29 = arith.constant 0 : index
      %c0_30 = arith.constant 0 : index
      %39 = vector.load %arg12[%c0_28, %c0_29, %c0_30] : memref<4x8x8xf32, #tpu.memory_space<vmem>>, vector<4x8x8xf32>
      %40 = vector.broadcast %29 : vector<4x8x1xf32> to vector<4x8x8xf32>
      %41 = arith.mulf %40, %39 : vector<4x8x8xf32>
      %42 = arith.truncf %32 : vector<4x8x8xf32> to vector<4x8x8xbf16>
      "tpu.trace_start"() <{level = 10 : i32, message = "hqk,hkd->hqd"}> : () -> ()
      %cst_31 = arith.constant dense<0.000000e+00> : vector<4x8x8xf32>
      %43 = tpu.matmul %42, %17, %cst_31 {dimension_numbers = #tpu.dot_dimension_numbers<[2], [1], [1], [2], [0, 0, 0, 1, 1, 2], [0], [0]>} : vector<4x8x8xbf16>, vector<4x8x8xbf16>, vector<4x8x8xf32> -> vector<4x8x8xf32>
      "tpu.trace_stop"() : () -> ()
      %44 = arith.addf %41, %43 : vector<4x8x8xf32>
      %c0_32 = arith.constant 0 : index
      %c0_33 = arith.constant 0 : index
      %c0_34 = arith.constant 0 : index
      %45 = vector.load %arg12[%c0_32, %c0_33, %c0_34] : memref<4x8x8xf32, #tpu.memory_space<vmem>>, vector<4x8x8xf32>
      tpu.vector_store %arg12[%c0_32, %c0_33, %c0_34], %44 {strides = array<i32>} : memref<4x8x8xf32, #tpu.memory_space<vmem>>, vector<4x8x8xf32>,
      %c0_35 = arith.constant 0 : index
      %c0_36 = arith.constant 0 : index
      %c0_37 = arith.constant 0 : index
      %46 = vector.load %arg10[%c0_35, %c0_36, %c0_37] : memref<4x8x1xf32, #tpu.memory_space<vmem>>, vector<4x8x1xf32>
      tpu.vector_store %arg10[%c0_35, %c0_36, %c0_37], %27 {strides = array<i32>} : memref<4x8x1xf32, #tpu.memory_space<vmem>>, vector<4x8x1xf32>,
    } else {
    }
    %c0_i32_3 = arith.constant 0 : i32
    %9 = arith.cmpi eq, %arg2, %c0_i32_3 : i32
    %10 = arith.extui %9 : i1 to i32
    %c0_i32_4 = arith.constant 0 : i32
    %11 = arith.cmpi ne, %10, %c0_i32_4 : i32
    scf.if %11 {
      %c0 = arith.constant 0 : index
      %c0_5 = arith.constant 0 : index
      %c0_6 = arith.constant 0 : index
      %12 = vector.load %arg11[%c0, %c0_5, %c0_6] : memref<4x8x1xf32, #tpu.memory_space<vmem>>, vector<4x8x1xf32>
      %13 = tpu.reciprocal %12 {approx = true} : vector<4x8x1xf32> -> vector<4x8x1xf32>
      %c0_7 = arith.constant 0 : index
      %c0_8 = arith.constant 0 : index
      %c0_9 = arith.constant 0 : index
      %14 = vector.load %arg12[%c0_7, %c0_8, %c0_9] : memref<4x8x8xf32, #tpu.memory_space<vmem>>, vector<4x8x8xf32>
      %15 = vector.broadcast %13 : vector<4x8x1xf32> to vector<4x8x8xf32>
      %16 = arith.mulf %14, %15 : vector<4x8x8xf32>
      %17 = vector.extract_strided_slice %16 {offsets = [0, 0, 0], sizes = [1, 8, 8], strides = [1, 1, 1]} : vector<4x8x8xf32> to vector<1x8x8xf32>
      %18 = vector.shape_cast %17 : vector<1x8x8xf32> to vector<8x8xf32>
      %c0_10 = arith.constant 0 : index
      %c0_11 = arith.constant 0 : index
      %19 = vector.load %arg13[%c0_10, %c0_11] : memref<8x32xf32, #tpu.memory_space<vmem>>, vector<8x8xf32>
      tpu.vector_store %arg13[%c0_10, %c0_11], %18 {strides = array<i32>} : memref<8x32xf32, #tpu.memory_space<vmem>>, vector<8x8xf32>,
      %20 = vector.extract_strided_slice %16 {offsets = [1, 0, 0], sizes = [1, 8, 8], strides = [1, 1, 1]} : vector<4x8x8xf32> to vector<1x8x8xf32>
      %21 = vector.shape_cast %20 : vector<1x8x8xf32> to vector<8x8xf32>
      %c0_12 = arith.constant 0 : index
      %c8 = arith.constant 8 : index
      %22 = vector.load %arg13[%c0_12, %c8] : memref<8x32xf32, #tpu.memory_space<vmem>>, vector<8x8xf32>
      tpu.vector_store %arg13[%c0_12, %c8], %21 {strides = array<i32>} : memref<8x32xf32, #tpu.memory_space<vmem>>, vector<8x8xf32>,
      %23 = vector.extract_strided_slice %16 {offsets = [2, 0, 0], sizes = [1, 8, 8], strides = [1, 1, 1]} : vector<4x8x8xf32> to vector<1x8x8xf32>
      %24 = vector.shape_cast %23 : vector<1x8x8xf32> to vector<8x8xf32>
      %c0_13 = arith.constant 0 : index
      %c16 = arith.constant 16 : index
      %25 = vector.load %arg13[%c0_13, %c16] : memref<8x32xf32, #tpu.memory_space<vmem>>, vector<8x8xf32>
      tpu.vector_store %arg13[%c0_13, %c16], %24 {strides = array<i32>} : memref<8x32xf32, #tpu.memory_space<vmem>>, vector<8x8xf32>,
      %26 = vector.extract_strided_slice %16 {offsets = [3, 0, 0], sizes = [1, 8, 8], strides = [1, 1, 1]} : vector<4x8x8xf32> to vector<1x8x8xf32>
      %27 = vector.shape_cast %26 : vector<1x8x8xf32> to vector<8x8xf32>
      %c0_14 = arith.constant 0 : index
      %c24 = arith.constant 24 : index
      %28 = vector.load %arg13[%c0_14, %c24] : memref<8x32xf32, #tpu.memory_space<vmem>>, vector<8x8xf32>
      tpu.vector_store %arg13[%c0_14, %c24], %27 {strides = array<i32>} : memref<8x32xf32, #tpu.memory_space<vmem>>, vector<8x8xf32>,
      %c0_15 = arith.constant 0 : index
      %c0_16 = arith.constant 0 : index
      %29 = vector.load %arg13[%c0_15, %c0_16] : memref<8x32xf32, #tpu.memory_space<vmem>>, vector<8x32xf32>
      %30 = arith.truncf %29 : vector<8x32xf32> to vector<8x32xbf16>
      %c0_17 = arith.constant 0 : index
      %c0_18 = arith.constant 0 : index
      %31 = vector.load %arg7[%c0_17, %c0_18] : memref<32x32xbf16, #tpu.memory_space<vmem>>, vector<32x32xbf16>
      %cst = arith.constant dense<0.000000e+00> : vector<8x32xf32>
      %32 = tpu.matmul %30, %31, %cst {dimension_numbers = #tpu.dot_dimension_numbers<[1], [0], [0], [1], [0, 0, 1, 1], [], []>} : vector<8x32xbf16>, vector<32x32xbf16>, vector<8x32xf32> -> vector<8x32xf32>
      %c0_19 = arith.constant 0 : index
      %c0_20 = arith.constant 0 : index
      %33 = vector.load %arg8[%c0_19, %c0_20] : memref<1x32xf32, #tpu.memory_space<vmem>>, vector<1x32xf32>
      %34 = vector.broadcast %33 : vector<1x32xf32> to vector<8x32xf32>
      %35 = arith.addf %32, %34 : vector<8x32xf32>
      %c0_21 = arith.constant 0 : index
      %c0_22 = arith.constant 0 : index
      %c0_23 = arith.constant 0 : index
      %36 = vector.load %arg3[%c0_21, %c0_22, %c0_23] : memref<1x8x32xbf16, #tpu.memory_space<vmem>>, vector<1x8x32xbf16>
      %37 = vector.shape_cast %36 : vector<1x8x32xbf16> to vector<8x32xbf16>
      %38 = arith.extf %37 : vector<8x32xbf16> to vector<8x32xf32>
      %39 = arith.addf %38, %35 : vector<8x32xf32>
      %40 = arith.truncf %39 : vector<8x32xf32> to vector<8x32xbf16>
      %c0_24 = arith.constant 0 : index
      %c0_25 = arith.constant 0 : index
      %c0_26 = arith.constant 0 : index
      %41 = vector.load %arg9[%c0_24, %c0_25, %c0_26] : memref<1x8x32xbf16, #tpu.memory_space<vmem>>, vector<1x8x32xbf16>
      %42 = vector.shape_cast %41 : vector<1x8x32xbf16> to vector<8x32xbf16>
      %43 = vector.shape_cast %40 : vector<8x32xbf16> to vector<1x8x32xbf16>
      tpu.vector_store %arg9[%c0_24, %c0_25, %c0_26], %43 {strides = array<i32>} : memref<1x8x32xbf16, #tpu.memory_space<vmem>>, vector<1x8x32xbf16>,
    } else {
    }
    return
  }
  func.func @transform_0(%arg0: i32, %arg1: i32, %arg2: i32) -> (i32, i32, i32) {
    %c0_i32 = arith.constant 0 : i32
    %c0_i32_0 = arith.constant 0 : i32
    return %arg0, %arg1, %c0_i32 : i32, i32, i32
  }
  func.func @transform_1(%arg0: i32, %arg1: i32, %arg2: i32) -> (i32, i32, i32, i32) {
    %c0_i32 = arith.constant 0 : i32
    %c0_i32_0 = arith.constant 0 : i32
    %c0_i32_1 = arith.constant 0 : i32
    return %arg0, %c0_i32, %arg1, %c0_i32_0 : i32, i32, i32, i32
  }
  func.func @transform_2(%arg0: i32, %arg1: i32, %arg2: i32) -> (i32, i32, i32, i32) {
    %0 = arith.minsi %arg2, %arg1 : i32
    %c0_i32 = arith.constant 0 : i32
    %c0_i32_0 = arith.constant 0 : i32
    %c0_i32_1 = arith.constant 0 : i32
    return %arg0, %c0_i32, %0, %c0_i32_0 : i32, i32, i32, i32
  }
  func.func @transform_3(%arg0: i32, %arg1: i32, %arg2: i32) -> (i32, i32, i32, i32) {
    %0 = arith.minsi %arg2, %arg1 : i32
    %c0_i32 = arith.constant 0 : i32
    %c0_i32_0 = arith.constant 0 : i32
    %c0_i32_1 = arith.constant 0 : i32
    return %arg0, %c0_i32, %0, %c0_i32_0 : i32, i32, i32, i32
  }
  func.func @transform_4(%arg0: i32, %arg1: i32, %arg2: i32) -> (i32, i32) {
    %c0_i32 = arith.constant 0 : i32
    %c0_i32_0 = arith.constant 0 : i32
    %c0_i32_1 = arith.constant 0 : i32
    return %c0_i32, %c0_i32_0 : i32, i32
  }
  func.func @transform_5(%arg0: i32, %arg1: i32, %arg2: i32) -> (i32, i32) {
    %c0_i32 = arith.constant 0 : i32
    %c0_i32_0 = arith.constant 0 : i32
    %c0_i32_1 = arith.constant 0 : i32
    return %c0_i32, %c0_i32_0 : i32, i32
  }
  func.func @transform_6(%arg0: i32, %arg1: i32, %arg2: i32) -> (i32, i32, i32) {
    %c0_i32 = arith.constant 0 : i32
    %c0_i32_0 = arith.constant 0 : i32
    return %arg0, %arg1, %c0_i32 : i32, i32, i32
  }
}

module attributes {stable_mosaic.version = 11 : i64} {
  func.func @ffn_kernel(%arg0: i32, %arg1: i32, %arg2: i32, %arg3: memref<1x8x32xbf16, #tpu.memory_space<vmem>>, %arg4: memref<1x32xf32, #tpu.memory_space<vmem>>, %arg5: memref<1x32xf32, #tpu.memory_space<vmem>>, %arg6: memref<32x128xbf16, #tpu.memory_space<vmem>>, %arg7: memref<1x128xf32, #tpu.memory_space<vmem>>, %arg8: memref<128x32xbf16, #tpu.memory_space<vmem>>, %arg9: memref<1x32xf32, #tpu.memory_space<vmem>>, %arg10: memref<1x8x32xbf16, #tpu.memory_space<vmem>>, %arg11: memref<8x32xf32, #tpu.memory_space<vmem>>) attributes {dimension_semantics = [#tpu.dimension_semantics<parallel>, #tpu.dimension_semantics<parallel>, #tpu.dimension_semantics<arbitrary>], iteration_bounds = array<i64: 2, 1, 1>, scalar_prefetch = 0 : i64, scratch_operands = 1 : i64, tpu.core_type = #tpu.core_type<tc>, window_params = [{transform_indices = @transform_0, window_bounds = array<i64: 1, 8, 32>}, {pipeline_mode = #tpu.pipeline_mode<synchronous>, transform_indices = @transform_1, window_bounds = array<i64: 1, 32>}, {pipeline_mode = #tpu.pipeline_mode<synchronous>, transform_indices = @transform_2, window_bounds = array<i64: 1, 32>}, {transform_indices = @transform_3, window_bounds = array<i64: 32, 128>}, {transform_indices = @transform_4, window_bounds = array<i64: 1, 128>}, {transform_indices = @transform_5, window_bounds = array<i64: 128, 32>}, {pipeline_mode = #tpu.pipeline_mode<synchronous>, transform_indices = @transform_6, window_bounds = array<i64: 1, 32>}, {transform_indices = @transform_7, window_bounds = array<i64: 1, 8, 32>}]} {
    %c0 = arith.constant 0 : index
    %c0_0 = arith.constant 0 : index
    %c0_1 = arith.constant 0 : index
    %0 = vector.load %arg3[%c0, %c0_0, %c0_1] : memref<1x8x32xbf16, #tpu.memory_space<vmem>>, vector<1x8x32xbf16>
    %1 = vector.shape_cast %0 : vector<1x8x32xbf16> to vector<8x32xbf16>
    %2 = arith.extf %1 : vector<8x32xbf16> to vector<8x32xf32>
    %c0_2 = arith.constant 0 : index
    %c0_3 = arith.constant 0 : index
    %3 = vector.load %arg4[%c0_2, %c0_3] : memref<1x32xf32, #tpu.memory_space<vmem>>, vector<1x32xf32>
    %c0_4 = arith.constant 0 : index
    %c0_5 = arith.constant 0 : index
    %4 = vector.load %arg5[%c0_4, %c0_5] : memref<1x32xf32, #tpu.memory_space<vmem>>, vector<1x32xf32>
    %cst = arith.constant dense<0.000000e+00> : vector<8xf32>
    %5 = vector.multi_reduction <add>, %2, %cst [1] : vector<8x32xf32> to vector<8xf32>
    %6 = vector.shape_cast %5 : vector<8xf32> to vector<8x1xf32>
    %cst_6 = arith.constant 3.200000e+01 : f32
    %7 = vector.broadcast %cst_6 : f32 to vector<8x1xf32>
    %8 = arith.divf %6, %7 : vector<8x1xf32>
    %9 = vector.broadcast %8 : vector<8x1xf32> to vector<8x32xf32>
    %10 = arith.subf %2, %9 : vector<8x32xf32>
    %11 = arith.mulf %10, %10 : vector<8x32xf32>
    %cst_7 = arith.constant dense<0.000000e+00> : vector<8xf32>
    %12 = vector.multi_reduction <add>, %11, %cst_7 [1] : vector<8x32xf32> to vector<8xf32>
    %13 = vector.shape_cast %12 : vector<8xf32> to vector<8x1xf32>
    %cst_8 = arith.constant 3.200000e+01 : f32
    %14 = vector.broadcast %cst_8 : f32 to vector<8x1xf32>
    %15 = arith.divf %13, %14 : vector<8x1xf32>
    %16 = vector.broadcast %8 : vector<8x1xf32> to vector<8x32xf32>
    %17 = arith.subf %2, %16 : vector<8x32xf32>
    %cst_9 = arith.constant 9.99999974E-6 : f32
    %18 = vector.broadcast %cst_9 : f32 to vector<8x1xf32>
    %19 = arith.addf %15, %18 : vector<8x1xf32>
    %20 = math.rsqrt %19 : vector<8x1xf32>
    %21 = vector.broadcast %20 : vector<8x1xf32> to vector<8x32xf32>
    %22 = arith.mulf %17, %21 : vector<8x32xf32>
    %23 = vector.broadcast %3 : vector<1x32xf32> to vector<8x32xf32>
    %24 = arith.mulf %23, %22 : vector<8x32xf32>
    %25 = vector.broadcast %4 : vector<1x32xf32> to vector<8x32xf32>
    %26 = arith.addf %24, %25 : vector<8x32xf32>
    %27 = arith.truncf %26 : vector<8x32xf32> to vector<8x32xbf16>
    %c0_10 = arith.constant 0 : index
    %c0_11 = arith.constant 0 : index
    %28 = vector.load %arg6[%c0_10, %c0_11] : memref<32x128xbf16, #tpu.memory_space<vmem>>, vector<32x128xbf16>
    %cst_12 = arith.constant dense<0.000000e+00> : vector<8x128xf32>
    %29 = tpu.matmul %27, %28, %cst_12 {dimension_numbers = #tpu.dot_dimension_numbers<[1], [0], [0], [1], [0, 0, 1, 1], [], []>} : vector<8x32xbf16>, vector<32x128xbf16>, vector<8x128xf32> -> vector<8x128xf32>
    %c0_13 = arith.constant 0 : index
    %c0_14 = arith.constant 0 : index
    %30 = vector.load %arg7[%c0_13, %c0_14] : memref<1x128xf32, #tpu.memory_space<vmem>>, vector<1x128xf32>
    %31 = vector.broadcast %30 : vector<1x128xf32> to vector<8x128xf32>
    %32 = arith.addf %29, %31 : vector<8x128xf32>
    %cst_15 = arith.constant 5.000000e-01 : f32
    %33 = vector.broadcast %cst_15 : f32 to vector<8x128xf32>
    %34 = arith.mulf %33, %32 : vector<8x128xf32>
    %cst_16 = arith.constant 4.471500e-02 : f32
    %35 = vector.broadcast %cst_16 : f32 to vector<8x128xf32>
    %36 = arith.mulf %35, %32 : vector<8x128xf32>
    %37 = arith.mulf %36, %32 : vector<8x128xf32>
    %38 = arith.mulf %37, %32 : vector<8x128xf32>
    %39 = arith.addf %32, %38 : vector<8x128xf32>
    %cst_17 = arith.constant 0.797884583 : f32
    %40 = vector.broadcast %cst_17 : f32 to vector<8x128xf32>
    %41 = arith.mulf %40, %39 : vector<8x128xf32>
    %42 = math.tanh %41 : vector<8x128xf32>
    %cst_18 = arith.constant 1.000000e+00 : f32
    %43 = vector.broadcast %cst_18 : f32 to vector<8x128xf32>
    %44 = arith.addf %43, %42 : vector<8x128xf32>
    %45 = arith.mulf %34, %44 : vector<8x128xf32>
    %46 = arith.truncf %45 : vector<8x128xf32> to vector<8x128xbf16>
    %c0_19 = arith.constant 0 : index
    %c0_20 = arith.constant 0 : index
    %47 = vector.load %arg8[%c0_19, %c0_20] : memref<128x32xbf16, #tpu.memory_space<vmem>>, vector<128x32xbf16>
    %cst_21 = arith.constant dense<0.000000e+00> : vector<8x32xf32>
    %48 = tpu.matmul %46, %47, %cst_21 {dimension_numbers = #tpu.dot_dimension_numbers<[1], [0], [0], [1], [0, 0, 1, 1], [], []>} : vector<8x128xbf16>, vector<128x32xbf16>, vector<8x32xf32> -> vector<8x32xf32>
    %c0_i32 = arith.constant 0 : i32
    %49 = arith.cmpi eq, %arg2, %c0_i32 : i32
    %50 = arith.extui %49 : i1 to i32
    %c0_i32_22 = arith.constant 0 : i32
    %51 = arith.cmpi ne, %50, %c0_i32_22 : i32
    scf.if %51 {
      %cst_29 = arith.constant 0.000000e+00 : f32
      %58 = vector.broadcast %cst_29 : f32 to vector<8x32xf32>
      %c0_30 = arith.constant 0 : index
      %c0_31 = arith.constant 0 : index
      %59 = vector.load %arg11[%c0_30, %c0_31] : memref<8x32xf32, #tpu.memory_space<vmem>>, vector<8x32xf32>
      tpu.vector_store %arg11[%c0_30, %c0_31], %58 {strides = array<i32>} : memref<8x32xf32, #tpu.memory_space<vmem>>, vector<8x32xf32>,
    } else {
    }
    %c0_23 = arith.constant 0 : index
    %c0_24 = arith.constant 0 : index
    %52 = vector.load %arg11[%c0_23, %c0_24] : memref<8x32xf32, #tpu.memory_space<vmem>>, vector<8x32xf32>
    %53 = arith.addf %52, %48 : vector<8x32xf32>
    %c0_25 = arith.constant 0 : index
    %c0_26 = arith.constant 0 : index
    %54 = vector.load %arg11[%c0_25, %c0_26] : memref<8x32xf32, #tpu.memory_space<vmem>>, vector<8x32xf32>
    tpu.vector_store %arg11[%c0_25, %c0_26], %53 {strides = array<i32>} : memref<8x32xf32, #tpu.memory_space<vmem>>, vector<8x32xf32>,
    %c0_i32_27 = arith.constant 0 : i32
    %55 = arith.cmpi eq, %arg2, %c0_i32_27 : i32
    %56 = arith.extui %55 : i1 to i32
    %c0_i32_28 = arith.constant 0 : i32
    %57 = arith.cmpi ne, %56, %c0_i32_28 : i32
    scf.if %57 {
      %c0_29 = arith.constant 0 : index
      %c0_30 = arith.constant 0 : index
      %58 = vector.load %arg11[%c0_29, %c0_30] : memref<8x32xf32, #tpu.memory_space<vmem>>, vector<8x32xf32>
      %59 = arith.addf %2, %58 : vector<8x32xf32>
      %c0_31 = arith.constant 0 : index
      %c0_32 = arith.constant 0 : index
      %60 = vector.load %arg9[%c0_31, %c0_32] : memref<1x32xf32, #tpu.memory_space<vmem>>, vector<1x32xf32>
      %61 = vector.broadcast %60 : vector<1x32xf32> to vector<8x32xf32>
      %62 = arith.addf %59, %61 : vector<8x32xf32>
      %63 = arith.truncf %62 : vector<8x32xf32> to vector<8x32xbf16>
      %c0_33 = arith.constant 0 : index
      %c0_34 = arith.constant 0 : index
      %c0_35 = arith.constant 0 : index
      %64 = vector.load %arg10[%c0_33, %c0_34, %c0_35] : memref<1x8x32xbf16, #tpu.memory_space<vmem>>, vector<1x8x32xbf16>
      %65 = vector.shape_cast %64 : vector<1x8x32xbf16> to vector<8x32xbf16>
      %66 = vector.shape_cast %63 : vector<8x32xbf16> to vector<1x8x32xbf16>
      tpu.vector_store %arg10[%c0_33, %c0_34, %c0_35], %66 {strides = array<i32>} : memref<1x8x32xbf16, #tpu.memory_space<vmem>>, vector<1x8x32xbf16>,
    } else {
    }
    return
  }
  func.func @transform_0(%arg0: i32, %arg1: i32, %arg2: i32) -> (i32, i32, i32) {
    %c0_i32 = arith.constant 0 : i32
    %c0_i32_0 = arith.constant 0 : i32
    return %arg0, %arg1, %c0_i32 : i32, i32, i32
  }
  func.func @transform_1(%arg0: i32, %arg1: i32, %arg2: i32) -> (i32, i32) {
    %c0_i32 = arith.constant 0 : i32
    %c0_i32_0 = arith.constant 0 : i32
    %c0_i32_1 = arith.constant 0 : i32
    return %c0_i32, %c0_i32_0 : i32, i32
  }
  func.func @transform_2(%arg0: i32, %arg1: i32, %arg2: i32) -> (i32, i32) {
    %c0_i32 = arith.constant 0 : i32
    %c0_i32_0 = arith.constant 0 : i32
    %c0_i32_1 = arith.constant 0 : i32
    return %c0_i32, %c0_i32_0 : i32, i32
  }
  func.func @transform_3(%arg0: i32, %arg1: i32, %arg2: i32) -> (i32, i32) {
    %c0_i32 = arith.constant 0 : i32
    %c0_i32_0 = arith.constant 0 : i32
    return %c0_i32, %arg2 : i32, i32
  }
  func.func @transform_4(%arg0: i32, %arg1: i32, %arg2: i32) -> (i32, i32) {
    %c0_i32 = arith.constant 0 : i32
    %c0_i32_0 = arith.constant 0 : i32
    return %c0_i32, %arg2 : i32, i32
  }
  func.func @transform_5(%arg0: i32, %arg1: i32, %arg2: i32) -> (i32, i32) {
    %c0_i32 = arith.constant 0 : i32
    %c0_i32_0 = arith.constant 0 : i32
    return %arg2, %c0_i32 : i32, i32
  }
  func.func @transform_6(%arg0: i32, %arg1: i32, %arg2: i32) -> (i32, i32) {
    %c0_i32 = arith.constant 0 : i32
    %c0_i32_0 = arith.constant 0 : i32
    %c0_i32_1 = arith.constant 0 : i32
    return %c0_i32, %c0_i32_0 : i32, i32
  }
  func.func @transform_7(%arg0: i32, %arg1: i32, %arg2: i32) -> (i32, i32, i32) {
    %c0_i32 = arith.constant 0 : i32
    %c0_i32_0 = arith.constant 0 : i32
    return %arg0, %arg1, %c0_i32 : i32, i32, i32
  }
}

module attributes {stable_mosaic.version = 11 : i64} {
  func.func @head_kernel(%arg0: i32, %arg1: i32, %arg2: i32, %arg3: memref<1x8x32xbf16, #tpu.memory_space<vmem>>, %arg4: memref<1x32xf32, #tpu.memory_space<vmem>>, %arg5: memref<1x32xf32, #tpu.memory_space<vmem>>, %arg6: memref<32x128xbf16, #tpu.memory_space<vmem>>, %arg7: memref<1x8x128xf32, #tpu.memory_space<vmem>>) attributes {dimension_semantics = [#tpu.dimension_semantics<parallel>, #tpu.dimension_semantics<parallel>, #tpu.dimension_semantics<parallel>], iteration_bounds = array<i64: 1, 2, 1>, scalar_prefetch = 0 : i64, scratch_operands = 0 : i64, tpu.core_type = #tpu.core_type<tc>, window_params = [{transform_indices = @transform_0, window_bounds = array<i64: 1, 8, 32>}, {pipeline_mode = #tpu.pipeline_mode<synchronous>, transform_indices = @transform_1, window_bounds = array<i64: 1, 32>}, {pipeline_mode = #tpu.pipeline_mode<synchronous>, transform_indices = @transform_2, window_bounds = array<i64: 1, 32>}, {transform_indices = @transform_3, window_bounds = array<i64: 32, 128>}, {transform_indices = @transform_4, window_bounds = array<i64: 1, 8, 128>}]} {
    %c0 = arith.constant 0 : index
    %c0_0 = arith.constant 0 : index
    %c0_1 = arith.constant 0 : index
    %0 = vector.load %arg3[%c0, %c0_0, %c0_1] : memref<1x8x32xbf16, #tpu.memory_space<vmem>>, vector<1x8x32xbf16>
    %1 = vector.shape_cast %0 : vector<1x8x32xbf16> to vector<8x32xbf16>
    %2 = arith.extf %1 : vector<8x32xbf16> to vector<8x32xf32>
    %c0_2 = arith.constant 0 : index
    %c0_3 = arith.constant 0 : index
    %3 = vector.load %arg4[%c0_2, %c0_3] : memref<1x32xf32, #tpu.memory_space<vmem>>, vector<1x32xf32>
    %c0_4 = arith.constant 0 : index
    %c0_5 = arith.constant 0 : index
    %4 = vector.load %arg5[%c0_4, %c0_5] : memref<1x32xf32, #tpu.memory_space<vmem>>, vector<1x32xf32>
    %cst = arith.constant dense<0.000000e+00> : vector<8xf32>
    %5 = vector.multi_reduction <add>, %2, %cst [1] : vector<8x32xf32> to vector<8xf32>
    %6 = vector.shape_cast %5 : vector<8xf32> to vector<8x1xf32>
    %cst_6 = arith.constant 3.200000e+01 : f32
    %7 = vector.broadcast %cst_6 : f32 to vector<8x1xf32>
    %8 = arith.divf %6, %7 : vector<8x1xf32>
    %9 = vector.broadcast %8 : vector<8x1xf32> to vector<8x32xf32>
    %10 = arith.subf %2, %9 : vector<8x32xf32>
    %11 = arith.mulf %10, %10 : vector<8x32xf32>
    %cst_7 = arith.constant dense<0.000000e+00> : vector<8xf32>
    %12 = vector.multi_reduction <add>, %11, %cst_7 [1] : vector<8x32xf32> to vector<8xf32>
    %13 = vector.shape_cast %12 : vector<8xf32> to vector<8x1xf32>
    %cst_8 = arith.constant 3.200000e+01 : f32
    %14 = vector.broadcast %cst_8 : f32 to vector<8x1xf32>
    %15 = arith.divf %13, %14 : vector<8x1xf32>
    %16 = vector.broadcast %8 : vector<8x1xf32> to vector<8x32xf32>
    %17 = arith.subf %2, %16 : vector<8x32xf32>
    %cst_9 = arith.constant 9.99999974E-6 : f32
    %18 = vector.broadcast %cst_9 : f32 to vector<8x1xf32>
    %19 = arith.addf %15, %18 : vector<8x1xf32>
    %20 = math.rsqrt %19 : vector<8x1xf32>
    %21 = vector.broadcast %20 : vector<8x1xf32> to vector<8x32xf32>
    %22 = arith.mulf %17, %21 : vector<8x32xf32>
    %23 = vector.broadcast %3 : vector<1x32xf32> to vector<8x32xf32>
    %24 = arith.mulf %23, %22 : vector<8x32xf32>
    %25 = vector.broadcast %4 : vector<1x32xf32> to vector<8x32xf32>
    %26 = arith.addf %24, %25 : vector<8x32xf32>
    %27 = arith.truncf %26 : vector<8x32xf32> to vector<8x32xbf16>
    %c0_10 = arith.constant 0 : index
    %c0_11 = arith.constant 0 : index
    %28 = vector.load %arg6[%c0_10, %c0_11] : memref<32x128xbf16, #tpu.memory_space<vmem>>, vector<32x128xbf16>
    %cst_12 = arith.constant dense<0.000000e+00> : vector<8x128xf32>
    %29 = tpu.matmul %27, %28, %cst_12 {dimension_numbers = #tpu.dot_dimension_numbers<[1], [0], [0], [1], [0, 0, 1, 1], [], []>} : vector<8x32xbf16>, vector<32x128xbf16>, vector<8x128xf32> -> vector<8x128xf32>
    %c0_13 = arith.constant 0 : index
    %c0_14 = arith.constant 0 : index
    %c0_15 = arith.constant 0 : index
    %30 = vector.load %arg7[%c0_13, %c0_14, %c0_15] : memref<1x8x128xf32, #tpu.memory_space<vmem>>, vector<1x8x128xf32>
    %31 = vector.shape_cast %30 : vector<1x8x128xf32> to vector<8x128xf32>
    %32 = vector.shape_cast %29 : vector<8x128xf32> to vector<1x8x128xf32>
    tpu.vector_store %arg7[%c0_13, %c0_14, %c0_15], %32 {strides = array<i32>} : memref<1x8x128xf32, #tpu.memory_space<vmem>>, vector<1x8x128xf32>,
    return
  }
  func.func @transform_0(%arg0: i32, %arg1: i32, %arg2: i32) -> (i32, i32, i32) {
    %c0_i32 = arith.constant 0 : i32
    %c0_i32_0 = arith.constant 0 : i32
    return %arg1, %arg2, %c0_i32 : i32, i32, i32
  }
  func.func @transform_1(%arg0: i32, %arg1: i32, %arg2: i32) -> (i32, i32) {
    %c0_i32 = arith.constant 0 : i32
    %c0_i32_0 = arith.constant 0 : i32
    %c0_i32_1 = arith.constant 0 : i32
    return %c0_i32, %c0_i32_0 : i32, i32
  }
  func.func @transform_2(%arg0: i32, %arg1: i32, %arg2: i32) -> (i32, i32) {
    %c0_i32 = arith.constant 0 : i32
    %c0_i32_0 = arith.constant 0 : i32
    %c0_i32_1 = arith.constant 0 : i32
    return %c0_i32, %c0_i32_0 : i32, i32
  }
  func.func @transform_3(%arg0: i32, %arg1: i32, %arg2: i32) -> (i32, i32) {
    %c0_i32 = arith.constant 0 : i32
    %c0_i32_0 = arith.constant 0 : i32
    return %c0_i32, %arg0 : i32, i32
  }
  func.func @transform_4(%arg0: i32, %arg1: i32, %arg2: i32) -> (i32, i32, i32) {
    %c0_i32 = arith.constant 0 : i32
    return %arg1, %arg2, %arg0 : i32, i32, i32
  }
}

</mosaic_0001>

<bundles_post_ra>
// kernel: tpu_custom_call.1
= control target key start
LH: loop header
LB: loop body
LE: loop exit
PB: predicated region body
PF: predicated region fallthrough
CT: control target
= control target key end

     0   :  { %6 = vsyncpa [#allocation3], 0  ;;  %s124_s0 = inlined_call_operand.hbm [shape: f32[8,128], index: 0, kind: input, shape index: {}]   ;;  %s125_s1 = inlined_call_operand.hbm [shape: f32[8,128], index: 1, kind: output, shape index: {}]  }
   0x1   :  { %7 = vsyncpa [#allocation4], 0  ;;  %s88_s6 = smov [#allocation2]   ;;  %s40_s10 = scalar_lea.hbm %s124_s0, 128 }
   0x2   :  { %s14_s7 = sshll.u32 %s88_s6, 4  ;;  %p41_p0 = scmp.ne.s32.totalorder %s124_s0, %s40_s10  ;;  %s15_s7 = int_to_ptr.vmem [resolvable:$true] %s14_s7 }
   0x3   :  { %p44_p1 = scmp.lt.u32.totalorder %s40_s10, %s124_s0 }
   0x5   :  { %p46_p2 = pnand %p44_p1, %p41_p0 }
   0x7   :  { %49 = shalt.err (!%p46_p2)
}
   0x8   :  { %s50_s15 = scalar_lea.vmem %s15_s7, 128  ;;  %p55_p4 = scmp.lt.s32.totalorder %s15_s7, %s15_s7 }
   0x9   :  { %p51_p3 = scmp.ne.s32.totalorder %s15_s7, %s50_s15  ;;  %p56_p5 = scmp.lt.s32.totalorder %s50_s15, %s50_s15 }
   0xb   :  { %p57_p6 = por %p56_p5, %p55_p4 }
   0xd   :  { %p58_p7 = pnand %p57_p6, %p51_p3 }
   0xf   :  { %61 = shalt.err (!%p58_p7)
}
  0x10   :  { %17 = dma.hbm_to_vmem [thread:$0]  %s124_s0, 128, %s15_s7, [#allocation3]  }
  0x11   :  { %84 = dma.done.wait [#allocation3], 128  }
  0x12   :  { %85 = vsyncadd [#allocation3], 4294967168  ;;  %s89_s18 = smov [#allocation5]   ;;  %v21_v0 = vld [vmem:[#allocation2] sm:$0xff] }
  0x13   :  { %s29_s19 = sshll.u32 %s89_s18, 4  ;;  %22 = vst [vmem:[#allocation5] sm:$0xff] %v21_v0  ;;  %s30_s19 = int_to_ptr.vmem [resolvable:$true] %s29_s19 }
  0x14   :  { %s62_s20 = scalar_lea.vmem %s30_s19, 128  ;;  %p67_p9 = scmp.lt.s32.totalorder %s30_s19, %s30_s19 }
  0x15   :  { %p63_p8 = scmp.ne.s32.totalorder %s30_s19, %s62_s20  ;;  %p68_p10 = scmp.lt.s32.totalorder %s62_s20, %s62_s20 }
  0x17   :  { %p69_p11 = por %p68_p10, %p67_p9 }
  0x19   :  { %p70_p12 = pnand %p69_p11, %p63_p8 }
  0x1b   :  { %73 = shalt.err (!%p70_p12)
}
  0x1c   :  { %s74_s23 = scalar_lea.hbm %s125_s1, 128 }
  0x1d   :  { %p75_p13 = scmp.ne.s32.totalorder %s125_s1, %s74_s23  ;;  %p78_p0 = scmp.lt.u32.totalorder %s74_s23, %s125_s1 }
  0x1f   :  { %p80_p1 = pnand %p78_p0, %p75_p13 }
  0x21   :  { %83 = shalt.err (!%p80_p1)
}
  0x22   :  { %32 = dma.vmem_to_hbm [thread:$0]  %s30_s19, 128, %s125_s1, [#allocation4]  }
  0x23   :  { %86 = dma.done.wait [#allocation4], 128  }
  0x24   :  { %87 = vsyncadd [#allocation4], 4294967168 }
  0x25   :  { %36 = vsyncpa [#allocation3], 1 }
  0x26   :  { %37 = vsyncpa [#allocation4], 1 }

// kernel: _lambda_.13
= control target key start
LH: loop header
LB: loop body
LE: loop exit
PB: predicated region body
PF: predicated region fallthrough
CT: control target
= control target key end

     0   :  { %9 = vsyncpa [#allocation3], 0  ;;  %s1165_s0 = inlined_call_operand.hbm [shape: bf16[2,8,32], index: 0, kind: input, shape index: {}]   ;;  %s1166_s1 = inlined_call_operand.hbm [shape: f32[1,32], index: 1, kind: input, shape index: {}]   ;;  %s1167_s2 = inlined_call_operand.hbm [shape: f32[1,32], index: 2, kind: input, shape index: {}]   ;;  %s1168_s3 = inlined_call_operand.hbm [shape: bf16[32,128], index: 3, kind: input, shape index: {}]   ;;  %s1169_s4 = inlined_call_operand.hbm [shape: f32[2,8,128], index: 4, kind: output, shape index: {}]  }
   0x1   :  { %11 = vsyncpa [#allocation3 + $0x1], 0 }
   0x2   :  { %12 = vsyncpa [#allocation6], 0 }
   0x3   :  { %13 = vsyncpa [#allocation9], 0 }
   0x4   :  { %14 = vsyncpa [#allocation4], 0 }
   0x5   :  { %16 = vsyncpa [#allocation4 + $0x1], 0  ;;  %s888_s15 = smov 0   ;;  %s890_s16 = smov 0  }
   0x6   :  { %s892_s17 = smov 0   ;;  %s894_s18 = smov 0  }
   0x7   :  { %s896_s19 = smov 0   ;;  %s898_s20 = smov 0  }
   0x8 LB: > { %s512_s21 = sadd.s32 4294967295, %s852_s20   ;;  %s513_s22 = sadd.s32 4294967294, %s852_s20   ;;  %s852_s20 = sphi %s898_s20, %s22_s20   ;;  %s848_s19 = sphi %s896_s19, %s1193_s19   ;;  %s844_s18 = sphi %s894_s18, %s1192_s18   ;;  %s840_s17 = sphi %s892_s17, %s1191_s17   ;;  %s836_s16 = sphi %s890_s16, %s1190_s16   ;;  %s832_s15 = sphi %s888_s15, %s1189_s15  }
   0x9   : > { %p63_p0 = scmp.ne.s32.totalorder %s836_s16, %s832_s15  ;;  %p922_p1 = scmp.eq.s32.totalorder %s512_s21, 0 }
   0xa   : > { %p926_p2 = scmp.eq.s32.totalorder %s512_s21, 1  ;;  %p165_p3 = scmp.eq.s32.totalorder %s513_s22, 1 }
   0xb   : > { %s1174_s23 = scalar_select %p922_p1, 1, 0 }
   0xc   : > { %s1175_s24 = scalar_select %p926_p2, 1, 0 }
   0xd   : > { %p932_p4 = por %p922_p1, %p63_p0  ;;  %p514_p5 = scmp.ge.s32.totalorder %s852_s20, 1 }
   0xe   : > { %p937_p6 = por %p165_p3, %p63_p0  ;;  %p172_p7 = scmp.lt.s32.totalorder %s852_s20, 3 }
   0xf   : > { %s1176_s25 = scalar_select %p932_p4, 1, 0 }
  0x10   : > { %s1177_s26 = scalar_select %p937_p6, 1, 0 }
  0x11   : > { %p942_p8 = pnand %p514_p5, %p172_p7  ;;  %s854_s28 = smov [#allocation5]  }
  0x12   : > { %s185_s29 = sshll.u32 %s854_s28, 4  ;;  %s855_s30 = smov [#allocation7]   ;;  %s186_s29 = int_to_ptr.vmem [resolvable:$true] %s185_s29 }
  0x13   : > { %s1178_s27 = scalar_select %p942_p8, 1, 0 }
  0x14   : > { %p563_p10 = pneg %p942_p8  ;;  %s196_s5 = sshll.u32 %s855_s30, 4  ;;  %s955_s5 = int_to_ptr.vmem [resolvable:$true] %s196_s5 }
  0x15   : > { %s856_s7 = smov [#allocation8]   ;;  %s648_s11 = scalar_lea.hbm %s1166_s1, 16 }
  0x16   : > { %p951_p11 = pnand %p563_p10, %p922_p1  ;;  %s208_s8 = sshll.u32 %s856_s7, 4  ;;  %s957_s8 = int_to_ptr.vmem [resolvable:$true] %s208_s8 }
  0x17   : > { %p649_p12 = scmp.ne.s32.totalorder %s1166_s1, %s648_s11  ;;  %p655_p5 = scmp.lt.u32.totalorder %s648_s11, %s1166_s1 }
  0x18   : > { %p967_p13 = pneg %p951_p11 }
  0x1a   : > { %p651_p0 = pnand %p967_p13, %p649_p12 }
  0x1c   : > { %p652_p3 = pneg %p651_p0 }
  0x1e   : > { %p657_p7 = pnand %p655_p5, %p652_p3 }
  0x20   : > { %660 = shalt.err (!%p657_p7)
}
  0x21   : > { %s661_s28 = scalar_lea.vmem %s186_s29, 16  ;;  %s668_s30 = scalar_lea.vmem %s186_s29, 32 }
  0x22   : > { %p662_p10 = scmp.ne.s32.totalorder %s186_s29, %s661_s28  ;;  %p669_p1 = scmp.lt.s32.totalorder %s186_s29, %s186_s29 }
  0x23   : > { %p670_p4 = scmp.lt.s32.totalorder %s668_s30, %s661_s28 }
  0x24   : > { %p664_p9 = pnand %p662_p10, %p967_p13 }
  0x25   : > { %p671_p8 = por %p670_p4, %p669_p1 }
  0x26   : > { %p665_p6 = pneg %p664_p9 }
  0x28   : > { %p672_p2 = pnand %p671_p8, %p665_p6 }
  0x2a   : > { %675 = shalt.err (!%p672_p2)
}
  0x2b   : > { %566 = dma.hbm_to_vmem [thread:$0]  (!%p951_p11), %s1166_s1, 16, %s186_s29, [#allocation6]  }
  0x2c   : > { %s676_s12 = scalar_lea.hbm %s1167_s2, 16 }
  0x2d   : > { %p677_p9 = scmp.ne.s32.totalorder %s1167_s2, %s676_s12  ;;  %p683_p2 = scmp.lt.u32.totalorder %s676_s12, %s1167_s2 }
  0x2f   : > { %p679_p12 = pnand %p677_p9, %p967_p13 }
  0x31   : > { %p680_p1 = pneg %p679_p12 }
  0x33   : > { %p685_p4 = pnand %p683_p2, %p680_p1 }
  0x35   : > { %688 = shalt.err (!%p685_p4)
}
  0x36   : > { %s689_s29 = scalar_lea.vmem %s955_s5, 16  ;;  %s696_s30 = scalar_lea.vmem %s955_s5, 32 }
  0x37   : > { %p690_p6 = scmp.ne.s32.totalorder %s955_s5, %s689_s29  ;;  %p697_p3 = scmp.lt.s32.totalorder %s955_s5, %s955_s5 }
  0x38   : > { %p698_p5 = scmp.lt.s32.totalorder %s696_s30, %s689_s29 }
  0x39   : > { %p692_p8 = pnand %p690_p6, %p967_p13 }
  0x3a   : > { %p699_p7 = por %p698_p5, %p697_p3 }
  0x3b   : > { %p693_p0 = pneg %p692_p8 }
  0x3d   : > { %p700_p10 = pnand %p699_p7, %p693_p0 }
  0x3f   : > { %703 = shalt.err (!%p700_p10)
}
  0x40   : > { %569 = dma.hbm_to_vmem [thread:$0]  (!%p951_p11), %s1167_s2, 16, %s955_s5, [#allocation6]  }
  0x41   : > { %s704_s12 = scalar_lea.hbm %s1168_s3, 256 }
  0x42   : > { %p705_p9 = scmp.ne.s32.totalorder %s1168_s3, %s704_s12  ;;  %p711_p2 = scmp.lt.u32.totalorder %s704_s12, %s1168_s3 }
  0x44   : > { %p707_p12 = pnand %p705_p9, %p967_p13 }
  0x46   : > { %p708_p1 = pneg %p707_p12 }
  0x48   : > { %p713_p4 = pnand %p711_p2, %p708_p1 }
  0x4a   : > { %716 = shalt.err (!%p713_p4)
}
  0x4b   : > { %s717_s5 = scalar_lea.vmem %s957_s8, 256  ;;  %p725_p3 = scmp.lt.s32.totalorder %s957_s8, %s957_s8 }
  0x4c   : > { %p718_p6 = scmp.ne.s32.totalorder %s957_s8, %s717_s5  ;;  %p726_p5 = scmp.lt.s32.totalorder %s717_s5, %s717_s5 }
  0x4e   : > { %p720_p8 = pnand %p718_p6, %p967_p13  ;;  %p727_p7 = por %p726_p5, %p725_p3 }
  0x50   : > { %p721_p0 = pneg %p720_p8 }
  0x52   : > { %p728_p10 = pnand %p727_p7, %p721_p0 }
  0x54   : > { %731 = shalt.err (!%p728_p10)
}
  0x55   : > { %s857_s29 = smov 64   ;;  %s858_s14 = smov 4  }
  0x56   : > { %572 = dma.hbm_to_vmem [thread:$0]  (!%p951_p11), %s1168_s3, 256, %s957_s8, [#allocation9], %s857_s29, %s857_s29, %s858_s14  }
  0x57   : > { %s50_s9 = sadd.s32 1, %s840_s17  ;;  %s37_s10 = sadd.s32 1, %s848_s19 }
  0x58   : > { %p57_p13 = scmp.ne.s32.totalorder %s840_s17, %s836_s16  ;;  %p39_p9 = scmp.ge.s32.totalorder %s37_s10, 2 }
  0x59   : > { %p58_p12 = scmp.eq.s32.totalorder %s852_s20, 0  ;;  %p1181_p1 = scmp.ne.s32.totalorder %s1175_s24, 0 }
  0x5a   : > { %p584_p4 = scmp.lt.s32.totalorder %s852_s20, 2  ;;  %s1195_s10 = smov (%p39_p9, %s37_s10), 0 }
  0x5b   : > { %p1037_p2 = por %p1181_p1, %p57_p13  ;;  %p59_p6 = por %p58_p12, %p57_p13 }
  0x5c   : > { %s222_s6 = sand.u32 1, %s840_s17   ;;  %s45_s12 = ssub.s32 %s848_s19, %s1195_s10 }
  0x5d   : > { %p48_p8 = scmp.eq.s32.totalorder %s45_s12, 0  ;;  %s519_s8 = sshll.u32 %s222_s6, 2 }
  0x5e   : > { %s520_s13 = sshll.u32 %s848_s19, 6  ;;  %s226_s5 = scalar_lea.vmem [#allocation2], %s519_s8 }
  0x5f   : > { %s1049_s21 = scalar_select %p48_p8, %s840_s17, %s50_s9  }
  0x60   : > { %s1054_s24 = scalar_lea.hbm %s1165_s0, %s520_s13  ;;  %s234_s29 = sshll.u32 %s226_s5, 4  ;;  %s1056_s29 = int_to_ptr.vmem [resolvable:$true] %s234_s29 }
  0x61   : > { %p1060_p11 = pnand %p584_p4, %p59_p6  ;;  %s223_s30 = scalar_lea.sflag [#allocation3], %s222_s6 }
  0x62   : > { %s732_s7 = scalar_lea.hbm %s1054_s24, 64  ;;  %s737_s8 = scalar_lea.hbm %s1165_s0, 128 }
  0x63   : > { %p733_p0 = scmp.ne.s32.totalorder %s1054_s24, %s732_s7  ;;  %p734_p3 = pneg %p1060_p11 }
  0x64   : > { %p738_p10 = scmp.lt.u32.totalorder %s1054_s24, %s1165_s0  ;;  %p739_p13 = scmp.lt.u32.totalorder %s737_s8, %s732_s7 }
  0x65   : > { %p735_p5 = pnand %p734_p3, %p733_p0  ;;  %p741_p12 = scmp.lt.u32.totalorder %s732_s7, %s1054_s24 }
  0x66   : > { %p740_p9 = por %p739_p13, %p738_p10 }
  0x67   : > { %p736_p7 = pneg %p735_p5 }
  0x68   : > { %p742_p1 = por %p741_p12, %p740_p9 }
  0x6a   : > { %p743_p4 = pnand %p742_p1, %p736_p7 }
  0x6c   : > { %746 = shalt.err (!%p743_p4)
}
  0x6d   : > { %s747_s6 = scalar_lea.vmem %s1056_s29, 64  ;;  %s859_s28 = smov [#allocation2]  }
  0x6e   : > { %p748_p6 = scmp.ne.s32.totalorder %s1056_s29, %s747_s6  ;;  %s752_s5 = sshll.u32 %s859_s28, 4  ;;  %s753_s5 = int_to_ptr.vmem [resolvable:$false] %s752_s5 }
  0x6f   : > { %s754_s9 = scalar_lea.vmem %s753_s5, 128  ;;  %p755_p5 = scmp.lt.s32.totalorder %s1056_s29, %s753_s5 }
  0x70   : > { %p750_p8 = pnand %p748_p6, %p734_p3  ;;  %p756_p10 = scmp.lt.s32.totalorder %s754_s9, %s747_s6 }
  0x72   : > { %p751_p0 = pneg %p750_p8  ;;  %p757_p13 = por %p756_p10, %p755_p5 }
  0x74   : > { %p758_p9 = pnand %p757_p13, %p751_p0 }
  0x76   : > { %761 = shalt.err (!%p758_p9)
}
  0x77   : > { %576 = dma.hbm_to_vmem [thread:$0]  (!%p1060_p11), %s1054_s24, 64, %s1056_s29, %s223_s30  }
  0x78   : > { %p1184_p7 = scmp.ne.s32.totalorder %s1178_s27, 0 }
  0x79   : > { %s1092_s7 = sand.u32 (!%p1184_p7), 1, %s836_s16   ;;  %p1185_p3 = scmp.ne.s32.totalorder (!%p1184_p7), %s1176_s25, 0 }
  0x7a   : > { %243 = sbr.rel (%p1184_p7) target bundleno = 680 (0x2a8), region = 36  ;;  %s522_s12 = sshll.u32 (!%p1184_p7), %s1092_s7, 2 }
  0x7b   : > { %s246_s8 = scalar_lea.sflag (!%p1184_p7), [#allocation3], %s1092_s7  ;;  %s249_s13 = scalar_lea.vmem (!%p1184_p7), [#allocation2], %s522_s12 }
  0x81   : > { %815 = dma.done.wait (%p1185_p3), %s246_s8, 64  }
  0x82   : > { %817 = vsyncadd (%p1185_p3), %s246_s8, 4294967232  ;;  %p1186_p12 = scmp.ne.s32.totalorder %s1174_s23, 0 }
  0x84   : > { %819 = dma.done.wait (%p1186_p12), [#allocation6], 32  }
  0x85   : > { %821 = vsyncadd (%p1186_p12), [#allocation6], 4294967264 }
  0x86   : > { %823 = dma.done.wait (%p1186_p12), [#allocation9], 256  }
  0x87   : > { %825 = vsyncadd (%p1186_p12), [#allocation9], 4294967040  ;;  %vm291_vm0 = vcmask 261120   ;;  %v287_v0 = vld [vmem:[%s249_s13] sm:$0xf]  ;;  %v644_v8 = vld [vmem:[#allocation8] sm:$0xff]  }
  0x88   : > { %v288_v1 = vunpack.c.l.bf16 %v287_v0  ;;  %v860_v9 = vmov 0.0   ;;  %v645_v10 = vld [vmem:[#allocation8 + $0x8] sm:$0xff]   ;;  %vm861_vm1 = vmmov 0   ;;  %v527_v15 = vld [vmem:[#allocation5] ss:$0 sm:$0xff]  ;;  %s526_s23 = sshll.u32 %s1092_s7, 3 }
  0x89   : > { %539 = vmatprep.subr.bf16.mxu0 %v860_v9  ;;  %543 = vmatprep.mubr.msk.bf16.mxu0 %vm861_vm1, %v860_v9  ;;  %v528_v17 = vld [vmem:[#allocation7] ss:$0 sm:$0xff]  ;;  %s285_s25 = scalar_lea.vmem [#allocation10], %s526_s23  ;;  %s533_s24 = sshll.u32 %s844_s18, 7 }
  0x8a   : > { %v292_v2 = vsel %vm291_vm0, %v288_v1, 0.0  ;;  %540 = vmatpush3.bf16.msra.mxu0 %v644_v8  ;;  %s397_s27 = sshll.u32 %s285_s25, 4  ;;  %s1118_s30 = scalar_lea.hbm %s1169_s4, %s533_s24  ;;  %s1113_s27 = int_to_ptr.vmem [resolvable:$true] %s397_s27 }
  0x8b   : > { %293 = vadd.xlane.f32.xlu0 %v292_v2  ;;  %541 = vmatprep.subr.bf16.mxu0 %v860_v9  ;;  %s382_s22 = scalar_lea.sflag [#allocation4], %s1092_s7  ;;  %s762_s6 = scalar_lea.vmem %s1113_s27, 128 }
  0x8c   : > { %p763_p11 = scmp.ne.s32.totalorder %s1113_s27, %s762_s6  ;;  %s862_s18 = smov [#allocation10]  }
  0x8d   : > { %s766_s28 = sshll.u32 %s862_s18, 4  ;;  %s767_s28 = int_to_ptr.vmem [resolvable:$false] %s766_s28 }
  0x8e   : > { %542 = vmatpush3.bf16.msra.mxu0 %v645_v10  ;;  %p764_p1 = pnand %p763_p11, %p1037_p2  ;;  %s768_s5 = scalar_lea.vmem %s767_s28, 256 }
  0x8f   : > { %p769_p6 = scmp.lt.s32.totalorder %s1113_s27, %s767_s28  ;;  %p770_p8 = scmp.lt.s32.totalorder %s768_s5, %s762_s6 }
  0x90   : > { %p765_p4 = pneg %p764_p1 }
  0x91   : > { %p771_p0 = por %p770_p8, %p769_p6 }
  0x93   : > { %p772_p5 = pnand %p771_p0, %p765_p4 }
 0x118   : > { %v294_v3 = vpop.xlane.xlu0 %293 }
 0x119   : > { %v296_v4 = vmul.f32 0.03125, %v294_v3 }
 0x11b   : > { %v297_v5 = vsub.f32 %v288_v1, %v296_v4 }
 0x11d   : > { %v298_v6 = vmul.f32 %v297_v5, %v297_v5 }
 0x11f   : > { %v299_v7 = vsel %vm291_vm0, %v298_v6, 0.0 }
 0x120   : > { %300 = vadd.xlane.f32.xlu0 %v299_v7 }
 0x1ad   : > { %v301_v11 = vpop.xlane.xlu0 %300 }
 0x1ae   : > { %v302_v12 = vmul.f32 0.03125, %v301_v11 }
 0x1b0   : > { %v303_v13 = vadd.f32 1e-05, %v302_v12 }
 0x1b2   : > { %646 = vrsqrt.f32 %v303_v13 }
 0x1bc   : > { %v647_v14 = vpop.eup %646 }
 0x1bd   : > { %v305_v16 = vmul.f32 %v647_v14, %v297_v5 }
 0x1bf   : > { %v312_v18 = vmul.f32 %v527_v15, %v305_v16 }
 0x1c1   : > { %v319_v19 = vadd.f32 %v528_v17, %v312_v18 }
 0x1c3   : > { %v320_v20 = vpack.c.bf16 %v319_v19, %v319_v19 }
 0x1c5   : > { %544 = vmatmul.mubr.msk.bf16.vlgmr.msra.gmra.mrb[0].mxu0 %vm291_vm0, %v320_v20 }
 0x298   : > { %v374_v21 = vpop.f32.mrb[0].mxu0 }
 0x299   : > { %380 = vst [vmem:[%s285_s25] sm:$0xff] %v374_v21  ;;  %v545_v22 = vpop.f32.mrb[1].mxu0 }
 0x29a   : > { %v377_v23 = vpop.f32.mrb[2].mxu0 }
 0x29b   : > { %775 = shalt.err (!%p772_p5)
}
 0x29c   : > { %s776_s9 = scalar_lea.hbm %s1118_s30, 128  ;;  %s780_s8 = scalar_lea.hbm %s1169_s4, 256 }
 0x29d   : > { %p777_p10 = scmp.ne.s32.totalorder %s1118_s30, %s776_s9  ;;  %p781_p7 = scmp.lt.u32.totalorder %s1118_s30, %s1169_s4 }
 0x29e   : > { %p782_p3 = scmp.lt.u32.totalorder %s780_s8, %s776_s9  ;;  %p784_p11 = scmp.lt.u32.totalorder %s776_s9, %s1118_s30 }
 0x29f   : > { %p778_p13 = pnand %p777_p10, %p1037_p2 }
 0x2a0   : > { %p783_p12 = por %p782_p3, %p781_p7 }
 0x2a1   : > { %p779_p9 = pneg %p778_p13 }
 0x2a2   : > { %p785_p1 = por %p784_p11, %p783_p12 }
 0x2a4   : > { %p786_p4 = pnand %p785_p1, %p779_p9 }
 0x2a6   : > { %789 = shalt.err (!%p786_p4)
}
 0x2a7   : > { %561 = dma.vmem_to_hbm [thread:$0]  (%p1037_p2), %s1113_s27, 128, %s1118_s30, %s382_s22   ;;  %v546_v24 = vpop.f32.mrb[3].mxu0 }
 0x2a8 PF: > { %s409_s25 = sand.u32 1, %s832_s15   ;;  %p1187_p6 = scmp.ne.s32.totalorder %s1177_s26, 0 }
 0x2a9   : > { %p1188_p8 = scmp.ge.s32.totalorder %s852_s20, 2  ;;  %s410_s24 = scalar_lea.sflag [#allocation4], %s409_s25 }
 0x2ab   : > { %p578_p0 = pnand %p1188_p8, %p1187_p6 }
 0x2ad   : > { %827 = dma.done.wait (!%p578_p0), %s410_s24, 128  }
 0x2ae   : > { %829 = vsyncadd (!%p578_p0), %s410_s24, 4294967168  ;;  %s22_s20 = sadd.s32 1, %s852_s20   ;;  %s1189_s15 = smov %s836_s16 }
 0x2af   : > { %p19_p5 = scmp.ge.s32.totalorder %s22_s20, 4   ;;  %s1190_s16 = smov %s840_s17 }
 0x2b0   : > { %s1191_s17 = smov %s1049_s21  ;;  %s1192_s18 = smov %s848_s19 }
 0x2b1   : > { %s1193_s19 = smov %s1195_s10  ;;  %21 = sbr.rel (!%p19_p5) target bundleno = 8 (0x8), region = 94 }
 0x2b8   :  { %415 = vsyncpa [#allocation3], 1 }
 0x2b9   :  { %417 = vsyncpa [#allocation3 + $0x1], 1 }
 0x2ba   :  { %418 = vsyncpa [#allocation6], 1 }
 0x2bb   :  { %419 = vsyncpa [#allocation9], 1 }
 0x2bc   :  { %420 = vsyncpa [#allocation4], 1 }
 0x2bd   :  { %422 = vsyncpa [#allocation4 + $0x1], 1 }

// kernel: _lambda_.9
= control target key start
LH: loop header
LB: loop body
LE: loop exit
PB: predicated region body
PF: predicated region fallthrough
CT: control target
= control target key end

     0   :  { %s1729_s0 = inlined_call_operand.hbm [shape: bf16[2,8,32], index: 0, kind: input, shape index: {}]   ;;  %s1730_s1 = inlined_call_operand.hbm [shape: f32[1,32], index: 1, kind: input, shape index: {}]   ;;  %s1731_s2 = inlined_call_operand.hbm [shape: f32[1,32], index: 2, kind: input, shape index: {}, may-alias: {2,6}]   ;;  %s1732_s3 = inlined_call_operand.hbm [shape: bf16[32,128], index: 3, kind: input, shape index: {}]   ;;  %s1733_s4 = inlined_call_operand.hbm [shape: f32[1,128], index: 4, kind: input, shape index: {}]   ;;  %s1734_s5 = inlined_call_operand.hbm [shape: bf16[128,32], index: 5, kind: input, shape index: {}]   ;;  %s1735_s6 = inlined_call_operand.hbm [shape: f32[1,32], index: 6, kind: input, shape index: {}, may-alias: {2,6}]   ;;  %s1736_s7 = inlined_call_operand.hbm [shape: bf16[2,8,32], index: 7, kind: output, shape index: {}]  }
   0x1   :  { %1742 = sst [smem:[#allocation21_spill]] %s1730_s1 }
   0x2   :  { %1743 = sst [smem:[#allocation22_spill]] %s1732_s3 }
   0x3   :  { %12 = vsyncpa [#allocation4], 0 }
   0x4   :  { %14 = vsyncpa [#allocation4 + $0x1], 0 }
   0x5   :  { %15 = vsyncpa [#allocation7], 0 }
   0x6   :  { %16 = vsyncpa [#allocation10], 0 }
   0x7   :  { %17 = vsyncpa [#allocation13], 0 }
   0x8   :  { %18 = vsyncpa [#allocation5], 0 }
   0x9   :  { %20 = vsyncpa [#allocation5 + $0x1], 0  ;;  %s1387_s24 = smov 0   ;;  %s1389_s25 = smov 0  }
   0xa   :  { %s1391_s26 = smov 0   ;;  %s1393_s27 = smov 0  }
   0xb   :  { %s1395_s28 = smov 0   ;;  %s1397_s29 = smov 0  }
   0xc LB: > { %s1740_s30 = sadd.s32 4294967295, %s1333_s29   ;;  %p822_p0 = scmp.ge.s32.totalorder %s1333_s29, 1  ;;  %s1333_s29 = sphi %s1397_s29, %s26_s29   ;;  %s1329_s28 = sphi %s1395_s28, %s1766_s28   ;;  %s1325_s27 = sphi %s1393_s27, %s1765_s27   ;;  %s1321_s26 = sphi %s1391_s26, %s1764_s26   ;;  %s1317_s25 = sphi %s1389_s25, %s1763_s25   ;;  %s1313_s24 = sphi %s1387_s24, %s1762_s24  }
   0xd   : > { %p1421_p1 = scmp.eq.s32.totalorder %s1740_s30, 0  ;;  %p247_p2 = scmp.lt.s32.totalorder %s1333_s29, 3 }
   0xe   : > { %s1335_s10 = smov [#allocation6]   ;;  %s1336_s12 = smov [#allocation9]  }
   0xf   : > { %s1744_s8 = scalar_select %p1421_p1, 1, 0 }
  0x10   : > { %p1426_p3 = pnand %p822_p0, %p247_p2  ;;  %s260_s11 = sshll.u32 %s1335_s10, 4  ;;  %s261_s11 = int_to_ptr.vmem [resolvable:$true] %s260_s11 }
  0x11   : > { %s283_s13 = sshll.u32 %s1336_s12, 4  ;;  %s1337_s15 = smov [#allocation12]   ;;  %s1439_s13 = int_to_ptr.vmem [resolvable:$true] %s283_s13 }
  0x12   : > { %s1745_s9 = scalar_select %p1426_p3, 1, 0 }
  0x13   : > { %p928_p5 = pneg %p1426_p3  ;;  %s1441_s16 = sshll.u32 %s1337_s15, 4  ;;  %s313_s16 = int_to_ptr.vmem [resolvable:$true] %s1441_s16 }
  0x14   : > { %s1747_s1 = sld [smem:[#allocation21_spill]] }
  0x15   : > { %p1435_p6 = pnand %p928_p5, %p1421_p1 }
  0x17   : > { %p1451_p8 = pneg %p1435_p6 }
  0x1a   : > { %s1041_s19 = scalar_lea.hbm %s1747_s1, 16 }
  0x1b   : > { %p1042_p7 = scmp.ne.s32.totalorder %s1747_s1, %s1041_s19  ;;  %p1048_p11 = scmp.lt.u32.totalorder %s1041_s19, %s1747_s1 }
  0x1d   : > { %p1044_p9 = pnand %p1451_p8, %p1042_p7 }
  0x1f   : > { %p1045_p10 = pneg %p1044_p9 }
  0x21   : > { %p1050_p12 = pnand %p1048_p11, %p1045_p10 }
  0x23   : > { %1053 = shalt.err (!%p1050_p12)
}
  0x24   : > { %s1054_s12 = scalar_lea.vmem %s261_s11, 16  ;;  %s1061_s15 = scalar_lea.vmem %s261_s11, 32 }
  0x25   : > { %p1055_p13 = scmp.ne.s32.totalorder %s261_s11, %s1054_s12  ;;  %p1062_p5 = scmp.lt.s32.totalorder %s261_s11, %s261_s11 }
  0x26   : > { %p1063_p4 = scmp.lt.s32.totalorder %s1061_s15, %s1054_s12 }
  0x27   : > { %p1057_p0 = pnand %p1055_p13, %p1451_p8 }
  0x28   : > { %p1064_p3 = por %p1063_p4, %p1062_p5 }
  0x29   : > { %p1058_p2 = pneg %p1057_p0 }
  0x2b   : > { %p1065_p1 = pnand %p1064_p3, %p1058_p2 }
  0x2d   : > { %1068 = shalt.err (!%p1065_p1)
}
  0x2e   : > { %931 = dma.hbm_to_vmem [thread:$0]  (!%p1435_p6), %s1747_s1, 16, %s261_s11, [#allocation7]  }
  0x2f   : > { %s1749_s3 = sld [smem:[#allocation22_spill]] }
  0x35   : > { %s1069_s21 = scalar_lea.hbm %s1749_s3, 256 }
  0x36   : > { %p1070_p7 = scmp.ne.s32.totalorder %s1749_s3, %s1069_s21  ;;  %p1076_p1 = scmp.lt.u32.totalorder %s1069_s21, %s1749_s3 }
  0x38   : > { %p1072_p9 = pnand %p1070_p7, %p1451_p8 }
  0x3a   : > { %p1073_p4 = pneg %p1072_p9 }
  0x3c   : > { %p1078_p3 = pnand %p1076_p1, %p1073_p4 }
  0x3e   : > { %1081 = shalt.err (!%p1078_p3)
}
  0x3f   : > { %s1082_s11 = scalar_lea.vmem %s1439_s13, 256  ;;  %p1090_p13 = scmp.lt.s32.totalorder %s1439_s13, %s1439_s13 }
  0x40   : > { %p1083_p10 = scmp.ne.s32.totalorder %s1439_s13, %s1082_s11  ;;  %p1091_p0 = scmp.lt.s32.totalorder %s1082_s11, %s1082_s11 }
  0x42   : > { %p1085_p11 = pnand %p1083_p10, %p1451_p8  ;;  %p1092_p2 = por %p1091_p0, %p1090_p13 }
  0x44   : > { %p1086_p12 = pneg %p1085_p11 }
  0x46   : > { %p1093_p5 = pnand %p1092_p2, %p1086_p12 }
  0x48   : > { %1096 = shalt.err (!%p1093_p5)
}
  0x49   : > { %s1338_s17 = smov 64   ;;  %s1339_s18 = smov 4  }
  0x4a   : > { %937 = dma.hbm_to_vmem [thread:$0]  (!%p1435_p6), %s1749_s3, 256, %s1439_s13, [#allocation10], %s1338_s17, %s1338_s17, %s1339_s18  }
  0x4b   : > { %s1097_s10 = scalar_lea.hbm %s1734_s5, 1024 }
  0x4c   : > { %p1098_p7 = scmp.ne.s32.totalorder %s1734_s5, %s1097_s10  ;;  %p1104_p1 = scmp.lt.u32.totalorder %s1097_s10, %s1734_s5 }
  0x4e   : > { %p1100_p9 = pnand %p1098_p7, %p1451_p8 }
  0x50   : > { %p1101_p4 = pneg %p1100_p9 }
  0x52   : > { %p1106_p3 = pnand %p1104_p1, %p1101_p4 }
  0x54   : > { %1109 = shalt.err (!%p1106_p3)
}
  0x55   : > { %s1110_s19 = scalar_lea.vmem %s313_s16, 1024  ;;  %p1118_p13 = scmp.lt.s32.totalorder %s313_s16, %s313_s16 }
  0x56   : > { %p1111_p10 = scmp.ne.s32.totalorder %s313_s16, %s1110_s19  ;;  %p1119_p0 = scmp.lt.s32.totalorder %s1110_s19, %s1110_s19 }
  0x58   : > { %p1113_p11 = pnand %p1111_p10, %p1451_p8  ;;  %p1120_p2 = por %p1119_p0, %p1118_p13 }
  0x5a   : > { %p1114_p12 = pneg %p1113_p11 }
  0x5c   : > { %p1121_p5 = pnand %p1120_p2, %p1114_p12 }
  0x5e   : > { %1124 = shalt.err (!%p1121_p5)
}
  0x5f   : > { %943 = dma.hbm_to_vmem [thread:$0]  (!%p1435_p6), %s1734_s5, 1024, %s313_s16, [#allocation13], %s1338_s17, %s1338_s17, %s1339_s18  }
  0x60   : > { %s1340_s30 = smov [#allocation8]   ;;  %s1341_s23 = smov [#allocation11]  }
  0x61   : > { %s271_s21 = sshll.u32 %s1340_s30, 4  ;;  %s299_s10 = sshll.u32 %s1341_s23, 4  ;;  %s272_s21 = int_to_ptr.vmem [resolvable:$true] %s271_s21  ;;  %s300_s10 = int_to_ptr.vmem [resolvable:$true] %s299_s10 }
  0x62   : > { %s1125_s11 = scalar_lea.hbm %s1731_s2, 16 }
  0x63   : > { %p1126_p7 = scmp.ne.s32.totalorder %s1731_s2, %s1125_s11  ;;  %p1132_p1 = scmp.lt.u32.totalorder %s1125_s11, %s1731_s2 }
  0x65   : > { %p1128_p9 = pnand %p1126_p7, %p1451_p8 }
  0x67   : > { %p1129_p4 = pneg %p1128_p9 }
  0x69   : > { %p1134_p3 = pnand %p1132_p1, %p1129_p4 }
  0x6b   : > { %1137 = shalt.err (!%p1134_p3)
}
  0x6c   : > { %s1138_s16 = scalar_lea.vmem %s272_s21, 16  ;;  %s1145_s17 = scalar_lea.vmem %s272_s21, 32 }
  0x6d   : > { %p1139_p10 = scmp.ne.s32.totalorder %s272_s21, %s1138_s16  ;;  %p1146_p13 = scmp.lt.s32.totalorder %s272_s21, %s272_s21 }
  0x6e   : > { %p1147_p0 = scmp.lt.s32.totalorder %s1145_s17, %s1138_s16 }
  0x6f   : > { %p1141_p11 = pnand %p1139_p10, %p1451_p8 }
  0x70   : > { %p1148_p2 = por %p1147_p0, %p1146_p13 }
  0x71   : > { %p1142_p12 = pneg %p1141_p11 }
  0x73   : > { %p1149_p5 = pnand %p1148_p2, %p1142_p12 }
  0x75   : > { %1152 = shalt.err (!%p1149_p5)
}
  0x76   : > { %934 = dma.hbm_to_vmem [thread:$0]  (!%p1435_p6), %s1731_s2, 16, %s272_s21, [#allocation7]  }
  0x77   : > { %s1153_s30 = scalar_lea.hbm %s1733_s4, 16 }
  0x78   : > { %p1154_p7 = scmp.ne.s32.totalorder %s1733_s4, %s1153_s30  ;;  %p1160_p1 = scmp.lt.u32.totalorder %s1153_s30, %s1733_s4 }
  0x7a   : > { %p1156_p9 = pnand %p1154_p7, %p1451_p8 }
  0x7c   : > { %p1157_p4 = pneg %p1156_p9 }
  0x7e   : > { %p1162_p3 = pnand %p1160_p1, %p1157_p4 }
  0x80   : > { %1165 = shalt.err (!%p1162_p3)
}
  0x81   : > { %s1166_s19 = scalar_lea.vmem %s300_s10, 16  ;;  %s1173_s21 = scalar_lea.vmem %s300_s10, 32 }
  0x82   : > { %p1167_p10 = scmp.ne.s32.totalorder %s300_s10, %s1166_s19  ;;  %p1174_p13 = scmp.lt.s32.totalorder %s300_s10, %s300_s10 }
  0x83   : > { %p1175_p0 = scmp.lt.s32.totalorder %s1173_s21, %s1166_s19 }
  0x84   : > { %p1169_p11 = pnand %p1167_p10, %p1451_p8 }
  0x85   : > { %p1176_p2 = por %p1175_p0, %p1174_p13 }
  0x86   : > { %p1170_p12 = pneg %p1169_p11 }
  0x88   : > { %p1177_p5 = pnand %p1176_p2, %p1170_p12 }
  0x8a   : > { %1180 = shalt.err (!%p1177_p5)
}
  0x8b   : > { %940 = dma.hbm_to_vmem [thread:$0]  (!%p1435_p6), %s1733_s4, 16, %s300_s10, [#allocation10]  }
  0x8c   : > { %s1342_s17 = smov [#allocation14]   ;;  %s1181_s20 = scalar_lea.hbm %s1735_s6, 16 }
  0x8d   : > { %s326_s1 = sshll.u32 %s1342_s17, 4  ;;  %p1182_p7 = scmp.ne.s32.totalorder %s1735_s6, %s1181_s20  ;;  %s327_s1 = int_to_ptr.vmem [resolvable:$true] %s326_s1 }
  0x8e   : > { %p1188_p1 = scmp.lt.u32.totalorder %s1181_s20, %s1735_s6 }
  0x8f   : > { %p1184_p9 = pnand %p1182_p7, %p1451_p8 }
  0x91   : > { %p1185_p4 = pneg %p1184_p9 }
  0x93   : > { %p1190_p3 = pnand %p1188_p1, %p1185_p4 }
  0x95   : > { %1193 = shalt.err (!%p1190_p3)
}
  0x96   : > { %s1194_s10 = scalar_lea.vmem %s327_s1, 16  ;;  %s1201_s11 = scalar_lea.vmem %s327_s1, 32 }
  0x97   : > { %p1195_p10 = scmp.ne.s32.totalorder %s327_s1, %s1194_s10  ;;  %p1202_p13 = scmp.lt.s32.totalorder %s327_s1, %s327_s1 }
  0x98   : > { %p1203_p0 = scmp.lt.s32.totalorder %s1201_s11, %s1194_s10 }
  0x99   : > { %p1197_p11 = pnand %p1195_p10, %p1451_p8 }
  0x9a   : > { %p1204_p2 = por %p1203_p0, %p1202_p13 }
  0x9b   : > { %p1198_p12 = pneg %p1197_p11 }
  0x9d   : > { %p1205_p5 = pnand %p1204_p2, %p1198_p12 }
  0x9f   : > { %1208 = shalt.err (!%p1205_p5)
}
  0xa0   : > { %946 = dma.hbm_to_vmem [thread:$0]  (!%p1435_p6), %s1735_s6, 16, %s327_s1, [#allocation13]  }
  0xa1   : > { %s821_s22 = sadd.s32 4294967294, %s1333_s29   ;;  %s45_s13 = sadd.s32 1, %s1329_s28 }
  0xa2   : > { %p47_p8 = scmp.ge.s32.totalorder %s45_s13, 2  ;;  %s54_s14 = sadd.s32 1, %s1321_s26 }
  0xa3   : > { %p61_p7 = scmp.ne.s32.totalorder %s1321_s26, %s1317_s25  ;;  %p62_p9 = scmp.eq.s32.totalorder %s1333_s29, 0 }
  0xa4   : > { %s1768_s13 = smov (%p47_p8, %s45_s13), 0  ;;  %p67_p1 = scmp.ne.s32.totalorder %s1317_s25, %s1313_s24 }
  0xa5   : > { %p1571_p4 = por %p62_p9, %p61_p7  ;;  %s49_s17 = ssub.s32 %s1329_s28, %s1768_s13 }
  0xa6   : > { %s1751_s1 = sadd.s32 4294967295, %s1333_s29   ;;  %p52_p3 = scmp.eq.s32.totalorder %s49_s17, 0 }
  0xa7   : > { %p234_p6 = scmp.eq.s32.totalorder %s1751_s1, 1  ;;  %p1752_p10 = scmp.ne.s32.totalorder %s1744_s8, 0 }
  0xa8   : > { %p240_p13 = scmp.eq.s32.totalorder %s821_s22, 1  ;;  %p961_p2 = scmp.lt.s32.totalorder %s1333_s29, 2 }
  0xa9   : > { %p1583_p11 = por %p1752_p10, %p67_p1  ;;  %p1587_p12 = por %p234_p6, %p61_p7 }
  0xaa   : > { %s1592_s20 = scalar_select %p52_p3, %s1321_s26, %s54_s14  }
  0xab   : > { %s1754_s3 = scalar_select %p1587_p12, 1, 0 }
  0xac   : > { %p1594_p0 = por %p240_p13, %p67_p1  ;;  %s337_s23 = sand.u32 1, %s1321_s26  }
  0xad   : > { %s831_s12 = sshll.u32 %s1329_s28, 6  ;;  %s830_s15 = sshll.u32 %s337_s23, 2 }
  0xae   : > { %s1755_s30 = scalar_select %p1594_p0, 1, 0 }
  0xaf   : > { %s1604_s19 = scalar_lea.hbm %s1729_s0, %s831_s12  ;;  %s341_s21 = scalar_lea.vmem [#allocation3], %s830_s15 }
  0xb0   : > { %s349_s22 = sshll.u32 %s341_s21, 4  ;;  %p1608_p5 = pnand %p961_p2, %p1571_p4  ;;  %s1612_s22 = int_to_ptr.vmem [resolvable:$true] %s349_s22 }
  0xb1   : > { %s338_s17 = scalar_lea.sflag [#allocation4], %s337_s23  ;;  %s1209_s1 = scalar_lea.hbm %s1604_s19, 64 }
  0xb2   : > { %p1210_p8 = scmp.ne.s32.totalorder %s1604_s19, %s1209_s1  ;;  %p1211_p7 = pneg %p1608_p5 }
  0xb3   : > { %s1214_s16 = scalar_lea.hbm %s1729_s0, 128  ;;  %p1215_p4 = scmp.lt.u32.totalorder %s1604_s19, %s1729_s0 }
  0xb4   : > { %p1212_p9 = pnand %p1211_p7, %p1210_p8  ;;  %p1216_p6 = scmp.lt.u32.totalorder %s1214_s16, %s1209_s1 }
  0xb5   : > { %p1218_p10 = scmp.lt.u32.totalorder %s1209_s1, %s1604_s19 }
  0xb6   : > { %p1213_p1 = pneg %p1212_p9  ;;  %p1217_p3 = por %p1216_p6, %p1215_p4 }
  0xb8   : > { %p1219_p13 = por %p1218_p10, %p1217_p3 }
  0xba   : > { %p1220_p2 = pnand %p1219_p13, %p1213_p1 }
  0xbc   : > { %1223 = shalt.err (!%p1220_p2)
}
  0xbd   : > { %s1224_s23 = scalar_lea.vmem %s1612_s22, 64  ;;  %s1343_s21 = smov [#allocation3]  }
  0xbe   : > { %p1225_p8 = scmp.ne.s32.totalorder %s1612_s22, %s1224_s23  ;;  %s1229_s12 = sshll.u32 %s1343_s21, 4  ;;  %s1230_s12 = int_to_ptr.vmem [resolvable:$false] %s1229_s12 }
  0xbf   : > { %s1231_s15 = scalar_lea.vmem %s1230_s12, 128  ;;  %p1232_p12 = scmp.lt.s32.totalorder %s1612_s22, %s1230_s12 }
  0xc0   : > { %p1227_p9 = pnand %p1225_p8, %p1211_p7  ;;  %p1233_p4 = scmp.lt.s32.totalorder %s1231_s15, %s1224_s23 }
  0xc2   : > { %p1228_p0 = pneg %p1227_p9  ;;  %p1234_p6 = por %p1233_p4, %p1232_p12 }
  0xc4   : > { %p1235_p3 = pnand %p1234_p6, %p1228_p0 }
  0xc6   : > { %1238 = shalt.err (!%p1235_p3)
}
  0xc7   : > { %950 = dma.hbm_to_vmem [thread:$0]  (!%p1608_p5), %s1604_s19, 64, %s1612_s22, %s338_s17  }
  0xc8   : > { %p1757_p1 = scmp.ne.s32.totalorder %s1745_s9, 0 }
  0xc9   : > { %s1642_s1 = sand.u32 (!%p1757_p1), 1, %s1317_s25  }
  0xca   : > { %358 = sbr.rel (%p1757_p1) target bundleno = 1018 (0x3fa), region = 48  ;;  %s833_s16 = sshll.u32 (!%p1757_p1), %s1642_s1, 2 }
  0xcb   : > { %s361_s10 = scalar_lea.sflag (!%p1757_p1), [#allocation4], %s1642_s1  ;;  %s364_s11 = scalar_lea.vmem (!%p1757_p1), [#allocation3], %s833_s16 }
  0xd1   : > { %1292 = dma.done.wait (%p1583_p11), %s361_s10, 64  }
  0xd2   : > { %1294 = vsyncadd (%p1583_p11), %s361_s10, 4294967232  ;;  %p1758_p12 = scmp.ne.s32.totalorder %s1744_s8, 0 }
  0xd4   : > { %1296 = dma.done.wait (%p1758_p12), [#allocation7], 32  }
  0xd5   : > { %1298 = vsyncadd (%p1758_p12), [#allocation7], 4294967264 }
  0xd6   : > { %1300 = dma.done.wait (%p1758_p12), [#allocation10], 272  }
  0xd7   : > { %1302 = vsyncadd (%p1758_p12), [#allocation10], 4294967024 }
  0xd8   : > { %1304 = dma.done.wait (%p1758_p12), [#allocation13], 1040  }
  0xd9   : > { %1306 = vsyncadd (%p1758_p12), [#allocation13], 4294966256  ;;  %vm425_vm0 = vcmask 261120   ;;  %v1344_v0 = vmov 0.0   ;;  %v421_v1 = vld [vmem:[%s364_s11] sm:$0xf] }
  0xda   : > { %639 = vst.msk [vmem:[#allocation2] sm:$0xff] %vm425_vm0, %v1344_v0  ;;  %872 = vmatprep.subr.bf16.mxu0 %v1344_v0  ;;  %880 = vmatprep.subr.bf16.mxu1 %v1344_v0  ;;  %v1665_v2 = vunpack.c.l.bf16 %v421_v1  ;;  %v1027_v9 = vld [vmem:[#allocation9] sm:$0xff]   ;;  %v1028_v10 = vld [vmem:[#allocation9 + $0x8] sm:$0xff]   ;;  %vm1345_vm1 = vmmov 0   ;;  %v1029_v11 = vld [vmem:[#allocation12] sm:$0xff]   ;;  %s857_s8 = sshll.u32 %s1325_s27, 6 }
  0xdb   : > { %873 = vmatpush3.bf16.msra.mxu0 %v1027_v9  ;;  %876 = vmatprep.mubr.msk.bf16.mxu0 %vm1345_vm1, %v1344_v0  ;;  %v841_v16 = vld [vmem:[#allocation6] ss:$0 sm:$0xff]  ;;  %v842_v18 = vld [vmem:[#allocation8] ss:$0 sm:$0xff]  ;;  %v1031_v23 = vld [vmem:[#allocation12 + $0x10] sm:$0xff]   ;;  %s418_s9 = scalar_lea.vmem [#allocation15], %s833_s16  ;;  %s1680_s14 = scalar_lea.hbm %s1736_s7, %s857_s8 }
  0xdc   : > { %v426_v3 = vsel %vm425_vm0, %v1665_v2, 0.0  ;;  %874 = vmatprep.subr.bf16.mxu0 %v1344_v0  ;;  %896 = vmatprep.mubr.msk.bf16.mxu1 %vm1345_vm1, %v1344_v0  ;;  %v1030_v22 = vld [vmem:[#allocation12 + $0x8] sm:$0xff]   ;;  %v1032_v24 = vld [vmem:[#allocation12 + $0x18] sm:$0xff]   ;;  %v1033_v25 = vld [vmem:[#allocation12 + $0x20] sm:$0xff]   ;;  %s674_s18 = sshll.u32 %s418_s9, 4  ;;  %vm657_vm2 = vcmask 257024   ;;  %s1682_s18 = int_to_ptr.vmem [resolvable:$true] %s674_s18 }
  0xdd   : > { %427 = vadd.xlane.f32.xlu0 %v426_v3  ;;  %881 = vmatpush3.bf16.msra.mxu1 %v1029_v11  ;;  %v1034_v26 = vld [vmem:[#allocation12 + $0x28] sm:$0xff]   ;;  %v1035_v27 = vld [vmem:[#allocation12 + $0x30] sm:$0xff]   ;;  %v1036_v28 = vld [vmem:[#allocation12 + $0x38] sm:$0xff]   ;;  %s660_s17 = scalar_lea.sflag [#allocation5], %s1642_s1  ;;  %s1239_s23 = scalar_lea.vmem %s1682_s18, 64 }
  0xde   : > { %882 = vmatprep.subr.bf16.mxu1 %v1344_v0  ;;  %v843_v29 = vld [vmem:[#allocation11] ss:$0 sm:$0xff]  ;;  %v855_v52 = vld [vmem:[#allocation14] ss:$0 sm:$0xff]  ;;  %p1240_p11 = scmp.ne.s32.totalorder %s1682_s18, %s1239_s23  ;;  %p1759_p0 = scmp.ne.s32.totalorder %s1754_s3, 0 }
  0xdf   : > { %875 = vmatpush3.bf16.msra.mxu0 %v1028_v10  ;;  %s1346_s27 = smov [#allocation15]  }
  0xe0   : > { %p1241_p5 = pnand %p1240_p11, %p1759_p0  ;;  %s1243_s21 = sshll.u32 %s1346_s27, 4  ;;  %s1244_s21 = int_to_ptr.vmem [resolvable:$false] %s1243_s21 }
  0xe1   : > { %883 = vmatpush3.bf16.msra.mxu1 %v1030_v22  ;;  %v640_v45 = vld [vmem:[#allocation2] sm:$0xff]  ;;  %s1245_s12 = scalar_lea.vmem %s1244_s21, 128  ;;  %p1246_p10 = scmp.lt.s32.totalorder %s1682_s18, %s1244_s21 }
  0xe2   : > { %884 = vmatprep.subr.bf16.mxu1 %v1344_v0  ;;  %p1242_p7 = pneg %p1241_p5  ;;  %p1247_p13 = scmp.lt.s32.totalorder %s1245_s12, %s1239_s23 }
  0xe4   : > { %p1248_p2 = por %p1247_p13, %p1246_p10 }
  0xe5   : > { %885 = vmatpush3.bf16.msra.mxu1 %v1031_v23 }
  0xe6   : > { %886 = vmatprep.subr.bf16.mxu1 %v1344_v0  ;;  %p1249_p8 = pnand %p1248_p2, %p1242_p7 }
  0xe9   : > { %887 = vmatpush3.bf16.msra.mxu1 %v1032_v24 }
  0xea   : > { %888 = vmatprep.subr.bf16.mxu1 %v1344_v0 }
  0xed   : > { %889 = vmatpush3.bf16.msra.mxu1 %v1033_v25 }
  0xee   : > { %890 = vmatprep.subr.bf16.mxu1 %v1344_v0 }
  0xf1   : > { %891 = vmatpush3.bf16.msra.mxu1 %v1034_v26 }
  0xf2   : > { %892 = vmatprep.subr.bf16.mxu1 %v1344_v0 }
  0xf5   : > { %893 = vmatpush3.bf16.msra.mxu1 %v1035_v27 }
  0xf6   : > { %894 = vmatprep.subr.bf16.mxu1 %v1344_v0 }
  0xf9   : > { %895 = vmatpush3.bf16.msra.mxu1 %v1036_v28 }
 0x16a   : > { %v428_v4 = vpop.xlane.xlu0 %427 }
 0x16b   : > { %v430_v5 = vmul.f32 0.03125, %v428_v4 }
 0x16d   : > { %v431_v6 = vsub.f32 %v1665_v2, %v430_v5 }
 0x16f   : > { %v432_v7 = vmul.f32 %v431_v6, %v431_v6 }
 0x171   : > { %v433_v8 = vsel %vm425_vm0, %v432_v7, 0.0 }
 0x172   : > { %434 = vadd.xlane.f32.xlu0 %v433_v8 }
 0x1ff   : > { %v435_v12 = vpop.xlane.xlu0 %434 }
 0x200   : > { %v436_v13 = vmul.f32 0.03125, %v435_v12 }
 0x202   : > { %v437_v14 = vadd.f32 1e-05, %v436_v13 }
 0x204   : > { %1037 = vrsqrt.f32 %v437_v14 }
 0x20e   : > { %v1038_v15 = vpop.eup %1037 }
 0x20f   : > { %v439_v17 = vmul.f32 %v1038_v15, %v431_v6 }
 0x211   : > { %v446_v19 = vmul.f32 %v841_v16, %v439_v17 }
 0x213   : > { %v453_v20 = vadd.f32 %v842_v18, %v446_v19 }
 0x215   : > { %v454_v21 = vpack.c.bf16 %v453_v20, %v453_v20 }
 0x217   : > { %877 = vmatmul.mubr.msk.bf16.vlgmr.msra.gmra.mrb[0].mxu0 %vm425_vm0, %v454_v21 }
 0x2ea   : > { %v515_v30 = vpop.f32.mrb[0].mxu0 }
 0x2eb   : > { %v516_v31 = vadd.f32 %v843_v29, %v515_v30  ;;  %v878_v32 = vpop.f32.mrb[1].mxu0 }
 0x2ec   : > { %v518_v33 = vpop.f32.mrb[2].mxu0 }
 0x2ed   : > { %v522_v34 = vmul.f32 0.044715, %v516_v31  ;;  %v879_v35 = vpop.f32.mrb[3].mxu0  ;;  %v521_v41 = vmul.f32 0.5, %v516_v31 }
 0x2ef   : > { %v523_v36 = vmul.f32 %v522_v34, %v516_v31 }
 0x2f1   : > { %v524_v37 = vmul.f32 %v523_v36, %v516_v31 }
 0x2f3   : > { %v525_v38 = vadd.f32 %v524_v37, %v516_v31 }
 0x2f5   : > { %v526_v39 = vmul.f32 0.7978846, %v525_v38 }
 0x2f7   : > { %1039 = vtanh.f32 %v526_v39 }
 0x301   : > { %v1040_v40 = vpop.eup %1039 }
 0x302   : > { %v528_v42 = vadd.f32 1.0, %v1040_v40 }
 0x304   : > { %v529_v43 = vmul.f32 %v528_v42, %v521_v41 }
 0x306   : > { %v530_v44 = vpack.c.bf16 %v529_v43, %v529_v43 }
 0x308   : > { %897 = vmatmul.mubr.bf16.vlgmr.msra.gmra.mrb[0].mxu1 %v530_v44 }
 0x3db   : > { %v629_v46 = vpop.f32.mrb[0].mxu1 }
 0x3dc   : > { %v641_v47 = vadd.f32 %v640_v45, %v629_v46  ;;  %v898_v48 = vpop.f32.mrb[1].mxu1 }
 0x3dd   : > { %v632_v49 = vpop.f32.mrb[2].mxu1 }
 0x3de   : > { %642 = vst.msk [vmem:[#allocation2] sm:$0xff] %vm425_vm0, %v641_v47  ;;  %v899_v50 = vpop.f32.mrb[3].mxu1 }
 0x3e5   : > { %v646_v51 = vld [vmem:[#allocation2] sm:$0xff] }
 0x3e6   : > { %v647_v53 = vadd.f32 %v646_v51, %v1665_v2 }
 0x3e8   : > { %v655_v54 = vadd.f32 %v855_v52, %v647_v53 }
 0x3ea   : > { %v656_v55 = vpack.c.bf16 %v655_v54, %v655_v54 }
 0x3ec   : > { %658 = vst.msk [vmem:[%s418_s9] sm:$0xf] %vm657_vm2, %v656_v55 }
 0x3ed   : > { %1252 = shalt.err (!%p1249_p8)
}
 0x3ee   : > { %s1253_s15 = scalar_lea.hbm %s1680_s14, 64  ;;  %s1257_s10 = scalar_lea.hbm %s1736_s7, 128 }
 0x3ef   : > { %p1254_p9 = scmp.ne.s32.totalorder %s1680_s14, %s1253_s15  ;;  %p1258_p3 = scmp.lt.u32.totalorder %s1680_s14, %s1736_s7 }
 0x3f0   : > { %p1259_p1 = scmp.lt.u32.totalorder %s1257_s10, %s1253_s15  ;;  %p1261_p11 = scmp.lt.u32.totalorder %s1253_s15, %s1680_s14 }
 0x3f1   : > { %p1255_p4 = pnand %p1254_p9, %p1759_p0 }
 0x3f2   : > { %p1260_p12 = por %p1259_p1, %p1258_p3 }
 0x3f3   : > { %p1256_p6 = pneg %p1255_p4 }
 0x3f4   : > { %p1262_p5 = por %p1261_p11, %p1260_p12 }
 0x3f6   : > { %p1263_p7 = pnand %p1262_p5, %p1256_p6 }
 0x3f8   : > { %1266 = shalt.err (!%p1263_p7)
}
 0x3f9   : > { %926 = dma.vmem_to_hbm [thread:$0]  (%p1759_p0), %s1682_s18, 64, %s1680_s14, %s660_s17  }
 0x3fa PF: > { %s686_s9 = sand.u32 1, %s1313_s24   ;;  %p1760_p10 = scmp.ne.s32.totalorder %s1755_s30, 0 }
 0x3fb   : > { %p1761_p13 = scmp.ge.s32.totalorder %s1333_s29, 2  ;;  %s687_s19 = scalar_lea.sflag [#allocation5], %s686_s9 }
 0x3fd   : > { %p952_p2 = pnand %p1761_p13, %p1760_p10 }
 0x3ff   : > { %1308 = dma.done.wait (!%p952_p2), %s687_s19, 64  }
 0x400   : > { %1310 = vsyncadd (!%p952_p2), %s687_s19, 4294967232  ;;  %s26_s29 = sadd.s32 1, %s1333_s29   ;;  %s1762_s24 = smov %s1317_s25 }
 0x401   : > { %p23_p8 = scmp.ge.s32.totalorder %s26_s29, 4   ;;  %s1763_s25 = smov %s1321_s26 }
 0x402   : > { %s1764_s26 = smov %s1592_s20  ;;  %s1765_s27 = smov %s1329_s28 }
 0x403   : > { %s1766_s28 = smov %s1768_s13  ;;  %25 = sbr.rel (!%p23_p8) target bundleno = 12 (0xc), region = 128 }
 0x40a   :  { %692 = vsyncpa [#allocation4], 1 }
 0x40b   :  { %694 = vsyncpa [#allocation4 + $0x1], 1 }
 0x40c   :  { %695 = vsyncpa [#allocation7], 1 }
 0x40d   :  { %696 = vsyncpa [#allocation10], 1 }
 0x40e   :  { %697 = vsyncpa [#allocation13], 1 }
 0x40f   :  { %698 = vsyncpa [#allocation5], 1 }
 0x410   :  { %700 = vsyncpa [#allocation5 + $0x1], 1 }

// kernel: _lambda_.7
= control target key start
LH: loop header
LB: loop body
LE: loop exit
PB: predicated region body
PF: predicated region fallthrough
CT: control target
= control target key end

     0   :  { %12 = vsyncpa [#allocation3], 0  ;;  %s1854_s0 = inlined_call_operand.hbm [shape: bf16[2,8,32], index: 0, kind: input, shape index: {}]   ;;  %s1855_s1 = inlined_call_operand.hbm [shape: f32[1,32], index: 1, kind: input, shape index: {}]   ;;  %s1856_s2 = inlined_call_operand.hbm [shape: f32[1,32], index: 2, kind: input, shape index: {}]   ;;  %s1857_s3 = inlined_call_operand.hbm [shape: bf16[4,32,24], index: 3, kind: input, shape index: {}]   ;;  %s1858_s4 = inlined_call_operand.hbm [shape: bf16[2,4,8,8], index: 4, kind: output, shape index: {0}]   ;;  %s1859_s5 = inlined_call_operand.hbm [shape: bf16[2,4,8,8], index: 5, kind: output, shape index: {1}]   ;;  %s1860_s6 = inlined_call_operand.hbm [shape: bf16[2,4,8,8], index: 6, kind: output, shape index: {2}]  }
   0x1   :  { %14 = vsyncpa [#allocation3 + $0x1], 0 }
   0x2   :  { %15 = vsyncpa [#allocation6], 0 }
   0x3   :  { %16 = vsyncpa [#allocation9], 0 }
   0x4   :  { %17 = vsyncpa [#allocation4], 0 }
   0x5   :  { %19 = vsyncpa [#allocation4 + $0x1], 0 }
   0x6   :  { %20 = vsyncpa [#allocation12], 0 }
   0x7   :  { %22 = vsyncpa [#allocation12 + $0x1], 0  ;;  %s1461_s21 = smov 0   ;;  %s1463_s22 = smov 0  }
   0x8   :  { %s1465_s23 = smov 0   ;;  %s1467_s24 = smov 0  }
   0x9   :  { %s1469_s25 = smov 0   ;;  %s1471_s26 = smov 0  }
   0xa LB: > { %s1492_s27 = sadd.s32 4294967295, %s1409_s26   ;;  %s1864_s28 = sadd.s32 4294967294, %s1409_s26   ;;  %s1409_s26 = sphi %s1471_s26, %s28_s26   ;;  %s1405_s25 = sphi %s1469_s25, %s1891_s25   ;;  %s1401_s24 = sphi %s1467_s24, %s1890_s24   ;;  %s1397_s23 = sphi %s1465_s23, %s1889_s23   ;;  %s1393_s22 = sphi %s1463_s22, %s1888_s22   ;;  %s1389_s21 = sphi %s1461_s21, %s1887_s21  }
   0xb   : > { %p62_p0 = scmp.ne.s32.totalorder %s1393_s22, %s1389_s21  ;;  %p1861_p1 = scmp.eq.s32.totalorder %s1492_s27, 0 }
   0xc   : > { %p157_p3 = scmp.eq.s32.totalorder %s1864_s28, 1  ;;  %p920_p5 = scmp.ge.s32.totalorder %s1409_s26, 1 }
   0xd   : > { %p1503_p4 = por %p1861_p1, %p62_p0  ;;  %p220_p7 = scmp.lt.s32.totalorder %s1409_s26, 3 }
   0xe   : > { %p1508_p6 = por %p157_p3, %p62_p0  ;;  %s1411_s8 = smov [#allocation5]  }
   0xf   : > { %s1868_s29 = scalar_select %p1503_p4, 1, 0 }
  0x10   : > { %s1869_s30 = scalar_select %p1508_p6, 1, 0 }
  0x11   : > { %p1513_p8 = pnand %p920_p5, %p220_p7  ;;  %s233_s9 = sshll.u32 %s1411_s8, 4  ;;  %s234_s9 = int_to_ptr.vmem [resolvable:$true] %s233_s9 }
  0x12   : > { %s1412_s10 = smov [#allocation7]   ;;  %s1413_s13 = smov [#allocation8]  }
  0x13   : > { %s1870_s7 = scalar_select %p1513_p8, 1, 0 }
  0x14   : > { %p1044_p10 = pneg %p1513_p8  ;;  %s244_s11 = sshll.u32 %s1412_s10, 4  ;;  %s1526_s11 = int_to_ptr.vmem [resolvable:$true] %s244_s11 }
  0x15   : > { %s254_s14 = sshll.u32 %s1413_s13, 4  ;;  %s1145_s17 = scalar_lea.hbm %s1855_s1, 16  ;;  %s1528_s14 = int_to_ptr.vmem [resolvable:$true] %s254_s14 }
  0x16   : > { %p1522_p11 = pnand %p1044_p10, %p1861_p1  ;;  %p1146_p12 = scmp.ne.s32.totalorder %s1855_s1, %s1145_s17 }
  0x17   : > { %p1152_p5 = scmp.lt.u32.totalorder %s1145_s17, %s1855_s1 }
  0x18   : > { %p1538_p13 = pneg %p1522_p11 }
  0x1a   : > { %p1148_p0 = pnand %p1538_p13, %p1146_p12 }
  0x1c   : > { %p1149_p3 = pneg %p1148_p0 }
  0x1e   : > { %p1154_p7 = pnand %p1152_p5, %p1149_p3 }
  0x20   : > { %1157 = shalt.err (!%p1154_p7)
}
  0x21   : > { %s1158_s13 = scalar_lea.vmem %s234_s9, 16  ;;  %s1165_s15 = scalar_lea.vmem %s234_s9, 32 }
  0x22   : > { %p1159_p10 = scmp.ne.s32.totalorder %s234_s9, %s1158_s13  ;;  %p1166_p2 = scmp.lt.s32.totalorder %s234_s9, %s234_s9 }
  0x23   : > { %p1167_p6 = scmp.lt.s32.totalorder %s1165_s15, %s1158_s13 }
  0x24   : > { %p1161_p9 = pnand %p1159_p10, %p1538_p13 }
  0x25   : > { %p1168_p4 = por %p1167_p6, %p1166_p2 }
  0x26   : > { %p1162_p1 = pneg %p1161_p9 }
  0x28   : > { %p1169_p8 = pnand %p1168_p4, %p1162_p1 }
  0x2a   : > { %1172 = shalt.err (!%p1169_p8)
}
  0x2b   : > { %1047 = dma.hbm_to_vmem [thread:$0]  (!%p1522_p11), %s1855_s1, 16, %s234_s9, [#allocation6]  }
  0x2c   : > { %s1173_s8 = scalar_lea.hbm %s1856_s2, 16 }
  0x2d   : > { %p1174_p9 = scmp.ne.s32.totalorder %s1856_s2, %s1173_s8  ;;  %p1180_p1 = scmp.lt.u32.totalorder %s1173_s8, %s1856_s2 }
  0x2f   : > { %p1176_p12 = pnand %p1174_p9, %p1538_p13 }
  0x31   : > { %p1177_p2 = pneg %p1176_p12 }
  0x33   : > { %p1182_p4 = pnand %p1180_p1, %p1177_p2 }
  0x35   : > { %1185 = shalt.err (!%p1182_p4)
}
  0x36   : > { %s1186_s9 = scalar_lea.vmem %s1526_s11, 16  ;;  %s1193_s28 = scalar_lea.vmem %s1526_s11, 32 }
  0x37   : > { %p1187_p6 = scmp.ne.s32.totalorder %s1526_s11, %s1186_s9  ;;  %p1194_p3 = scmp.lt.s32.totalorder %s1526_s11, %s1526_s11 }
  0x38   : > { %p1195_p5 = scmp.lt.s32.totalorder %s1193_s28, %s1186_s9 }
  0x39   : > { %p1189_p8 = pnand %p1187_p6, %p1538_p13 }
  0x3a   : > { %p1196_p7 = por %p1195_p5, %p1194_p3 }
  0x3b   : > { %p1190_p0 = pneg %p1189_p8 }
  0x3d   : > { %p1197_p10 = pnand %p1196_p7, %p1190_p0 }
  0x3f   : > { %1200 = shalt.err (!%p1197_p10)
}
  0x40   : > { %1050 = dma.hbm_to_vmem [thread:$0]  (!%p1522_p11), %s1856_s2, 16, %s1526_s11, [#allocation6]  }
  0x41   : > { %s1201_s8 = scalar_lea.hbm %s1857_s3, 1024 }
  0x42   : > { %p1202_p9 = scmp.ne.s32.totalorder %s1857_s3, %s1201_s8  ;;  %p1208_p1 = scmp.lt.u32.totalorder %s1201_s8, %s1857_s3 }
  0x44   : > { %p1204_p12 = pnand %p1202_p9, %p1538_p13 }
  0x46   : > { %p1205_p2 = pneg %p1204_p12 }
  0x48   : > { %p1210_p4 = pnand %p1208_p1, %p1205_p2 }
  0x4a   : > { %1213 = shalt.err (!%p1210_p4)
}
  0x4b   : > { %s1214_s11 = scalar_lea.vmem %s1528_s14, 1024  ;;  %p1222_p3 = scmp.lt.s32.totalorder %s1528_s14, %s1528_s14 }
  0x4c   : > { %p1215_p6 = scmp.ne.s32.totalorder %s1528_s14, %s1214_s11  ;;  %p1223_p5 = scmp.lt.s32.totalorder %s1214_s11, %s1214_s11 }
  0x4e   : > { %p1217_p8 = pnand %p1215_p6, %p1538_p13  ;;  %p1224_p7 = por %p1223_p5, %p1222_p3 }
  0x50   : > { %p1218_p0 = pneg %p1217_p8 }
  0x52   : > { %p1225_p10 = pnand %p1224_p7, %p1218_p0 }
  0x54   : > { %1228 = shalt.err (!%p1225_p10)
}
  0x55   : > { %s1414_s28 = smov 64   ;;  %s1415_s20 = smov 4  }
  0x56   : > { %1053 = dma.hbm_to_vmem [thread:$0]  (!%p1522_p11), %s1857_s3, 1024, %s1528_s14, [#allocation9], %s1414_s28, %s1414_s28, %s1415_s20  }
  0x57   : > { %s49_s17 = sadd.s32 1, %s1397_s23  ;;  %s40_s19 = sadd.s32 1, %s1405_s25 }
  0x58   : > { %p56_p13 = scmp.ne.s32.totalorder %s1397_s23, %s1393_s22  ;;  %p42_p9 = scmp.ge.s32.totalorder %s40_s19, 2 }
  0x59   : > { %p57_p12 = scmp.eq.s32.totalorder %s1409_s26, 0  ;;  %p1873_p2 = scmp.eq.s32.totalorder %s1492_s27, 1 }
  0x5a   : > { %p1071_p4 = scmp.lt.s32.totalorder %s1409_s26, 2  ;;  %s1893_s19 = smov (%p42_p9, %s40_s19), 0 }
  0x5b   : > { %p1608_p1 = por %p1873_p2, %p56_p13  ;;  %p58_p6 = por %p57_p12, %p56_p13 }
  0x5c   : > { %s268_s12 = sand.u32 1, %s1397_s23   ;;  %s44_s10 = ssub.s32 %s1405_s25, %s1893_s19 }
  0x5d   : > { %p47_p8 = scmp.eq.s32.totalorder %s44_s10, 0  ;;  %s925_s14 = sshll.u32 %s268_s12, 2 }
  0x5e   : > { %s926_s13 = sshll.u32 %s1405_s25, 6  ;;  %s272_s20 = scalar_lea.vmem [#allocation2], %s925_s14 }
  0x5f   : > { %s1620_s15 = scalar_select %p47_p8, %s1397_s23, %s49_s17  }
  0x60   : > { %s1625_s28 = scalar_lea.hbm %s1854_s0, %s926_s13  ;;  %s280_s16 = sshll.u32 %s272_s20, 4  ;;  %s1627_s16 = int_to_ptr.vmem [resolvable:$true] %s280_s16 }
  0x61   : > { %p1631_p11 = pnand %p1071_p4, %p58_p6  ;;  %s269_s17 = scalar_lea.sflag [#allocation3], %s268_s12 }
  0x62   : > { %s1229_s10 = scalar_lea.hbm %s1625_s28, 64  ;;  %s1234_s9 = scalar_lea.hbm %s1854_s0, 128 }
  0x63   : > { %p1230_p0 = scmp.ne.s32.totalorder %s1625_s28, %s1229_s10  ;;  %p1231_p3 = pneg %p1631_p11 }
  0x64   : > { %p1235_p10 = scmp.lt.u32.totalorder %s1625_s28, %s1854_s0  ;;  %p1236_p13 = scmp.lt.u32.totalorder %s1234_s9, %s1229_s10 }
  0x65   : > { %p1232_p5 = pnand %p1231_p3, %p1230_p0  ;;  %p1238_p12 = scmp.lt.u32.totalorder %s1229_s10, %s1625_s28 }
  0x66   : > { %p1237_p9 = por %p1236_p13, %p1235_p10 }
  0x67   : > { %p1233_p7 = pneg %p1232_p5 }
  0x68   : > { %p1239_p2 = por %p1238_p12, %p1237_p9 }
  0x6a   : > { %p1240_p4 = pnand %p1239_p2, %p1233_p7 }
  0x6c   : > { %1243 = shalt.err (!%p1240_p4)
}
  0x6d   : > { %s1244_s12 = scalar_lea.vmem %s1627_s16, 64  ;;  %s1416_s14 = smov [#allocation2]  }
  0x6e   : > { %p1245_p6 = scmp.ne.s32.totalorder %s1627_s16, %s1244_s12  ;;  %s1249_s13 = sshll.u32 %s1416_s14, 4  ;;  %s1250_s13 = int_to_ptr.vmem [resolvable:$false] %s1249_s13 }
  0x6f   : > { %s1251_s11 = scalar_lea.vmem %s1250_s13, 128  ;;  %p1252_p5 = scmp.lt.s32.totalorder %s1627_s16, %s1250_s13 }
  0x70   : > { %p1247_p8 = pnand %p1245_p6, %p1231_p3  ;;  %p1253_p10 = scmp.lt.s32.totalorder %s1251_s11, %s1244_s12 }
  0x72   : > { %p1248_p0 = pneg %p1247_p8  ;;  %p1254_p13 = por %p1253_p10, %p1252_p5 }
  0x74   : > { %p1255_p9 = pnand %p1254_p13, %p1248_p0 }
  0x76   : > { %1258 = shalt.err (!%p1255_p9)
}
  0x77   : > { %1057 = dma.hbm_to_vmem [thread:$0]  (!%p1631_p11), %s1625_s28, 64, %s1627_s16, %s269_s17  }
  0x78   : > { %p1876_p7 = scmp.ne.s32.totalorder %s1870_s7, 0 }
  0x79   : > { %s1663_s10 = sand.u32 (!%p1876_p7), 1, %s1393_s22   ;;  %p1877_p3 = scmp.ne.s32.totalorder (!%p1876_p7), %s1868_s29, 0 }
  0x7a   : > { %289 = sbr.rel (%p1876_p7) target bundleno = 852 (0x354), region = 36  ;;  %s928_s9 = sshll.u32 (!%p1876_p7), %s1663_s10, 2 }
  0x7b   : > { %s292_s20 = scalar_lea.sflag (!%p1876_p7), [#allocation3], %s1663_s10  ;;  %s295_s12 = scalar_lea.vmem (!%p1876_p7), [#allocation2], %s928_s9 }
  0x81   : > { %1368 = dma.done.wait (%p1877_p3), %s292_s20, 64  }
  0x82   : > { %1370 = vsyncadd (%p1877_p3), %s292_s20, 4294967232  ;;  %p1878_p12 = scmp.eq.s32.totalorder %s1492_s27, 0 }
  0x84   : > { %1372 = dma.done.wait (%p1878_p12), [#allocation6], 32   ;;  %p1879_p11 = pmov %p1878_p12 }
  0x86   : > { %1374 = vsyncadd (%p1879_p11), [#allocation6], 4294967264  ;;  %p1880_p2 = pmov %p1879_p11 }
  0x88   : > { %1376 = dma.done.wait (%p1880_p2), [#allocation9], 1024   ;;  %p1881_p4 = pmov %p1880_p2 }
  0x89   : > { %vm351_vm0 = vcmask 261120   ;;  %v347_v0 = vld [vmem:[%s295_s12] sm:$0xf]  ;;  %v1135_v8 = vld [vmem:[#allocation8] sm:$0xff]   ;;  %v1417_v10 = vmov 0.0   ;;  %v1137_v11 = vld [vmem:[#allocation8 + $0x8] sm:$0xff]  }
  0x8a   : > { %1378 = vsyncadd (%p1881_p4), [#allocation9], 4294966272  ;;  %v348_v1 = vunpack.c.l.bf16 %v347_v0  ;;  %v1136_v9 = vld [vmem:[#allocation8 + $0x10] sm:$0xff]   ;;  %992 = vmatprep.subr.bf16.mxu0 %v1417_v10  ;;  %1000 = vmatprep.subr.bf16.mxu1 %v1417_v10  ;;  %v1138_v12 = vld [vmem:[#allocation8 + $0x18] sm:$0xff]   ;;  %vm1418_vm1 = vmmov 0   ;;  %s1690_s29 = sshll.u32 %s1663_s10, 4 }
  0x8b   : > { %993 = vmatpush3.bf16.msra.mxu0 %v1135_v8  ;;  %1001 = vmatpush3.bf16.msra.mxu1 %v1136_v9  ;;  %v935_v17 = vld [vmem:[#allocation5] ss:$0 sm:$0xff]  ;;  %v936_v19 = vld [vmem:[#allocation7] ss:$0 sm:$0xff]  ;;  %v1139_v22 = vld [vmem:[#allocation8 + $0x20] sm:$0xff]   ;;  %vm442_vm2 = vcmask 60416  }
  0x8c   : > { %v352_v2 = vsel %vm351_vm0, %v348_v1, 0.0  ;;  %994 = vmatprep.subr.bf16.mxu0 %v1417_v10  ;;  %1002 = vmatprep.subr.bf16.mxu1 %v1417_v10  ;;  %v1140_v23 = vld [vmem:[#allocation8 + $0x30] sm:$0xff]   ;;  %v1141_v25 = vld [vmem:[#allocation8 + $0x28] sm:$0xff]   ;;  %v1142_v26 = vld [vmem:[#allocation8 + $0x38] sm:$0xff]   ;;  %s1865_s7 = smov 120   ;;  %s331_s28 = scalar_lea.vmem [#allocation10], %s1690_s29 }
  0x8d   : > { %353 = vadd.xlane.f32.xlu0 %v352_v2  ;;  %996 = vmatprep.mubr.msk.bf16.mxu0 %vm1418_vm1, %v1417_v10  ;;  %s706_s16 = sshll.u32 %s331_s28, 4  ;;  %s1866_s18 = smov 112   ;;  %s1699_s16 = int_to_ptr.vmem [resolvable:$true] %s706_s16 }
  0x8e   : > { %1004 = vmatprep.mubr.msk.bf16.mxu1 %vm1418_vm1, %v1417_v10  ;;  %s1704_s17 = sshll.u32 %s1401_s24, 8  ;;  %s682_s9 = scalar_lea.sflag [#allocation4], %s1663_s10 }
  0x8f   : > { %995 = vmatpush3.bf16.msra.mxu0 %v1137_v11  ;;  %1003 = vmatpush3.bf16.msra.mxu1 %v1138_v12  ;;  %s1711_s11 = scalar_lea.hbm %s1858_s4, %s1704_s17  ;;  %s1259_s20 = scalar_lea.vmem %s1699_s16, 256 }
  0x90   : > { %1008 = vmatprep.subr.bf16.mxu0 %v1417_v10  ;;  %1016 = vmatprep.subr.bf16.mxu1 %v1417_v10  ;;  %p1260_p6 = scmp.ne.s32.totalorder %s1699_s16, %s1259_s20  ;;  %s1421_s12 = smov [#allocation10]  }
  0x92   : > { %p1261_p8 = pnand %p1260_p6, %p1608_p1 }
  0x94   : > { %p1262_p0 = pneg %p1261_p8 }
 0x11a   : > { %v354_v3 = vpop.xlane.xlu0 %353 }
 0x11b   : > { %v356_v4 = vmul.f32 0.03125, %v354_v3 }
 0x11d   : > { %v357_v5 = vsub.f32 %v348_v1, %v356_v4 }
 0x11f   : > { %v358_v6 = vmul.f32 %v357_v5, %v357_v5 }
 0x121   : > { %v359_v7 = vsel %vm351_vm0, %v358_v6, 0.0 }
 0x122   : > { %360 = vadd.xlane.f32.xlu0 %v359_v7 }
 0x1af   : > { %v361_v13 = vpop.xlane.xlu0 %360 }
 0x1b0   : > { %v362_v14 = vmul.f32 0.03125, %v361_v13 }
 0x1b2   : > { %v363_v15 = vadd.f32 1e-05, %v362_v14 }
 0x1b4   : > { %1143 = vrsqrt.f32 %v363_v15 }
 0x1be   : > { %v1144_v16 = vpop.eup %1143 }
 0x1bf   : > { %v365_v18 = vmul.f32 %v1144_v16, %v357_v5 }
 0x1c1   : > { %v372_v20 = vmul.f32 %v935_v17, %v365_v18 }
 0x1c3   : > { %v379_v21 = vadd.f32 %v936_v19, %v372_v20 }
 0x1c5   : > { %v380_v24 = vpack.c.bf16 %v379_v21, %v379_v21 }
 0x1c7   : > { %997 = vmatmul.mubr.msk.bf16.vlgmr.msra.gmra.mrb[0].mxu0 %vm351_vm0, %v380_v24  ;;  %1005 = vmatmul.mubr.msk.bf16.vlgmr.msra.gmra.mrb[0].mxu1 %vm351_vm0, %v380_v24 }
 0x1c8   : > { %1009 = vmatpush3.bf16.msra.mxu0 %v1139_v22  ;;  %1017 = vmatpush3.bf16.msra.mxu1 %v1140_v23 }
 0x1c9   : > { %1010 = vmatprep.subr.bf16.mxu0 %v1417_v10  ;;  %1018 = vmatprep.subr.bf16.mxu1 %v1417_v10 }
 0x1ca   : > { %1012 = vmatprep.mubr.msk.bf16.mxu0 %vm1418_vm1, %v1417_v10  ;;  %1020 = vmatprep.mubr.msk.bf16.mxu1 %vm1418_vm1, %v1417_v10 }
 0x1cc   : > { %1011 = vmatpush3.bf16.msra.mxu0 %v1141_v25  ;;  %1019 = vmatpush3.bf16.msra.mxu1 %v1142_v26 }
 0x1cf   : > { %1013 = vmatmul.mubr.msk.bf16.vlgmr.msra.gmra.mrb[4].mxu0 %vm351_vm0, %v380_v24  ;;  %1021 = vmatmul.mubr.msk.bf16.vlgmr.msra.gmra.mrb[4].mxu1 %vm351_vm0, %v380_v24 }
 0x29a   : > { %v434_v27 = vpop.f32.mrb[0].mxu0  ;;  %v507_v28 = vpop.f32.mrb[0].mxu1 }
 0x29b   : > { %v440_v29 = vmul.f32 0.35355338, %v434_v27  ;;  %v513_v30 = vmul.f32 0.35355338, %v507_v28  ;;  %v998_v31 = vpop.f32.mrb[1].mxu0  ;;  %v1006_v32 = vpop.f32.mrb[1].mxu1  ;;  %v973_v33 = vpack.c.bf16 %v434_v27, %v434_v27  ;;  %v974_v40 = vpack.c.bf16 %v507_v28, %v507_v28 }
 0x29c   : > { %v437_v34 = vpop.f32.mrb[2].mxu0  ;;  %v510_v35 = vpop.f32.mrb[2].mxu1 }
 0x29d   : > { %v441_v36 = vpack.c.bf16 %v440_v29, %v440_v29  ;;  %v514_v37 = vpack.c.bf16 %v513_v30, %v513_v30  ;;  %v1007_v38 = vpop.f32.mrb[3].mxu1  ;;  %448 = vrot.lane.b32.xlu1 %v973_v33, %s1865_s7  ;;  %v999_v39 = vpop.f32.mrb[3].mxu0 }
 0x29f   : > { %443 = vst.msk [vmem:[%s331_s28] sm:$0xf] %vm442_vm2, %v441_v36  ;;  %944 = vst.msk [vmem:[%s331_s28 + $0x4] sm:$0xf] %vm442_vm2, %v514_v37 }
 0x2a1   : > { %521 = vrot.lane.b32.xlu1 %v974_v40, %s1865_s7 }
 0x2a2   : > { %v582_v41 = vpop.f32.mrb[4].mxu0  ;;  %v657_v42 = vpop.f32.mrb[4].mxu1 }
 0x2a3   : > { %v588_v43 = vmul.f32 0.35355338, %v582_v41  ;;  %v975_v44 = vpack.c.bf16 %v582_v41, %v582_v41  ;;  %v663_v45 = vmul.f32 0.35355338, %v657_v42  ;;  %v1014_v46 = vpop.f32.mrb[5].mxu0  ;;  %v1022_v47 = vpop.f32.mrb[5].mxu1  ;;  %v976_v54 = vpack.c.bf16 %v657_v42, %v657_v42 }
 0x2a4   : > { %v585_v48 = vpop.f32.mrb[6].mxu0  ;;  %v660_v49 = vpop.f32.mrb[6].mxu1 }
 0x2a5   : > { %v589_v50 = vpack.c.bf16 %v588_v43, %v588_v43  ;;  %v664_v51 = vpack.c.bf16 %v663_v45, %v663_v45  ;;  %v1023_v52 = vpop.f32.mrb[7].mxu1  ;;  %452 = vrot.lane.b32.xlu1 %v973_v33, %s1866_s18  ;;  %596 = vrot.lane.b32.xlu0 %v975_v44, %s1865_s7  ;;  %v1015_v53 = vpop.f32.mrb[7].mxu0  ;;  %s1263_s7 = sshll.u32 %s1421_s12, 4  ;;  %s1264_s7 = int_to_ptr.vmem [resolvable:$false] %s1263_s7 }
 0x2a6   : > { %s1265_s24 = scalar_lea.vmem %s1264_s7, 512  ;;  %p1266_p5 = scmp.lt.s32.totalorder %s1699_s16, %s1264_s7 }
 0x2a7   : > { %951 = vst.msk [vmem:[%s331_s28 + $0x8] sm:$0xf] %vm442_vm2, %v589_v50  ;;  %958 = vst.msk [vmem:[%s331_s28 + $0xc] sm:$0xf] %vm442_vm2, %v664_v51  ;;  %p1267_p10 = scmp.lt.s32.totalorder %s1265_s24, %s1259_s20 }
 0x2a9   : > { %526 = vrot.lane.b32.xlu1 %v974_v40, %s1866_s18  ;;  %p1268_p13 = por %p1267_p10, %p1266_p5 }
 0x2ab   : > { %p1269_p9 = pnand %p1268_p13, %p1262_p0 }
 0x2ad   : > { %1272 = shalt.err (!%p1269_p9)
}
 0x2ae   : > { %s1273_s28 = scalar_lea.hbm %s1711_s11, 256  ;;  %s1277_s12 = scalar_lea.hbm %s1858_s4, 512 }
 0x2af   : > { %p1274_p7 = scmp.ne.s32.totalorder %s1711_s11, %s1273_s28  ;;  %p1278_p11 = scmp.lt.u32.totalorder %s1711_s11, %s1858_s4 }
 0x2b0   : > { %p1279_p2 = scmp.lt.u32.totalorder %s1277_s12, %s1273_s28  ;;  %p1281_p6 = scmp.lt.u32.totalorder %s1273_s28, %s1711_s11 }
 0x2b1   : > { %p1275_p3 = pnand %p1274_p7, %p1608_p1 }
 0x2b2   : > { %p1280_p4 = por %p1279_p2, %p1278_p11 }
 0x2b3   : > { %p1276_p12 = pneg %p1275_p3 }
 0x2b4   : > { %p1282_p8 = por %p1281_p6, %p1280_p4 }
 0x2b6   : > { %p1283_p0 = pnand %p1282_p8, %p1276_p12 }
 0x2b8   : > { %1286 = shalt.err (!%p1283_p0)
}
 0x2b9   : > { %s1422_s20 = smov 64   ;;  %s1423_s24 = smov 4  }
 0x2ba   : > { %1038 = dma.vmem_to_hbm [thread:$0]  (%p1608_p1), %s1699_s16, 256, %s1711_s11, %s682_s9, %s1422_s20, %s1422_s20, %s1423_s24  }
 0x2bb   : > { %s1882_s18 = smov 120   ;;  %s1883_s28 = smov 112  }
 0x2bc   : > { %671 = vrot.lane.b32.xlu1 %v976_v54, %s1882_s18  ;;  %s338_s14 = scalar_lea.vmem [#allocation11], %s1690_s29  ;;  %s1747_s10 = scalar_lea.vmem [#allocation13], %s1690_s29 }
 0x2bd   : > { %s723_s16 = sshll.u32 %s338_s14, 4  ;;  %s686_s11 = sand.u32 1, %s1492_s27   ;;  %s1755_s16 = int_to_ptr.vmem [resolvable:$true] %s723_s16 }
 0x2be   : > { %s1761_s29 = scalar_lea.hbm %s1859_s5, %s1704_s17  ;;  %s1764_s12 = scalar_lea.sflag [#allocation12], %s686_s11 }
 0x2bf   : > { %s1287_s7 = scalar_lea.vmem %s1755_s16, 256  ;;  %s1424_s27 = smov [#allocation11]  }
 0x2c0   : > { %601 = vrot.lane.b32.xlu1 %v975_v44, %s1883_s28  ;;  %p1288_p5 = scmp.ne.s32.totalorder %s1755_s16, %s1287_s7  ;;  %s1291_s18 = sshll.u32 %s1424_s27, 4  ;;  %s1292_s18 = int_to_ptr.vmem [resolvable:$false] %s1291_s18 }
 0x2c1   : > { %p1294_p9 = scmp.lt.s32.totalorder %s1755_s16, %s1292_s18 }
 0x2c2   : > { %p1289_p10 = pnand %p1288_p5, %p1608_p1 }
 0x2c4   : > { %676 = vrot.lane.b32.xlu1 %v976_v54, %s1883_s28  ;;  %p1290_p13 = pneg %p1289_p10  ;;  %s1293_s28 = scalar_lea.vmem %s1292_s18, 512 }
 0x2c5   : > { %p1295_p7 = scmp.lt.s32.totalorder %s1293_s28, %s1287_s7 }
 0x2c7   : > { %p1296_p3 = por %p1295_p7, %p1294_p9 }
 0x2c9   : > { %p1297_p12 = pnand %p1296_p3, %p1290_p13 }
 0x30f   : > { %v449_v55 = vpop.permute.xlu1 %448 }
 0x310   : > { %451 = vst.msk [vmem:[%s338_s14] sm:$0xf] %vm442_vm2, %v449_v55 }
 0x313   : > { %v522_v56 = vpop.permute.xlu1 %521 }
 0x314   : > { %946 = vst.msk [vmem:[%s338_s14 + $0x4] sm:$0xf] %vm442_vm2, %v522_v56 }
 0x317   : > { %v453_v57 = vpop.permute.xlu1 %452  ;;  %v597_v58 = vpop.permute.xlu0 %596 }
 0x318   : > { %455 = vst.msk [vmem:[%s1747_s10] sm:$0xf] %vm442_vm2, %v453_v57  ;;  %953 = vst.msk [vmem:[%s338_s14 + $0x8] sm:$0xf] %vm442_vm2, %v597_v58 }
 0x31b   : > { %v527_v59 = vpop.permute.xlu1 %526 }
 0x31c   : > { %947 = vst.msk [vmem:[%s1747_s10 + $0x4] sm:$0xf] %vm442_vm2, %v527_v59 }
 0x32e   : > { %v672_v60 = vpop.permute.xlu1 %671 }
 0x32f   : > { %960 = vst.msk [vmem:[%s338_s14 + $0xc] sm:$0xf] %vm442_vm2, %v672_v60 }
 0x330   : > { %1300 = shalt.err (!%p1297_p12)
}
 0x331   : > { %s1301_s14 = scalar_lea.hbm %s1761_s29, 256  ;;  %s1305_s13 = scalar_lea.hbm %s1859_s5, 512 }
 0x332   : > { %p1302_p11 = scmp.ne.s32.totalorder %s1761_s29, %s1301_s14  ;;  %p1306_p6 = scmp.lt.u32.totalorder %s1761_s29, %s1859_s5 }
 0x333   : > { %p1307_p8 = scmp.lt.u32.totalorder %s1305_s13, %s1301_s14  ;;  %p1309_p5 = scmp.lt.u32.totalorder %s1301_s14, %s1761_s29 }
 0x334   : > { %p1303_p2 = pnand %p1302_p11, %p1608_p1 }
 0x335   : > { %p1308_p0 = por %p1307_p8, %p1306_p6 }
 0x336   : > { %p1304_p4 = pneg %p1303_p2 }
 0x337   : > { %p1310_p10 = por %p1309_p5, %p1308_p0 }
 0x339   : > { %p1311_p13 = pnand %p1310_p10, %p1304_p4 }
 0x33b   : > { %1314 = shalt.err (!%p1311_p13)
}
 0x33c   : > { %1039 = dma.vmem_to_hbm [thread:$0]  (%p1608_p1), %s1755_s16, 256, %s1761_s29, %s1764_s12, %s1422_s20, %s1422_s20, %s1423_s24   ;;  %v602_v61 = vpop.permute.xlu1 %601 }
 0x33d   : > { %s740_s7 = sshll.u32 %s1747_s10, 4  ;;  %954 = vst.msk [vmem:[%s1747_s10 + $0x8] sm:$0xf] %vm442_vm2, %v602_v61  ;;  %s1800_s11 = scalar_lea.hbm %s1860_s6, %s1704_s17  ;;  %s1794_s7 = int_to_ptr.vmem [resolvable:$true] %s740_s7 }
 0x33e   : > { %s1315_s9 = scalar_lea.vmem %s1794_s7, 256  ;;  %s1425_s16 = smov [#allocation13]  }
 0x33f   : > { %p1316_p9 = scmp.ne.s32.totalorder %s1794_s7, %s1315_s9  ;;  %s1319_s29 = sshll.u32 %s1425_s16, 4  ;;  %s1320_s29 = int_to_ptr.vmem [resolvable:$false] %s1319_s29 }
 0x340   : > { %v677_v62 = vpop.permute.xlu1 %676  ;;  %s1321_s13 = scalar_lea.vmem %s1320_s29, 512  ;;  %p1322_p12 = scmp.lt.s32.totalorder %s1794_s7, %s1320_s29 }
 0x341   : > { %961 = vst.msk [vmem:[%s1747_s10 + $0xc] sm:$0xf] %vm442_vm2, %v677_v62  ;;  %p1317_p7 = pnand %p1316_p9, %p1608_p1  ;;  %p1323_p11 = scmp.lt.s32.totalorder %s1321_s13, %s1315_s9 }
 0x343   : > { %p1318_p3 = pneg %p1317_p7  ;;  %p1324_p2 = por %p1323_p11, %p1322_p12 }
 0x345   : > { %p1325_p4 = pnand %p1324_p2, %p1318_p3 }
 0x347   : > { %1328 = shalt.err (!%p1325_p4)
}
 0x348   : > { %s1329_s17 = scalar_lea.hbm %s1800_s11, 256  ;;  %s1333_s18 = scalar_lea.hbm %s1860_s6, 512 }
 0x349   : > { %p1330_p6 = scmp.ne.s32.totalorder %s1800_s11, %s1329_s17  ;;  %p1334_p5 = scmp.lt.u32.totalorder %s1800_s11, %s1860_s6 }
 0x34a   : > { %p1335_p10 = scmp.lt.u32.totalorder %s1333_s18, %s1329_s17  ;;  %p1337_p9 = scmp.lt.u32.totalorder %s1329_s17, %s1800_s11 }
 0x34b   : > { %p1331_p8 = pnand %p1330_p6, %p1608_p1 }
 0x34c   : > { %p1336_p13 = por %p1335_p10, %p1334_p5 }
 0x34d   : > { %p1332_p0 = pneg %p1331_p8 }
 0x34e   : > { %p1338_p7 = por %p1337_p9, %p1336_p13 }
 0x350   : > { %p1339_p3 = pnand %p1338_p7, %p1332_p0 }
 0x352   : > { %1342 = shalt.err (!%p1339_p3)
}
 0x353   : > { %1040 = dma.vmem_to_hbm [thread:$0]  (%p1608_p1), %s1794_s7, 256, %s1800_s11, %s1764_s12, %s1422_s20, %s1422_s20, %s1423_s24  }
 0x354 PF: > { %s755_s9 = sand.u32 1, %s1389_s21   ;;  %p1884_p12 = scmp.ne.s32.totalorder %s1869_s30, 0 }
 0x355   : > { %p1885_p11 = scmp.ge.s32.totalorder %s1409_s26, 2  ;;  %s756_s16 = scalar_lea.sflag [#allocation4], %s755_s9 }
 0x357   : > { %p1059_p2 = pnand %p1885_p11, %p1884_p12 }
 0x359   : > { %1380 = dma.done.wait (!%p1059_p2), %s756_s16, 256  }
 0x35a   : > { %1382 = vsyncadd (!%p1059_p2), %s756_s16, 4294967040  ;;  %s1886_s8 = sadd.s32 4294967294, %s1409_s26  }
 0x35b   : > { %s764_s29 = sand.u32 1, %s1886_s8  }
 0x35c   : > { %s765_s13 = scalar_lea.sflag [#allocation12], %s764_s29 }
 0x35d   : > { %1384 = dma.done.wait (!%p1059_p2), %s765_s13, 512  }
 0x35e   : > { %1386 = vsyncadd (!%p1059_p2), %s765_s13, 4294966784  ;;  %s28_s26 = sadd.s32 1, %s1409_s26   ;;  %s1887_s21 = smov %s1393_s22 }
 0x35f   : > { %p25_p1 = scmp.ge.s32.totalorder %s28_s26, 4   ;;  %s1888_s22 = smov %s1397_s23 }
 0x360   : > { %s1889_s23 = smov %s1620_s15  ;;  %s1890_s24 = smov %s1405_s25 }
 0x361   : > { %s1891_s25 = smov %s1893_s19  ;;  %27 = sbr.rel (!%p25_p1) target bundleno = 10 (0xa), region = 137 }
 0x368   :  { %779 = vsyncpa [#allocation3], 1 }
 0x369   :  { %781 = vsyncpa [#allocation3 + $0x1], 1 }
 0x36a   :  { %782 = vsyncpa [#allocation6], 1 }
 0x36b   :  { %783 = vsyncpa [#allocation9], 1 }
 0x36c   :  { %784 = vsyncpa [#allocation4], 1 }
 0x36d   :  { %786 = vsyncpa [#allocation4 + $0x1], 1 }
 0x36e   :  { %787 = vsyncpa [#allocation12], 1 }
 0x36f   :  { %789 = vsyncpa [#allocation12 + $0x1], 1 }

// kernel: _lambda_.8
= control target key start
LH: loop header
LB: loop body
LE: loop exit
PB: predicated region body
PF: predicated region fallthrough
CT: control target
= control target key end

     0   :  { %s2989_s0 = inlined_call_operand.hbm [shape: bf16[2,8,32], index: 0, kind: input, shape index: {}]   ;;  %s2990_s1 = inlined_call_operand.hbm [shape: bf16[2,4,8,8], index: 1, kind: input, shape index: {}]   ;;  %s2991_s2 = inlined_call_operand.hbm [shape: bf16[2,4,8,8], index: 2, kind: input, shape index: {}]   ;;  %s2992_s3 = inlined_call_operand.hbm [shape: bf16[2,4,8,8], index: 3, kind: input, shape index: {}]   ;;  %s2993_s4 = inlined_call_operand.hbm [shape: bf16[32,32], index: 4, kind: input, shape index: {}]   ;;  %s2994_s5 = inlined_call_operand.hbm [shape: f32[1,32], index: 5, kind: input, shape index: {}]   ;;  %s2995_s6 = inlined_call_operand.hbm [shape: bf16[2,8,32], index: 6, kind: output, shape index: {}]  }
   0x1   :  { %3019 = sst [smem:[#allocation31_spill]] %s2990_s1 }
   0x2   :  { %3020 = sst [smem:[#allocation32_spill]] %s2993_s4 }
   0x3   :  { %3021 = sst [smem:[#allocation33_spill]] %s2995_s6 }
   0x4   :  { %11 = vsyncpa [#allocation7], 0 }
   0x5   :  { %13 = vsyncpa [#allocation7 + $0x1], 0 }
   0x6   :  { %14 = vsyncpa [#allocation10], 0 }
   0x7   :  { %16 = vsyncpa [#allocation10 + $0x1], 0 }
   0x8   :  { %17 = vsyncpa [#allocation13], 0 }
   0x9   :  { %19 = vsyncpa [#allocation13 + $0x1], 0 }
   0xa   :  { %20 = vsyncpa [#allocation16], 0 }
   0xb   :  { %21 = vsyncpa [#allocation8], 0 }
   0xc   :  { %23 = vsyncpa [#allocation8 + $0x1], 0  ;;  %s2446_s21 = smov 0   ;;  %s2448_s22 = smov 0  }
   0xd   :  { %s2450_s23 = smov 0   ;;  %s2452_s24 = smov 0  }
   0xe   :  { %s2454_s25 = smov 0   ;;  %s2456_s26 = smov 0  }
   0xf LB: > { %3022 = sst [smem:[#allocation24_spill]] %s2373_s21  ;;  %s2477_s27 = sadd.s32 4294967295, %s2393_s26   ;;  %s2393_s26 = sphi %s2456_s26, %s29_s26   ;;  %s2389_s25 = sphi %s2454_s25, %s3070_s25   ;;  %s2385_s24 = sphi %s2452_s24, %s3069_s24   ;;  %s2381_s23 = sphi %s2450_s23, %s3065_s23   ;;  %s2377_s22 = sphi %s2448_s22, %s3068_s22   ;;  %s2373_s21 = sphi %s2446_s21, %s3067_s21  }
  0x10   : > { %3023 = sst [smem:[#allocation25_spill]] %s2381_s23  ;;  %s1858_s28 = sadd.s32 4294967294, %s2393_s26  }
  0x11   : > { %3024 = sst [smem:[#allocation26_spill]] %s2385_s24  ;;  %p64_p0 = scmp.ne.s32.totalorder %s2381_s23, %s2377_s22 }
  0x12   : > { %p65_p1 = scmp.eq.s32.totalorder %s2393_s26, 0  ;;  %p70_p2 = scmp.ne.s32.totalorder %s2377_s22, %s2373_s21 }
  0x13   : > { %p2996_p3 = scmp.eq.s32.totalorder %s2477_s27, 0  ;;  %p230_p4 = scmp.eq.s32.totalorder %s2477_s27, 1 }
  0x14   : > { %p2488_p5 = por %p65_p1, %p64_p0  ;;  %p236_p6 = scmp.eq.s32.totalorder %s1858_s28, 1 }
  0x15   : > { %p2494_p7 = por %p2996_p3, %p70_p2  ;;  %p2498_p8 = por %p230_p4, %p64_p0 }
  0x16   : > { %p2502_p9 = por %p236_p6, %p70_p2  ;;  %p1859_p10 = scmp.ge.s32.totalorder %s2393_s26, 1 }
  0x17   : > { %s3026_s7 = scalar_select %p2494_p7, 1, 0 }
  0x18   : > { %s3027_s8 = scalar_select %p2498_p8, 1, 0 }
  0x19   : > { %s3029_s9 = scalar_select %p2502_p9, 1, 0 }
  0x1a   : > { %3028 = sst [smem:[#allocation27_spill]] %s3027_s8  ;;  %p243_p11 = scmp.lt.s32.totalorder %s2393_s26, 3 }
  0x1b   : > { %3030 = sst [smem:[#allocation28_spill]] %s3029_s9  ;;  %s2395_s11 = smov [#allocation14]  }
  0x1c   : > { %p2508_p12 = pnand %p1859_p10, %p243_p11  ;;  %s255_s12 = sshll.u32 %s2395_s11, 4  ;;  %s2512_s12 = int_to_ptr.vmem [resolvable:$true] %s255_s12 }
  0x1d   : > { %s48_s14 = sadd.s32 1, %s2389_s25  ;;  %s2526_s15 = sand.u32 1, %s2381_s23  }
  0x1e   : > { %s3031_s10 = scalar_select %p2508_p12, 1, 0 }
  0x1f   : > { %p2002_p13 = pneg %p2508_p12  ;;  %p2528_p4 = scmp.ge.s32.totalorder %s48_s14, 2 }
  0x20   : > { %s3034_s4 = sld [smem:[#allocation32_spill]] }
  0x21   : > { %p2520_p2 = pnand %p2002_p13, %p2996_p3 }
  0x23   : > { %s3032_s13 = scalar_select %p2520_p2, 1, 0 }
  0x24   : > { %p3008_p10 = pneg %p2520_p2 }
  0x26   : > { %s2119_s19 = scalar_lea.hbm %s3034_s4, 256 }
  0x27   : > { %p2120_p6 = scmp.ne.s32.totalorder %s3034_s4, %s2119_s19  ;;  %p2126_p0 = scmp.lt.u32.totalorder %s2119_s19, %s3034_s4 }
  0x29   : > { %p2122_p11 = pnand %p3008_p10, %p2120_p6 }
  0x2b   : > { %p2123_p13 = pneg %p2122_p11 }
  0x2d   : > { %p2128_p3 = pnand %p2126_p0, %p2123_p13 }
  0x2f   : > { %2131 = shalt.err (!%p2128_p3)
}
  0x30   : > { %s2132_s17 = scalar_lea.vmem %s2512_s12, 256  ;;  %p2140_p7 = scmp.lt.s32.totalorder %s2512_s12, %s2512_s12 }
  0x31   : > { %p2133_p1 = scmp.ne.s32.totalorder %s2512_s12, %s2132_s17  ;;  %p2141_p6 = scmp.lt.s32.totalorder %s2132_s17, %s2132_s17 }
  0x33   : > { %p2135_p9 = pnand %p2133_p1, %p3008_p10  ;;  %p2142_p11 = por %p2141_p6, %p2140_p7 }
  0x35   : > { %p2136_p8 = pneg %p2135_p9 }
  0x37   : > { %p2143_p12 = pnand %p2142_p11, %p2136_p8 }
  0x39   : > { %2146 = shalt.err (!%p2143_p12)
}
  0x3a   : > { %s3002_s29 = smov 64   ;;  %s3004_s18 = smov 4  }
  0x3b   : > { %2005 = dma.hbm_to_vmem [thread:$0]  (!%p2520_p2), %s3034_s4, 256, %s2512_s12, [#allocation13], %s3002_s29, %s3002_s29, %s3004_s18  }
  0x3c   : > { %s3072_s14 = smov (%p2528_p4, %s48_s14), 0  ;;  %p3036_p3 = scmp.lt.s32.totalorder %s2393_s26, 2 }
  0x3d   : > { %3035 = sst [smem:[#allocation29_spill]] %s3072_s14  ;;  %s3007_s11 = sand.u32 1, %s2393_s26  }
  0x3e   : > { %p2570_p7 = pnand %p3036_p3, %p2488_p5  ;;  %s52_s17 = ssub.s32 %s2389_s25, %s3072_s14 }
  0x3f   : > { %p55_p8 = scmp.eq.s32.totalorder %s52_s17, 0  ;;  %s2578_s9 = sshll.u32 %s2526_s15, 4 }
  0x40   : > { %s3037_s28 = scalar_select %p2570_p7, 1, 0 }
  0x41   : > { %s2581_s21 = sshll.u32 %s2389_s25, 8  ;;  %s3038_s12 = sadd.s32 1, %s2381_s23 }
  0x42   : > { %s2586_s16 = scalar_select %p55_p8, %s2381_s23, %s3038_s12  }
  0x43   : > { %s3040_s1 = sld [smem:[#allocation31_spill]]  ;;  %s303_s29 = scalar_lea.vmem [#allocation9], %s2578_s9 }
  0x44   : > { %3039 = sst [smem:[#allocation30_spill]] %s2586_s16  ;;  %s311_s17 = sshll.u32 %s303_s29, 4  ;;  %s2595_s17 = int_to_ptr.vmem [resolvable:$true] %s311_s17 }
  0x45   : > { %s2599_s18 = scalar_lea.sflag [#allocation10], %s3007_s11  ;;  %p2605_p9 = pneg %p2570_p7 }
  0x47   : > { %s3041_s12 = scalar_select %p2605_p9, 1, 0 }
  0x49   : > { %s2592_s20 = scalar_lea.hbm %s3040_s1, %s2581_s21  ;;  %s2152_s29 = scalar_lea.hbm %s3040_s1, 512 }
  0x4a   : > { %s2147_s4 = scalar_lea.hbm %s2592_s20, 256  ;;  %p2153_p1 = scmp.lt.u32.totalorder %s2592_s20, %s3040_s1 }
  0x4b   : > { %p2148_p5 = scmp.ne.s32.totalorder %s2592_s20, %s2147_s4  ;;  %p2154_p4 = scmp.lt.u32.totalorder %s2152_s29, %s2147_s4 }
  0x4c   : > { %p2156_p6 = scmp.lt.u32.totalorder %s2147_s4, %s2592_s20 }
  0x4d   : > { %p2150_p12 = pnand %p2605_p9, %p2148_p5  ;;  %p2155_p13 = por %p2154_p4, %p2153_p1 }
  0x4f   : > { %p2151_p0 = pneg %p2150_p12  ;;  %p2157_p11 = por %p2156_p6, %p2155_p13 }
  0x51   : > { %p2158_p3 = pnand %p2157_p11, %p2151_p0 }
  0x53   : > { %2161 = shalt.err (!%p2158_p3)
}
  0x54   : > { %s2162_s11 = scalar_lea.vmem %s2595_s17, 256  ;;  %s2398_s30 = smov [#allocation9]  }
  0x55   : > { %p2163_p8 = scmp.ne.s32.totalorder %s2595_s17, %s2162_s11  ;;  %s2167_s19 = sshll.u32 %s2398_s30, 4  ;;  %s2168_s19 = int_to_ptr.vmem [resolvable:$false] %s2167_s19 }
  0x56   : > { %s2169_s14 = scalar_lea.vmem %s2168_s19, 512  ;;  %p2170_p10 = scmp.lt.s32.totalorder %s2595_s17, %s2168_s19 }
  0x57   : > { %p2165_p5 = pnand %p2163_p8, %p2605_p9  ;;  %p2171_p2 = scmp.lt.s32.totalorder %s2169_s14, %s2162_s11 }
  0x59   : > { %p2166_p12 = pneg %p2165_p5  ;;  %p2172_p1 = por %p2171_p2, %p2170_p10 }
  0x5b   : > { %p2173_p4 = pnand %p2172_p1, %p2166_p12 }
  0x5d   : > { %2176 = shalt.err (!%p2173_p4)
}
  0x5e   : > { %s3042_s4 = smov 4   ;;  %s3043_s16 = smov 64  }
  0x5f   : > { %2015 = dma.hbm_to_vmem [thread:$0]  (!%p2570_p7), %s2592_s20, 256, %s2595_s17, %s2599_s18, %s3043_s16, %s3043_s16, %s3042_s4  }
  0x60   : > { %s2399_s29 = smov [#allocation15]   ;;  %s1863_s1 = sshll.u32 %s2526_s15, 2 }
  0x61   : > { %s269_s30 = sshll.u32 %s2399_s29, 4  ;;  %s2177_s14 = scalar_lea.hbm %s2994_s5, 16  ;;  %s270_s30 = int_to_ptr.vmem [resolvable:$true] %s269_s30 }
  0x62   : > { %p2178_p2 = scmp.ne.s32.totalorder %s2994_s5, %s2177_s14  ;;  %p3044_p10 = scmp.ne.s32.totalorder %s3032_s13, 0 }
  0x63   : > { %p2184_p11 = scmp.lt.u32.totalorder %s2177_s14, %s2994_s5 }
  0x64   : > { %p3045_p0 = pneg %p3044_p10 }
  0x66   : > { %p2180_p13 = pnand %p2178_p2, %p3045_p0 }
  0x68   : > { %p2181_p6 = pneg %p2180_p13 }
  0x6a   : > { %p2186_p3 = pnand %p2184_p11, %p2181_p6 }
  0x6c   : > { %2189 = shalt.err (!%p2186_p3)
}
  0x6d   : > { %s2190_s20 = scalar_lea.vmem %s270_s30, 16  ;;  %p3046_p5 = pmov %p3045_p0 }
  0x6e   : > { %p2191_p8 = scmp.ne.s32.totalorder %s270_s30, %s2190_s20  ;;  %s2197_s17 = scalar_lea.vmem %s270_s30, 32 }
  0x6f   : > { %p2198_p4 = scmp.lt.s32.totalorder %s270_s30, %s270_s30  ;;  %p2199_p7 = scmp.lt.s32.totalorder %s2197_s17, %s2190_s20 }
  0x70   : > { %p2193_p12 = pnand %p2191_p8, %p3046_p5 }
  0x71   : > { %p2200_p9 = por %p2199_p7, %p2198_p4 }
  0x72   : > { %p2194_p1 = pneg %p2193_p12 }
  0x74   : > { %p2201_p0 = pnand %p2200_p9, %p2194_p1 }
  0x76   : > { %2204 = shalt.err (!%p2201_p0)
}
  0x77   : > { %2008 = dma.hbm_to_vmem [thread:$0]  (!%p3044_p10), %s2994_s5, 16, %s270_s30, [#allocation16]  }
  0x78   : > { %s1864_s24 = sshll.u32 %s2389_s25, 6  ;;  %s284_s11 = scalar_lea.vmem [#allocation6], %s1863_s1 }
  0x79   : > { %s2657_s19 = scalar_lea.hbm %s2989_s0, %s1864_s24  ;;  %s292_s14 = sshll.u32 %s284_s11, 4  ;;  %s293_s14 = int_to_ptr.vmem [resolvable:$true] %s292_s14 }
  0x7a   : > { %s281_s13 = scalar_lea.sflag [#allocation7], %s2526_s15  ;;  %s2205_s20 = scalar_lea.hbm %s2657_s19, 64 }
  0x7b   : > { %p2206_p7 = scmp.ne.s32.totalorder %s2657_s19, %s2205_s20  ;;  %p3047_p9 = scmp.ne.s32.totalorder %s3041_s12, 0 }
  0x7c   : > { %s2210_s6 = scalar_lea.hbm %s2989_s0, 128  ;;  %p2211_p10 = scmp.lt.u32.totalorder %s2657_s19, %s2989_s0 }
  0x7d   : > { %p2208_p2 = pnand %p2206_p7, %p3047_p9  ;;  %p2212_p6 = scmp.lt.u32.totalorder %s2210_s6, %s2205_s20 }
  0x7e   : > { %p2214_p3 = scmp.lt.u32.totalorder %s2205_s20, %s2657_s19 }
  0x7f   : > { %p2209_p13 = pneg %p2208_p2  ;;  %p2213_p11 = por %p2212_p6, %p2211_p10 }
  0x81   : > { %p2215_p8 = por %p2214_p3, %p2213_p11 }
  0x83   : > { %p2216_p5 = pnand %p2215_p8, %p2209_p13 }
  0x85   : > { %2219 = shalt.err (!%p2216_p5)
}
  0x86   : > { %s2220_s1 = scalar_lea.vmem %s293_s14, 64  ;;  %s2400_s15 = smov [#allocation6]  }
  0x87   : > { %p2221_p12 = scmp.ne.s32.totalorder %s293_s14, %s2220_s1  ;;  %s2225_s8 = sshll.u32 %s2400_s15, 4  ;;  %s2226_s8 = int_to_ptr.vmem [resolvable:$false] %s2225_s8 }
  0x88   : > { %s2227_s29 = scalar_lea.vmem %s2226_s8, 128  ;;  %p2228_p0 = scmp.lt.s32.totalorder %s293_s14, %s2226_s8 }
  0x89   : > { %p2223_p1 = pnand %p2221_p12, %p3047_p9  ;;  %p2229_p7 = scmp.lt.s32.totalorder %s2227_s29, %s2220_s1 }
  0x8b   : > { %p2224_p4 = pneg %p2223_p1  ;;  %p2230_p2 = por %p2229_p7, %p2228_p0 }
  0x8d   : > { %p2231_p6 = pnand %p2230_p2, %p2224_p4 }
  0x8f   : > { %2234 = shalt.err (!%p2231_p6)
}
  0x90   : > { %p3048_p10 = scmp.ne.s32.totalorder %s3037_s28, 0  ;;  %s2681_s30 = scalar_lea.hbm %s2991_s2, %s2581_s21 }
  0x91   : > { %s325_s17 = scalar_lea.vmem [#allocation11], %s2578_s9  ;;  %s2235_s23 = scalar_lea.hbm %s2681_s30, 256 }
  0x92   : > { %2012 = dma.hbm_to_vmem [thread:$0]  (!%p3048_p10), %s2657_s19, 64, %s293_s14, %s281_s13  }
  0x93   : > { %s335_s6 = sshll.u32 %s325_s17, 4  ;;  %p2236_p13 = scmp.ne.s32.totalorder %s2681_s30, %s2235_s23  ;;  %s2684_s6 = int_to_ptr.vmem [resolvable:$true] %s335_s6 }
  0x94   : > { %s2240_s14 = scalar_lea.hbm %s2991_s2, 512  ;;  %p2241_p8 = scmp.lt.u32.totalorder %s2681_s30, %s2991_s2 }
  0x95   : > { %p2238_p11 = pnand %p2236_p13, %p3047_p9  ;;  %p2242_p5 = scmp.lt.u32.totalorder %s2240_s14, %s2235_s23 }
  0x96   : > { %p2244_p1 = scmp.lt.u32.totalorder %s2235_s23, %s2681_s30 }
  0x97   : > { %p2239_p3 = pneg %p2238_p11  ;;  %p2243_p12 = por %p2242_p5, %p2241_p8 }
  0x99   : > { %p2245_p4 = por %p2244_p1, %p2243_p12 }
  0x9b   : > { %p2246_p0 = pnand %p2245_p4, %p2239_p3 }
  0x9d   : > { %2249 = shalt.err (!%p2246_p0)
}
  0x9e   : > { %s2250_s15 = scalar_lea.vmem %s2684_s6, 256  ;;  %s2401_s8 = smov [#allocation11]  }
  0x9f   : > { %p2251_p7 = scmp.ne.s32.totalorder %s2684_s6, %s2250_s15  ;;  %s2255_s29 = sshll.u32 %s2401_s8, 4  ;;  %s2256_s29 = int_to_ptr.vmem [resolvable:$false] %s2255_s29 }
  0xa0   : > { %s2257_s11 = scalar_lea.vmem %s2256_s29, 512  ;;  %p2258_p13 = scmp.lt.s32.totalorder %s2684_s6, %s2256_s29 }
  0xa1   : > { %p2253_p2 = pnand %p2251_p7, %p3047_p9  ;;  %p2259_p11 = scmp.lt.s32.totalorder %s2257_s11, %s2250_s15 }
  0xa3   : > { %p2254_p6 = pneg %p2253_p2  ;;  %p2260_p8 = por %p2259_p11, %p2258_p13 }
  0xa5   : > { %p2261_p5 = pnand %p2260_p8, %p2254_p6 }
  0xa7   : > { %2264 = shalt.err (!%p2261_p5)
}
  0xa8   : > { %2018 = dma.hbm_to_vmem [thread:$0]  (!%p3048_p10), %s2681_s30, 256, %s2684_s6, %s2599_s18, %s3043_s16, %s3043_s16, %s3042_s4  }
  0xa9   : > { %s2715_s23 = scalar_lea.hbm %s2992_s3, %s2581_s21  ;;  %s349_s24 = scalar_lea.vmem [#allocation12], %s2578_s9 }
  0xaa   : > { %s359_s19 = sshll.u32 %s349_s24, 4  ;;  %s3049_s14 = sand.u32 1, %s2393_s26   ;;  %s2718_s19 = int_to_ptr.vmem [resolvable:$true] %s359_s19 }
  0xab   : > { %s2722_s13 = scalar_lea.sflag [#allocation13], %s3049_s14  ;;  %s2265_s1 = scalar_lea.hbm %s2715_s23, 256 }
  0xac   : > { %p2266_p3 = scmp.ne.s32.totalorder %s2715_s23, %s2265_s1  ;;  %s2270_s21 = scalar_lea.hbm %s2992_s3, 512 }
  0xad   : > { %p2271_p4 = scmp.lt.u32.totalorder %s2715_s23, %s2992_s3  ;;  %p2272_p0 = scmp.lt.u32.totalorder %s2270_s21, %s2265_s1 }
  0xae   : > { %p2268_p12 = pnand %p2266_p3, %p3047_p9  ;;  %p2274_p2 = scmp.lt.u32.totalorder %s2265_s1, %s2715_s23 }
  0xaf   : > { %p2273_p7 = por %p2272_p0, %p2271_p4 }
  0xb0   : > { %p2269_p1 = pneg %p2268_p12 }
  0xb1   : > { %p2275_p6 = por %p2274_p2, %p2273_p7 }
  0xb3   : > { %p2276_p13 = pnand %p2275_p6, %p2269_p1 }
  0xb5   : > { %2279 = shalt.err (!%p2276_p13)
}
  0xb6   : > { %s2280_s9 = scalar_lea.vmem %s2718_s19, 256  ;;  %s2402_s8 = smov [#allocation12]  }
  0xb7   : > { %p2281_p11 = scmp.ne.s32.totalorder %s2718_s19, %s2280_s9  ;;  %s2285_s29 = sshll.u32 %s2402_s8, 4  ;;  %s2286_s29 = int_to_ptr.vmem [resolvable:$false] %s2285_s29 }
  0xb8   : > { %s2287_s11 = scalar_lea.vmem %s2286_s29, 512  ;;  %p2288_p3 = scmp.lt.s32.totalorder %s2718_s19, %s2286_s29 }
  0xb9   : > { %p2283_p8 = pnand %p2281_p11, %p3047_p9  ;;  %p2289_p12 = scmp.lt.s32.totalorder %s2287_s11, %s2280_s9 }
  0xbb   : > { %p2284_p5 = pneg %p2283_p8  ;;  %p2290_p4 = por %p2289_p12, %p2288_p3 }
  0xbd   : > { %p2291_p0 = pnand %p2290_p4, %p2284_p5 }
  0xbf   : > { %2294 = shalt.err (!%p2291_p0)
}
  0xc0   : > { %2021 = dma.hbm_to_vmem [thread:$0]  (!%p3048_p10), %s2715_s23, 256, %s2718_s19, %s2722_s13, %s3043_s16, %s3043_s16, %s3042_s4  }
  0xc1   : > { %p3050_p9 = scmp.ne.s32.totalorder %s3031_s10, 0 }
  0xc2   : > { %s2752_s12 = sand.u32 (!%p3050_p9), 1, %s2377_s22   ;;  %p3051_p1 = scmp.ne.s32.totalorder (!%p3050_p9), %s3026_s7, 0 }
  0xc3   : > { %371 = sbr.rel (%p3050_p9) target bundleno = 1390 (0x56e), region = 44  ;;  %s1875_s20 = sshll.u32 (!%p3050_p9), %s2752_s12, 2 }
  0xc4   : > { %s374_s17 = scalar_lea.sflag (!%p3050_p9), [#allocation7], %s2752_s12  ;;  %s2758_s28 = scalar_lea.vmem (!%p3050_p9), [#allocation6], %s1875_s20 }
  0xca   : > { %2348 = dma.done.wait (%p3051_p1), %s374_s17, 64  }
  0xcb   : > { %2350 = vsyncadd (%p3051_p1), %s374_s17, 4294967232  ;;  %s382_s10 = sand.u32 1, %s2477_s27   ;;  %s1876_s4 = sshll.u32 %s2752_s12, 4 }
  0xcc   : > { %s383_s16 = scalar_lea.sflag [#allocation10], %s382_s10  ;;  %s2766_s23 = scalar_lea.vmem [#allocation9], %s1876_s4 }
  0xcd   : > { %2352 = dma.done.wait (%p3051_p1), %s383_s16, 512  }
  0xce   : > { %2354 = vsyncadd (%p3051_p1), %s383_s16, 4294966784  ;;  %s395_s24 = scalar_lea.vmem [#allocation11], %s1876_s4  ;;  %s401_s19 = scalar_lea.sflag [#allocation13], %s382_s10 }
  0xcf   : > { %s2772_s14 = scalar_lea.vmem [#allocation12], %s1876_s4 }
  0xd0   : > { %2356 = dma.done.wait (%p3051_p1), %s401_s19, 256  }
  0xd1   : > { %2358 = vsyncadd (%p3051_p1), %s401_s19, 4294967040  ;;  %p3052_p10 = scmp.eq.s32.totalorder %s2477_s27, 0 }
  0xd3   : > { %2360 = dma.done.wait (%p3052_p10), [#allocation13], 256   ;;  %p3053_p7 = pmov %p3052_p10 }
  0xd5   : > { %2362 = vsyncadd (%p3053_p7), [#allocation13], 4294967040  ;;  %p3054_p2 = pmov %p3053_p7 }
  0xd7   : > { %2364 = dma.done.wait (%p3054_p2), [#allocation16], 16   ;;  %p3055_p6 = pmov %p3054_p2 }
  0xd8   : > { %vm474_vm0 = vcmask 64512   ;;  %v2403_v0 = vmov 0.0   ;;  %vm2404_vm1 = vmmov 0   ;;  %v1010_v1 = vld [vmem:[%s395_s24] sm:$0xf]  ;;  %vm465_vm2 = vcmask 7168  }
  0xd9   : > { %2366 = vsyncadd (%p3055_p6), [#allocation16], 4294967280  ;;  %1928 = vmatprep.subr.bf16.mxu0 %v2403_v0  ;;  %475 = vst.msk [vmem:[#allocation4] sm:$0xff] %vm474_vm0, %v2403_v0  ;;  %1934 = vmatprep.subr.bf16.mxu1 %v2403_v0  ;;  %v1011_v2 = vld [vmem:[%s395_s24 + $0x4] sm:$0xf]  ;;  %v1023_v3 = vsel %vm474_vm0, %v1010_v1, 0  ;;  %v1203_v14 = vlaneseq }
  0xda   : > { %476 = vst.msk [vmem:[#allocation4 + $0x8] sm:$0xff] %vm474_vm0, %v2403_v0  ;;  %477 = vst.msk [vmem:[#allocation4 + $0x10] sm:$0xff] %vm474_vm0, %v2403_v0  ;;  %1930 = vmatprep.mubr.msk.bf16.mxu0 %vm2404_vm1, %v2403_v0  ;;  %1936 = vmatprep.mubr.msk.bf16.mxu1 %vm2404_vm1, %v2403_v0  ;;  %v1069_v4 = vsel %vm474_vm0, %v1011_v2, 0  ;;  %v1012_v5 = vld [vmem:[%s395_s24 + $0x8] sm:$0xf]  ;;  %v2406_v41 = vmov 0  }
  0xdb   : > { %478 = vst.msk [vmem:[#allocation4 + $0x18] sm:$0xff] %vm474_vm0, %v2403_v0  ;;  %1929 = vmatpush3.bf16.xpose.msra.mxu0 %v1023_v3  ;;  %1935 = vmatpush3.bf16.xpose.msra.mxu1 %v1069_v4  ;;  %v1013_v6 = vld [vmem:[%s395_s24 + $0xc] sm:$0xf]  ;;  %v1006_v7 = vld [vmem:[%s2766_s23] sm:$0xf]  ;;  %v1115_v9 = vsel %vm474_vm0, %v1012_v5, 0 }
  0xdc   : > { %1940 = vmatprep.subr.bf16.mxu0 %v2403_v0  ;;  %1946 = vmatprep.subr.bf16.mxu1 %v2403_v0  ;;  %v1007_v8 = vld [vmem:[%s2766_s23 + $0x4] sm:$0xf]  ;;  %v1161_v10 = vsel %vm474_vm0, %v1013_v6, 0  ;;  %v1008_v11 = vld [vmem:[%s2766_s23 + $0x8] sm:$0xf]  ;;  %470 = vst.msk [vmem:[#allocation3] sm:$0xff] %vm465_vm2, %v2403_v0 }
  0xdd   : > { %v1009_v12 = vld [vmem:[%s2766_s23 + $0xc] sm:$0xf]  ;;  %v2405_v13 = vmov -1e+30   ;;  %471 = vst.msk [vmem:[#allocation3 + $0x8] sm:$0xff] %vm465_vm2, %v2403_v0  ;;  %472 = vst.msk [vmem:[#allocation3 + $0x10] sm:$0xff] %vm465_vm2, %v2403_v0  ;;  %2091 = vset.pattern.permute.xlu0 %v2406_v41  ;;  %2092 = vset.pattern.permute.xlu1 %v2406_v41 }
  0xde   : > { %466 = vst.msk [vmem:[#allocation2] sm:$0xff] %vm465_vm2, %v2405_v13  ;;  %467 = vst.msk [vmem:[#allocation2 + $0x8] sm:$0xff] %vm465_vm2, %v2405_v13  ;;  %v1204_v15 = vshrl.u32 %v1203_v14, 7  ;;  %v1206_v16 = vand.u32 127, %v1203_v14  ;;  %v1014_v58 = vld [vmem:[%s2772_s14] sm:$0xf] }
  0xdf   : > { %468 = vst.msk [vmem:[#allocation2 + $0x10] sm:$0xff] %vm465_vm2, %v2405_v13  ;;  %469 = vst.msk [vmem:[#allocation2 + $0x18] sm:$0xff] %vm465_vm2, %v2405_v13  ;;  %vm1340_vm4 = vcmask 1043456   ;;  %v1015_v60 = vld [vmem:[%s2772_s14 + $0x4] sm:$0xf]  ;;  %s2407_s27 = smov 8  }
  0xe0   : > { %473 = vst.msk [vmem:[#allocation3 + $0x18] sm:$0xff] %vm465_vm2, %v2403_v0  ;;  %vm1207_vm3 = vcmp.le.s32.totalorder %v1206_v16, %v1204_v15  ;;  %v1342_v59 = vsel %vm1340_vm4, %v1014_v58, 0  ;;  %v1388_v61 = vsel %vm1340_vm4, %v1015_v60, 0  ;;  %v1017_v15 = vld [vmem:[%s2772_s14 + $0xc] sm:$0xf]  ;;  %s2408_s7 = smov 16  }
  0xe1   : > { %s2409_s13 = smov 24   ;;  %vm1579_vm5 = vcmask 130112   ;;  %vm1585_vm6 = vcmask 195712   ;;  %s3056_s1 = sld [smem:[#allocation26_spill]]  ;;  %vm1591_vm7 = vcmask 261312   ;;  %vm1618_vm8 = vcmask 261120  }
  0xe2   : > { %1931 = vmatmul.mubr.msk.bf16.vlgmr.msra.gmra.mrb[0].mxu0 %vm474_vm0, %v1006_v7  ;;  %1937 = vmatmul.mubr.msk.bf16.vlgmr.msra.gmra.mrb[0].mxu1 %vm474_vm0, %v1007_v8  ;;  %s3057_s18 = sld [smem:[#allocation27_spill]]  ;;  %s455_s21 = scalar_lea.vmem [#allocation17], %s1875_s20  ;;  %vm1666_vm9 = vcmask 257024  }
  0xe3   : > { %1941 = vmatpush3.bf16.xpose.msra.mxu0 %v1115_v9  ;;  %1947 = vmatpush3.bf16.xpose.msra.mxu1 %v1161_v10  ;;  %v1016_v10 = vld [vmem:[%s2772_s14 + $0x8] sm:$0xf]  ;;  %s1683_s6 = sshll.u32 %s455_s21, 4  ;;  %s3058_s8 = sld [smem:[#allocation33_spill]]  ;;  %s2942_s6 = int_to_ptr.vmem [resolvable:$true] %s1683_s6 }
  0xe4   : > { %1942 = vmatprep.mubr.msk.bf16.mxu0 %vm2404_vm1, %v2403_v0  ;;  %1948 = vmatprep.mubr.msk.bf16.mxu1 %vm2404_vm1, %v2403_v0  ;;  %v1434_v14 = vsel %vm1340_vm4, %v1016_v10, 0  ;;  %s1669_s11 = scalar_lea.sflag [#allocation8], %s2752_s12  ;;  %s2295_s17 = scalar_lea.vmem %s2942_s6, 64 }
  0xe5   : > { %1952 = vmatprep.subr.bf16.mxu0 %v2403_v0  ;;  %1958 = vmatprep.subr.bf16.mxu1 %v2403_v0  ;;  %v2850_v42 = vld [vmem:[#allocation2] sm:$0xff]  ;;  %v2855_v45 = vld [vmem:[#allocation2 + $0x8] sm:$0xff]  ;;  %p2296_p13 = scmp.ne.s32.totalorder %s2942_s6, %s2295_s17  ;;  %s2410_s20 = smov [#allocation17]  }
  0xe6   : > { %v2865_v49 = vld [vmem:[#allocation2 + $0x10] sm:$0xff]  ;;  %v2875_v53 = vld [vmem:[#allocation2 + $0x18] sm:$0xff] }
  0xe7   : > { %v1279_v41 = vld [vmem:[#allocation3 + $0x18] sm:$0xff]  ;;  %s1903_s30 = sshll.u32 %s3056_s1, 6 }
  0xe8   : > { %p3059_p11 = scmp.ne.s32.totalorder %s3057_s18, 0 }
  0xe9   : > { %s2940_s29 = scalar_lea.hbm %s3058_s8, %s1903_s30 }
  0xea   : > { %1943 = vmatmul.mubr.msk.bf16.vlgmr.msra.gmra.mrb[4].mxu0 %vm474_vm0, %v1008_v11  ;;  %1949 = vmatmul.mubr.msk.bf16.vlgmr.msra.gmra.mrb[4].mxu1 %vm474_vm0, %v1009_v12  ;;  %p2297_p8 = pnand %p2296_p13, %p3059_p11 }
  0xeb   : > { %1954 = vmatprep.mubr.msk.bf16.mxu0 %vm2404_vm1, %v2403_v0  ;;  %1960 = vmatprep.mubr.msk.bf16.mxu1 %vm2404_vm1, %v2403_v0 }
  0xec   : > { %1953 = vmatpush3.bf16.msra.mxu0 %v1342_v59  ;;  %1959 = vmatpush3.bf16.msra.mxu1 %v1388_v61  ;;  %v1306_v59 = vld [vmem:[#allocation4 + $0x8] sm:$0xff]  ;;  %p2298_p5 = pneg %p2297_p8 }
  0xed   : > { %1964 = vmatprep.subr.bf16.mxu0 %v2403_v0  ;;  %1970 = vmatprep.subr.bf16.mxu1 %v2403_v0 }
 0x1b5   : > { %v1059_v17 = vpop.f32.mrb[0].mxu0  ;;  %v1105_v18 = vpop.f32.mrb[0].mxu1 }
 0x1b6   : > { %v2837_v19 = vsel %vm1207_vm3, %v1059_v17, -1e+30  ;;  %v1932_v20 = vpop.f32.mrb[1].mxu0  ;;  %v2840_v21 = vsel %vm1207_vm3, %v1105_v18, -1e+30  ;;  %v1938_v22 = vpop.f32.mrb[1].mxu1 }
 0x1b7   : > { %v1062_v23 = vpop.f32.mrb[2].mxu0  ;;  %v1216_v24 = vsel %vm474_vm0, %v2837_v19, -inf  ;;  %v1108_v25 = vpop.f32.mrb[2].mxu1  ;;  %v1219_v28 = vsel %vm474_vm0, %v2840_v21, -inf }
 0x1b8   : > { %1217 = vmax.xlane.f32.xlu0 %v1216_v24  ;;  %v1933_v26 = vpop.f32.mrb[3].mxu0  ;;  %v1939_v27 = vpop.f32.mrb[3].mxu1 }
 0x1bc   : > { %1220 = vmax.xlane.f32.xlu0 %v1219_v28 }
 0x1bd   : > { %v1151_v29 = vpop.f32.mrb[4].mxu0  ;;  %v1197_v30 = vpop.f32.mrb[4].mxu1 }
 0x1be   : > { %v1210_v31 = vsel %vm1207_vm3, %v1151_v29, -1e+30  ;;  %v1944_v32 = vpop.f32.mrb[5].mxu0  ;;  %v1211_v33 = vsel %vm1207_vm3, %v1197_v30, -1e+30  ;;  %v1950_v34 = vpop.f32.mrb[5].mxu1 }
 0x1bf   : > { %v1154_v35 = vpop.f32.mrb[6].mxu0  ;;  %v1222_v36 = vsel %vm474_vm0, %v1210_v31, -inf  ;;  %v1200_v37 = vpop.f32.mrb[6].mxu1  ;;  %v1225_v40 = vsel %vm474_vm0, %v1211_v33, -inf  ;;  %v1277_v34 = vld [vmem:[#allocation3 + $0x8] sm:$0xff] }
 0x1c0   : > { %1223 = vmax.xlane.f32.xlu1 %v1222_v36  ;;  %v1945_v38 = vpop.f32.mrb[7].mxu0  ;;  %v1951_v39 = vpop.f32.mrb[7].mxu1  ;;  %v1278_v37 = vld [vmem:[#allocation3 + $0x10] sm:$0xff] }
 0x1c4   : > { %1226 = vmax.xlane.f32.xlu1 %v1225_v40 }
 0x245   : > { %v1218_v43 = vpop.xlane.xlu0 %1217 }
 0x246   : > { %v2853_v44 = vmax.f32 %v2850_v42, %v1218_v43 }
 0x248   : > { %v1232_v46 = vsub.f32 %v2850_v42, %v2853_v44  ;;  %1530 = vst.msk [vmem:[#allocation2] sm:$0xff] %vm465_vm2, %v2853_v44  ;;  %1246 = vperm.xlu0 %2091, %v2853_v44  }
 0x249   : > { %v1221_v47 = vpop.xlane.xlu0 %1220 }
 0x24a   : > { %v2863_v48 = vmax.f32 %v2855_v45, %v1221_v47 }
 0x24c   : > { %v1233_v50 = vsub.f32 %v2855_v45, %v2863_v48  ;;  %1531 = vst.msk [vmem:[#allocation2 + $0x8] sm:$0xff] %vm465_vm2, %v2863_v48  ;;  %1251 = vperm.xlu1 %2092, %v2863_v48  }
 0x24d   : > { %v1224_v51 = vpop.xlane.xlu1 %1223 }
 0x24e   : > { %v2873_v52 = vmax.f32 %v2865_v49, %v1224_v51  ;;  %v1238_v28 = vmul.f32 1.442695, %v1233_v50 }
 0x250   : > { %v1234_v54 = vsub.f32 %v2865_v49, %v2873_v52  ;;  %1532 = vst.msk [vmem:[#allocation2 + $0x10] sm:$0xff] %vm465_vm2, %v2873_v52  ;;  %1256 = vperm.xlu1 %2092, %v2873_v52   ;;  %v1276_v49 = vld [vmem:[#allocation3] sm:$0xff] }
 0x251   : > { %v1227_v55 = vpop.xlane.xlu1 %1226 }
 0x252   : > { %v2883_v56 = vmax.f32 %v2875_v53, %v1227_v55  ;;  %v1240_v26 = vmul.f32 1.442695, %v1234_v54 }
 0x254   : > { %v1235_v57 = vsub.f32 %v2875_v53, %v2883_v56  ;;  %1533 = vst.msk [vmem:[#allocation2 + $0x18] sm:$0xff] %vm465_vm2, %v2883_v56  ;;  %1261 = vperm.xlu1 %2092, %v2883_v56  }
 0x256   : > { %v1242_v29 = vmul.f32 1.442695, %v1235_v57 }
 0x2c7   : > { %v1247_v62 = vpop.permute.xlu0 %1246 }
 0x2c8   : > { %v1264_v63 = vsub.f32 %v2837_v19, %v1247_v62  ;;  %v1480_v19 = vsel %vm1340_vm4, %v1017_v15, 0 }
 0x2ca   : > { %v1268_v1 = vmul.f32 1.442695, %v1264_v63 }
 0x2cb   : > { %v1252_v2 = vpop.permute.xlu1 %1251 }
 0x2cc   : > { %2095 = vpow2.f32 %v1268_v1  ;;  %v1265_v3 = vsub.f32 %v2840_v21, %v1252_v2 }
 0x2ce   : > { %v1270_v4 = vmul.f32 1.442695, %v1265_v3  ;;  %v1307_v3 = vld [vmem:[#allocation4 + $0x10] sm:$0xff] }
 0x2cf   : > { %v1257_v5 = vpop.permute.xlu1 %1256 }
 0x2d0   : > { %2097 = vpow2.f32 %v1270_v4  ;;  %v1266_v6 = vsub.f32 %v1210_v31, %v1257_v5 }
 0x2d2   : > { %v1272_v7 = vmul.f32 1.442695, %v1266_v6 }
 0x2d3   : > { %v1262_v8 = vpop.permute.xlu1 %1261 }
 0x2d4   : > { %2099 = vpow2.f32 %v1272_v7  ;;  %v1267_v9 = vsub.f32 %v1211_v33, %v1262_v8  ;;  %v1236_v33 = vmul.f32 1.442695, %v1232_v46 }
 0x2d6   : > { %v2096_v11 = vpop.eup %2095  ;;  %v1274_v12 = vmul.f32 1.442695, %v1267_v9 }
 0x2d7   : > { %v1333_v13 = vpack.c.bf16 %v2096_v11, %v2096_v11  ;;  %v1284_v27 = vsel %vm474_vm0, %v2096_v11, 0.0  ;;  %v1308_v11 = vld [vmem:[#allocation4 + $0x18] sm:$0xff] }
 0x2d8   : > { %2101 = vpow2.f32 %v1274_v12 }
 0x2d9   : > { %1955 = vmatmul.mubr.msk.bf16.vlgmr.msra.gmra.mrb[8].mxu0 %vm474_vm0, %v1333_v13  ;;  %2103 = vpow2.f32 %v1240_v26 }
 0x2da   : > { %v2098_v16 = vpop.eup %2097  ;;  %1965 = vmatpush3.bf16.msra.mxu0 %v1434_v14  ;;  %1966 = vmatprep.mubr.msk.bf16.mxu0 %vm2404_vm1, %v2403_v0  ;;  %2105 = vpow2.f32 %v1238_v28 }
 0x2db   : > { %v1287_v17 = vsel %vm474_vm0, %v2098_v16, 0.0  ;;  %v1334_v18 = vpack.c.bf16 %v2098_v16, %v2098_v16  ;;  %1976 = vmatprep.subr.bf16.mxu0 %v2403_v0  ;;  %2107 = vpow2.f32 %v1242_v29 }
 0x2dc   : > { %1288 = vadd.xlane.f32.xlu1 %v1287_v17  ;;  %2109 = vpow2.f32 %v1236_v33 }
 0x2dd   : > { %1961 = vmatmul.mubr.msk.bf16.vlgmr.msra.gmra.mrb[8].mxu1 %vm474_vm0, %v1334_v18 }
 0x2de   : > { %v2100_v20 = vpop.eup %2099  ;;  %1971 = vmatpush3.bf16.msra.mxu1 %v1480_v19  ;;  %1972 = vmatprep.mubr.msk.bf16.mxu1 %vm2404_vm1, %v2403_v0 }
 0x2df   : > { %v1290_v21 = vsel %vm474_vm0, %v2100_v20, 0.0  ;;  %v1335_v22 = vpack.c.bf16 %v2100_v20, %v2100_v20 }
 0x2e0   : > { %1291 = vadd.xlane.f32.xlu0 %v1290_v21 }
 0x2e1   : > { %1967 = vmatmul.mubr.msk.bf16.vlgmr.msra.gmra.mrb[12].mxu0 %vm474_vm0, %v1335_v22 }
 0x2e2   : > { %v2102_v23 = vpop.eup %2101  ;;  %1980 = vmatprep.mubr.msk.bf16.mxu0 %vm2404_vm1, %v2403_v0 }
 0x2e3   : > { %v1293_v24 = vsel %vm474_vm0, %v2102_v23, 0.0  ;;  %v1336_v25 = vpack.c.bf16 %v2102_v23, %v2102_v23  ;;  %v2104_v30 = vpop.eup %2103 }
 0x2e4   : > { %1294 = vadd.xlane.f32.xlu1 %v1293_v24  ;;  %v2106_v31 = vpop.eup %2105  ;;  %v1282_v39 = vmul.f32 %v2104_v30, %v1278_v37  ;;  %v2093_v24 = vld [vmem:[#allocation14] sm:$0xff]  }
 0x2e5   : > { %1973 = vmatmul.mubr.msk.bf16.vlgmr.msra.gmra.mrb[12].mxu1 %vm474_vm0, %v1336_v25  ;;  %v2108_v32 = vpop.eup %2107  ;;  %v1281_v35 = vmul.f32 %v2106_v31, %v1277_v34  ;;  %1977 = vmatpush3.bf16.msra.mxu0 %v2093_v24 }
 0x2e6   : > { %v1283_v45 = vmul.f32 %v2108_v32, %v1279_v41  ;;  %v2110_v47 = vpop.eup %2109  ;;  %1978 = vmatprep.subr.bf16.mxu0 %v2403_v0 }
 0x2e7   : > { %v1280_v46 = vmul.f32 %v2110_v47, %v1276_v49  ;;  %v1662_v49 = vld [vmem:[%s2758_s28] sm:$0xf]  ;;  %s2299_s28 = sshll.u32 %s2410_s20, 4  ;;  %s2300_s28 = int_to_ptr.vmem [resolvable:$false] %s2299_s28 }
 0x2e8   : > { %1285 = vadd.xlane.f32.xlu1 %v1284_v27  ;;  %v2094_v27 = vld [vmem:[#allocation14 + $0x8] sm:$0xff]   ;;  %s2301_s10 = scalar_lea.vmem %s2300_s28, 128  ;;  %p2302_p3 = scmp.lt.s32.totalorder %s2942_s6, %s2300_s28 }
 0x2e9   : > { %1979 = vmatpush3.bf16.msra.mxu0 %v2094_v27  ;;  %p2303_p12 = scmp.lt.s32.totalorder %s2301_s10, %s2295_s17 }
 0x2eb   : > { %p2304_p4 = por %p2303_p12, %p2302_p3 }
 0x2ed   : > { %p2305_p0 = pnand %p2304_p4, %p2298_p5 }
 0x2f6   : > { %1321 = vperm.xlu0 %2091, %v2104_v30  }
 0x2f9   : > { %1316 = vperm.xlu1 %2092, %v2106_v31  }
 0x2fd   : > { %1326 = vperm.xlu1 %2092, %v2108_v32   ;;  %v1305_v32 = vld [vmem:[#allocation4] sm:$0xff] }
 0x369   : > { %v1289_v36 = vpop.xlane.xlu1 %1288 }
 0x36a   : > { %v1297_v38 = vadd.f32 %v1289_v36, %v1281_v35 }
 0x36c   : > { %1302 = vst.msk [vmem:[#allocation3 + $0x8] sm:$0xff] %vm465_vm2, %v1297_v38 }
 0x36d   : > { %v1292_v40 = vpop.xlane.xlu0 %1291 }
 0x36e   : > { %v1298_v43 = vadd.f32 %v1292_v40, %v1282_v39 }
 0x370   : > { %1303 = vst.msk [vmem:[#allocation3 + $0x10] sm:$0xff] %vm465_vm2, %v1298_v43 }
 0x371   : > { %v1295_v48 = vpop.xlane.xlu1 %1294 }
 0x372   : > { %v1299_v42 = vadd.f32 %v1295_v48, %v1283_v45 }
 0x373   : > { %v1538_v44 = vld [vmem:[#allocation3 + $0x8] sm:$0xff] }
 0x374   : > { %1304 = vst.msk [vmem:[#allocation3 + $0x18] sm:$0xff] %vm465_vm2, %v1299_v42  ;;  %2111 = vrcp.f32 %v1538_v44  ;;  %v1898_v42 = vld [vmem:[#allocation15] ss:$0 sm:$0xff]  ;;  %v1663_v44 = vunpack.c.l.bf16 %v1662_v49 }
 0x375   : > { %v1286_v50 = vpop.xlane.xlu1 %1285  ;;  %v1322_v4 = vpop.permute.xlu0 %1321 }
 0x376   : > { %v1296_v51 = vadd.f32 %v1286_v50, %v1280_v46  ;;  %v1331_v9 = vmul.f32 %v1322_v4, %v1307_v3 }
 0x377   : > { %v1539_v52 = vld [vmem:[#allocation3 + $0x10] sm:$0xff] }
 0x378   : > { %1301 = vst.msk [vmem:[#allocation3] sm:$0xff] %vm465_vm2, %v1296_v51  ;;  %2113 = vrcp.f32 %v1539_v52 }
 0x379   : > { %v1317_v60 = vpop.permute.xlu1 %1316 }
 0x37a   : > { %v1330_v1 = vmul.f32 %v1317_v60, %v1306_v59 }
 0x37b   : > { %v1540_v53 = vld [vmem:[#allocation3 + $0x18] sm:$0xff] }
 0x37c   : > { %2115 = vrcp.f32 %v1540_v53 }
 0x37d   : > { %v1327_v12 = vpop.permute.xlu1 %1326 }
 0x37e   : > { %v2112_v54 = vpop.eup %2111  ;;  %v1332_v17 = vmul.f32 %v1327_v12, %v1308_v11 }
 0x37f   : > { %1556 = vperm.xlu1 %2092, %v2112_v54   ;;  %v1537_v55 = vld [vmem:[#allocation3] sm:$0xff] }
 0x380   : > { %2117 = vrcp.f32 %v1537_v55 }
 0x382   : > { %v2114_v56 = vpop.eup %2113 }
 0x383   : > { %1561 = vperm.xlu1 %2092, %v2114_v56  }
 0x386   : > { %v2116_v57 = vpop.eup %2115 }
 0x387   : > { %1566 = vperm.xlu0 %2091, %v2116_v57   ;;  %1311 = vperm.xlu1 %2092, %v2110_v47  }
 0x38a   : > { %v2118_v58 = vpop.eup %2117 }
 0x38b   : > { %1551 = vperm.xlu0 %2091, %v2118_v58  }
 0x3ac   : > { %v1378_v61 = vpop.f32.mrb[8].mxu0 }
 0x3ad   : > { %v1956_v62 = vpop.f32.mrb[9].mxu0 }
 0x3ae   : > { %v1381_v63 = vpop.f32.mrb[10].mxu0 }
 0x3af   : > { %v1957_v2 = vpop.f32.mrb[11].mxu0 }
 0x3b0   : > { %v1424_v5 = vpop.f32.mrb[8].mxu1 }
 0x3b1   : > { %v1523_v6 = vadd.f32 %v1424_v5, %v1330_v1  ;;  %v1962_v7 = vpop.f32.mrb[9].mxu1 }
 0x3b2   : > { %v1427_v8 = vpop.f32.mrb[10].mxu1 }
 0x3b3   : > { %1527 = vst.msk [vmem:[#allocation4 + $0x8] sm:$0xff] %vm474_vm0, %v1523_v6  ;;  %v1963_v10 = vpop.f32.mrb[11].mxu1 }
 0x3b4   : > { %v1470_v13 = vpop.f32.mrb[12].mxu0 }
 0x3b5   : > { %v1524_v14 = vadd.f32 %v1470_v13, %v1331_v9  ;;  %v1968_v15 = vpop.f32.mrb[13].mxu0 }
 0x3b6   : > { %v1473_v16 = vpop.f32.mrb[14].mxu0 }
 0x3b7   : > { %1528 = vst.msk [vmem:[#allocation4 + $0x10] sm:$0xff] %vm474_vm0, %v1524_v14  ;;  %v1969_v18 = vpop.f32.mrb[15].mxu0 }
 0x3b8   : > { %v1516_v19 = vpop.f32.mrb[12].mxu1 }
 0x3b9   : > { %v1525_v20 = vadd.f32 %v1516_v19, %v1332_v17  ;;  %v1974_v21 = vpop.f32.mrb[13].mxu1 }
 0x3ba   : > { %v1519_v22 = vpop.f32.mrb[14].mxu1  ;;  %v1546_v25 = vld [vmem:[#allocation4 + $0x8] sm:$0xff] }
 0x3bb   : > { %1529 = vst.msk [vmem:[#allocation4 + $0x18] sm:$0xff] %vm474_vm0, %v1525_v20  ;;  %v1975_v23 = vpop.f32.mrb[15].mxu1 }
 0x3be   : > { %v1547_v30 = vld [vmem:[#allocation4 + $0x10] sm:$0xff] }
 0x3c2   : > { %v1548_v33 = vld [vmem:[#allocation4 + $0x18] sm:$0xff] }
 0x3fe   : > { %v1557_v26 = vpop.permute.xlu1 %1556 }
 0x3ff   : > { %v1570_v28 = vmul.f32 %v1557_v26, %v1546_v25 }
 0x401   : > { %1576 = vrot.lane.b32.xlu1 %v1570_v28, %s2407_s27 }
 0x402   : > { %v1562_v29 = vpop.permute.xlu1 %1561 }
 0x403   : > { %v1571_v31 = vmul.f32 %v1562_v29, %v1547_v30 }
 0x405   : > { %1582 = vrot.lane.b32.xlu0 %v1571_v31, %s2408_s7 }
 0x406   : > { %v1567_v34 = vpop.permute.xlu0 %1566  ;;  %v1312_v35 = vpop.permute.xlu1 %1311 }
 0x407   : > { %v1572_v36 = vmul.f32 %v1567_v34, %v1548_v33  ;;  %v1329_v37 = vmul.f32 %v1312_v35, %v1305_v32 }
 0x409   : > { %v1522_v38 = vadd.f32 %v1378_v61, %v1329_v37  ;;  %1588 = vrot.lane.b32.xlu1 %v1572_v36, %s2409_s13 }
 0x40a   : > { %v1552_v39 = vpop.permute.xlu0 %1551 }
 0x40b   : > { %1526 = vst.msk [vmem:[#allocation4] sm:$0xff] %vm474_vm0, %v1522_v38 }
 0x412   : > { %v1545_v0 = vld [vmem:[#allocation4] sm:$0xff] }
 0x413   : > { %v1569_v40 = vmul.f32 %v1552_v39, %v1545_v0 }
 0x415   : > { %1574 = vst.msk [vmem:[#allocation5] sm:$0xff] %vm474_vm0, %v1569_v40 }
 0x473   : > { %v1577_v41 = vpop.permute.xlu1 %1576 }
 0x474   : > { %1580 = vst.msk [vmem:[#allocation5] sm:$0xff] %vm1579_vm5, %v1577_v41 }
 0x477   : > { %v1583_v43 = vpop.permute.xlu0 %1582 }
 0x478   : > { %1586 = vst.msk [vmem:[#allocation5] sm:$0xff] %vm1585_vm6, %v1583_v43 }
 0x47b   : > { %v1589_v45 = vpop.permute.xlu1 %1588 }
 0x47c   : > { %1592 = vst.msk [vmem:[#allocation5] sm:$0xff] %vm1591_vm7, %v1589_v45 }
 0x483   : > { %v1593_v47 = vld [vmem:[#allocation5] sm:$0xff] }
 0x484   : > { %v1594_v48 = vpack.c.bf16 %v1593_v47, %v1593_v47 }
 0x486   : > { %1981 = vmatmul.mubr.msk.bf16.vlgmr.msra.gmra.mrb[16].mxu0 %vm1618_vm8, %v1594_v48 }
 0x559   : > { %v1656_v46 = vpop.f32.mrb[16].mxu0 }
 0x55a   : > { %v1657_v50 = vadd.f32 %v1898_v42, %v1656_v46  ;;  %v1982_v51 = vpop.f32.mrb[17].mxu0 }
 0x55b   : > { %v1659_v52 = vpop.f32.mrb[18].mxu0 }
 0x55c   : > { %v1664_v53 = vadd.f32 %v1663_v44, %v1657_v50  ;;  %v1983_v54 = vpop.f32.mrb[19].mxu0 }
 0x55e   : > { %v1665_v55 = vpack.c.bf16 %v1664_v53, %v1664_v53 }
 0x560   : > { %1667 = vst.msk [vmem:[%s455_s21] sm:$0xf] %vm1666_vm9, %v1665_v55 }
 0x561   : > { %2308 = shalt.err (!%p2305_p0)
}
 0x562   : > { %s2309_s12 = scalar_lea.hbm %s2940_s29, 64  ;;  %s2313_s23 = scalar_lea.hbm %s3058_s8, 128 }
 0x563   : > { %p2310_p9 = scmp.ne.s32.totalorder %s2940_s29, %s2309_s12  ;;  %p2314_p7 = scmp.lt.u32.totalorder %s2940_s29, %s3058_s8 }
 0x564   : > { %p2315_p2 = scmp.lt.u32.totalorder %s2313_s23, %s2309_s12  ;;  %p2317_p13 = scmp.lt.u32.totalorder %s2309_s12, %s2940_s29 }
 0x565   : > { %p2311_p1 = pnand %p2310_p9, %p3059_p11 }
 0x566   : > { %p2316_p6 = por %p2315_p2, %p2314_p7 }
 0x567   : > { %p2312_p10 = pneg %p2311_p1 }
 0x568   : > { %p2318_p8 = por %p2317_p13, %p2316_p6 }
 0x56a   : > { %p2319_p5 = pnand %p2318_p8, %p2312_p10 }
 0x56c   : > { %2322 = shalt.err (!%p2319_p5)
}
 0x56d   : > { %2000 = dma.vmem_to_hbm [thread:$0]  (%p3059_p11), %s2942_s6, 64, %s2940_s29, %s1669_s11  }
 0x56e PF: > { %s3060_s14 = sld [smem:[#allocation24_spill]]  ;;  %s3061_s27 = sld [smem:[#allocation28_spill]] }
 0x56f   : > { %p3063_p12 = scmp.ge.s32.totalorder %s2393_s26, 2 }
 0x574   : > { %s1695_s7 = sand.u32 1, %s3060_s14   ;;  %p3062_p3 = scmp.ne.s32.totalorder %s3061_s27, 0 }
 0x575   : > { %s1696_s13 = scalar_lea.sflag [#allocation8], %s1695_s7 }
 0x576   : > { %p2023_p4 = pnand %p3063_p12, %p3062_p3 }
 0x578   : > { %2368 = dma.done.wait (!%p2023_p4), %s1696_s13, 64  }
 0x579   : > { %2370 = vsyncadd (!%p2023_p4), %s1696_s13, 4294967232  ;;  %s29_s26 = sadd.s32 1, %s2393_s26   ;;  %s3064_s1 = sld [smem:[#allocation25_spill]] }
 0x57a   : > { %p26_p0 = scmp.ge.s32.totalorder %s29_s26, 4   ;;  %s3065_s23 = sld [smem:[#allocation30_spill]] }
 0x57b   : > { %s3066_s18 = sld [smem:[#allocation29_spill]]  ;;  %s3067_s21 = smov %s2377_s22 }
 0x57c   : > { %s3069_s24 = smov %s2389_s25  ;;  %28 = sbr.rel (!%p26_p0) target bundleno = 15 (0xf), region = 150 }
 0x57f   : > { %s3068_s22 = smov %s3064_s1 }
 0x581   : > { %s3070_s25 = smov %s3066_s18 }
 0x583   :  { %1701 = vsyncpa [#allocation7], 1 }
 0x584   :  { %1703 = vsyncpa [#allocation7 + $0x1], 1 }
 0x585   :  { %1704 = vsyncpa [#allocation10], 1 }
 0x586   :  { %1706 = vsyncpa [#allocation10 + $0x1], 1 }
 0x587   :  { %1707 = vsyncpa [#allocation13], 1 }
 0x588   :  { %1709 = vsyncpa [#allocation13 + $0x1], 1 }
 0x589   :  { %1710 = vsyncpa [#allocation16], 1 }
 0x58a   :  { %1711 = vsyncpa [#allocation8], 1 }
 0x58b   :  { %1713 = vsyncpa [#allocation8 + $0x1], 1 }

</bundles_post_ra>
